<compile_context>
chip_gen: v7x
topology: tpu7x:2x2x1
jax: 0.10.0
libtpu: 0.0.40
codegen_flags: <defaults>
</compile_context>

<pallas_src>
import numpy as np

import jax
import jax.numpy as jnp
from jax.experimental import pallas as pl
from jax.experimental.pallas import tpu as pltpu


# ------------------------------ fused kernel --------------------------------

def _lenet_fused_kernel(x_ref, s1sel_ref, s1pool_ref, s2sel_ref, s2pool_ref,
                        w1_ref, b1_ref, w2_ref, b2_ref,
                        wf1_ref, bf1_ref, wf2_ref, bf2_ref, wf3_ref, bf3_ref,
                        out_ref):
    f32 = jnp.float32
    x = x_ref[0]                                    # (1, 784) flat 28x28 image

    # ---- conv1: 1 -> 6, 5x5 VALID ------------------------------------------
    # z1[c, m] = sum_{i,j} conv1_w[c, i, j] * x[m + 28*i + j]
    w1 = w1_ref[...]                                # (6, 25)
    z1 = jnp.zeros((6, 668), f32)
    for i in range(5):
        for j in range(5):
            k = 5 * i + j
            d = 28 * i + j
            z1 = z1 + w1[:, k:k + 1] * x[:, d:d + 668]
    # Keep only valid output positions m = 28*ho + wo  ->  columns p = 24*ho+wo.
    y1 = jnp.dot(z1, s1sel_ref[...], preferred_element_type=f32)
    y1 = jnp.maximum(y1 + b1_ref[...], 0.0)         # (6, 576)

    # ---- maxpool 2x2 stride 2 ------------------------------------------------
    m1 = y1[:, 0:551]
    for d in (1, 24, 25):                           # window offsets in flat 24x24
        m1 = jnp.maximum(m1, y1[:, d:d + 551])
    p1 = jnp.dot(m1, s1pool_ref[...], preferred_element_type=f32)   # (6, 144)

    # ---- conv2: 6 -> 16, 5x5 VALID -------------------------------------------
    w2 = w2_ref[...]                                # (400, 6): rows = (tap, cout)
    z2 = jnp.zeros((16, 92), f32)
    for i in range(5):
        for j in range(5):
            k = 5 * i + j
            d = 12 * i + j
            z2 = z2 + jnp.dot(w2[k * 16:(k + 1) * 16, :], p1[:, d:d + 92],
                              preferred_element_type=f32)
    y2 = jnp.dot(z2, s2sel_ref[...], preferred_element_type=f32)
    y2 = jnp.maximum(y2 + b2_ref[...], 0.0)         # (16, 64)

    # ---- maxpool 2x2 stride 2 ------------------------------------------------
    m2 = y2[:, 0:55]
    for d in (1, 8, 9):                             # window offsets in flat 8x8
        m2 = jnp.maximum(m2, y2[:, d:d + 55])
    p2 = jnp.dot(m2, s2pool_ref[...], preferred_element_type=f32)   # (16, 16)

    # ---- fc1 (256 -> 120): torch flatten order is (channel, 4*r+s) ----------
    h = bf1_ref[...]                                # (1, 120)
    for c in range(16):
        h = h + jnp.dot(p2[c:c + 1, :], wf1_ref[c * 16:(c + 1) * 16, :],
                        preferred_element_type=f32)
    h = jnp.maximum(h, 0.0)

    # ---- fc2 (120 -> 84) + ReLU, fc3 (84 -> 10) ------------------------------
    h = jnp.maximum(
        jnp.dot(h, wf2_ref[...], preferred_element_type=f32) + bf2_ref[...], 0.0)
    o = jnp.dot(h, wf3_ref[...], preferred_element_type=f32) + bf3_ref[...]
    out_ref[0] = o                                  # (1, 10)


_KP_ORDER = ("s1sel", "s1pool", "s2sel", "s2pool",
             "w1", "b1", "w2", "b2",
             "wf1", "bf1", "wf2", "bf2", "wf3", "bf3")


def _const_spec(shape):
    # Constant block index -> loaded into VMEM once, reused for every image.
    return pl.BlockSpec(shape, lambda i: (0, 0))


def lenet_pallas_forward(x_nchw, kp):
    """Fused BayesianCNN forward.  x_nchw: (B, 1, 28, 28) f32 -> (B, 10) f32."""
    b = x_nchw.shape[0]
    x_flat = x_nchw.reshape(b, 1, 28 * 28).astype(jnp.float32)
    const_specs = [_const_spec(kp[name].shape) for name in _KP_ORDER]
    out = pl.pallas_call(
        _lenet_fused_kernel,
        out_shape=jax.ShapeDtypeStruct((b, 1, 10), jnp.float32),
        grid_spec=pltpu.PrefetchScalarGridSpec(
            num_scalar_prefetch=0,
            grid=(b,),
            in_specs=[pl.BlockSpec((1, 1, 28 * 28), lambda i: (i, 0, 0))]
                     + const_specs,
            out_specs=pl.BlockSpec((1, 1, 10), lambda i: (i, 0, 0)),
        ),
        compiler_params=pltpu.CompilerParams(
            dimension_semantics=("parallel",)),
    )(x_flat, *[kp[name] for name in _KP_ORDER])
    return out.reshape(b, 10)


# --------------------------- weight / constant prep --------------------------

def _selection_matrix(rows, cols, col_to_row):
    s = np.zeros((rows, cols), np.float32)
    for c in range(cols):
        s[col_to_row(c), c] = 1.0
    return jnp.asarray(s)


def prepare_inference_params(w):
    """One-time (per weight sample) repack into the layout the kernel consumes."""
    return {
        # conv / pool output selection matrices (0/1 constants).
        "s1sel": _selection_matrix(668, 576, lambda p: 28 * (p // 24) + (p % 24)),
        "s1pool": _selection_matrix(551, 144, lambda q: 48 * (q // 12) + 2 * (q % 12)),
        "s2sel": _selection_matrix(92, 64, lambda p: 12 * (p // 8) + (p % 8)),
        "s2pool": _selection_matrix(55, 16, lambda q: 16 * (q // 4) + 2 * (q % 4)),
        # conv1: (Cout, KH*KW); conv2: rows = (tap, Cout), cols = Cin.
        "w1": w["conv1_w"].reshape(6, 25),
        "b1": w["conv1_b"].reshape(6, 1),
        "w2": jnp.transpose(w["conv2_w"], (2, 3, 0, 1)).reshape(25 * 16, 6),
        "b2": w["conv2_b"].reshape(16, 1),
        "wf1": w["fc1_w"].T, "bf1": w["fc1_b"].reshape(1, 120),
        "wf2": w["fc2_w"].T, "bf2": w["fc2_b"].reshape(1, 84),
        "wf3": w["fc3_w"].T, "bf3": w["fc3_b"].reshape(1, 10),
    }


# ----------------------- Bayesian variational parameters ---------------------

_PARAM_SHAPES = {
    "conv1_w": (6, 1, 5, 5), "conv1_b": (6,),
    "conv2_w": (16, 6, 5, 5), "conv2_b": (16,),
    "fc1_w": (120, 256), "fc1_b": (120,),
    "fc2_w": (84, 120), "fc2_b": (84,),
    "fc3_w": (10, 84), "fc3_b": (10,),
}


def init_bayesian_params(key):
    params = {}
    for i, name in enumerate(sorted(_PARAM_SHAPES)):
        shape = _PARAM_SHAPES[name]
        kmu, krho = jax.random.split(jax.random.fold_in(key, i))
        mu = 0.1 * jax.random.normal(kmu, shape, jnp.float32)
        rho = -6.0 + 0.05 * jax.random.normal(krho, shape, jnp.float32)
        params[name] = (mu, rho)
    return params


def sample_weights(params, key):
    """Reparameterization: w = mu + softplus(rho) * eps, eps ~ N(0, 1)."""
    weights = {}
    for i, name in enumerate(sorted(params)):
        mu, rho = params[name]
        eps = jax.random.normal(jax.random.fold_in(key, i), mu.shape, mu.dtype)
        weights[name] = mu + jax.nn.softplus(rho) * eps
    return weights


# ---------------------------- pure-JAX reference -----------------------------

def reference_forward(x, w):
    dn = ("NCHW", "OIHW", "NCHW")
    y = jax.lax.conv_general_dilated(x, w["conv1_w"], (1, 1), "VALID",
                                     dimension_numbers=dn)
    y = jax.nn.relu(y + w["conv1_b"].reshape(1, 6, 1, 1))
    y = jax.lax.reduce_window(y, -jnp.inf, jax.lax.max,
                              (1, 1, 2, 2), (1, 1, 2, 2), "VALID")
    y = jax.lax.conv_general_dilated(y, w["conv2_w"], (1, 1), "VALID",
                                     dimension_numbers=dn)
    y = jax.nn.relu(y + w["conv2_b"].reshape(1, 16, 1, 1))
    y = jax.lax.reduce_window(y, -jnp.inf, jax.lax.max,
                              (1, 1, 2, 2), (1, 1, 2, 2), "VALID")
    y = y.reshape(y.shape[0], -1)
    y = jax.nn.relu(y @ w["fc1_w"].T + w["fc1_b"])
    y = jax.nn.relu(y @ w["fc2_w"].T + w["fc2_b"])
    return y @ w["fc3_w"].T + w["fc3_b"]


# ----------------------------------- main ------------------------------------

if __name__ == "__main__":
    key = jax.random.PRNGKey(0)
    pkey, skey, xkey = jax.random.split(key, 3)

    params = init_bayesian_params(pkey)
    weights = sample_weights(params, skey)           # one posterior weight draw
    kparams = prepare_inference_params(weights)      # layout prep (once per draw)

    # MNIST-like input: the 256-dim flatten forces 1x28x28 spatial; small batch.
    x = jax.random.normal(xkey, (2, 1, 28, 28), jnp.float32)

    fwd = jax.jit(lenet_pallas_forward)
    out = jax.block_until_ready(fwd(x, kparams))

    ref = jax.block_until_ready(jax.jit(reference_forward)(x, weights))
    assert out.shape == (2, 10) and out.dtype == jnp.float32
    assert jnp.allclose(out, ref, rtol=1e-3, atol=1e-3), (
        f"max |err| = {jnp.max(jnp.abs(out - ref))}")
    print("KERNEL_OK")
</pallas_src>

<mosaic_0001>
module attributes {stable_mosaic.version = 11 : i64} {
  func.func @_lenet_fused_kernel(%arg0: i32, %arg1: memref<1x1x784xf32, #tpu.memory_space<vmem>>, %arg2: memref<668x576xf32, #tpu.memory_space<vmem>>, %arg3: memref<551x144xf32, #tpu.memory_space<vmem>>, %arg4: memref<92x64xf32, #tpu.memory_space<vmem>>, %arg5: memref<55x16xf32, #tpu.memory_space<vmem>>, %arg6: memref<6x25xf32, #tpu.memory_space<vmem>>, %arg7: memref<6x1xf32, #tpu.memory_space<vmem>>, %arg8: memref<400x6xf32, #tpu.memory_space<vmem>>, %arg9: memref<16x1xf32, #tpu.memory_space<vmem>>, %arg10: memref<256x120xf32, #tpu.memory_space<vmem>>, %arg11: memref<1x120xf32, #tpu.memory_space<vmem>>, %arg12: memref<120x84xf32, #tpu.memory_space<vmem>>, %arg13: memref<1x84xf32, #tpu.memory_space<vmem>>, %arg14: memref<84x10xf32, #tpu.memory_space<vmem>>, %arg15: memref<1x10xf32, #tpu.memory_space<vmem>>, %arg16: memref<1x1x10xf32, #tpu.memory_space<vmem>>) attributes {dimension_semantics = [#tpu.dimension_semantics<parallel>], iteration_bounds = array<i64: 2>, scalar_prefetch = 0 : i64, scratch_operands = 0 : i64, tpu.core_type = #tpu.core_type<tc>, window_params = [{transform_indices = @transform_0, window_bounds = array<i64: 1, 1, 784>}, {pipeline_mode = #tpu.pipeline_mode<synchronous>, transform_indices = @transform_1, window_bounds = array<i64: 668, 576>}, {pipeline_mode = #tpu.pipeline_mode<synchronous>, transform_indices = @transform_2, window_bounds = array<i64: 551, 144>}, {pipeline_mode = #tpu.pipeline_mode<synchronous>, transform_indices = @transform_3, window_bounds = array<i64: 92, 64>}, {pipeline_mode = #tpu.pipeline_mode<synchronous>, transform_indices = @transform_4, window_bounds = array<i64: 55, 16>}, {pipeline_mode = #tpu.pipeline_mode<synchronous>, transform_indices = @transform_5, window_bounds = array<i64: 6, 25>}, {pipeline_mode = #tpu.pipeline_mode<synchronous>, transform_indices = @transform_6, window_bounds = array<i64: 6, 1>}, {pipeline_mode = #tpu.pipeline_mode<synchronous>, transform_indices = @transform_7, window_bounds = array<i64: 400, 6>}, {pipeline_mode = #tpu.pipeline_mode<synchronous>, transform_indices = @transform_8, window_bounds = array<i64: 16, 1>}, {pipeline_mode = #tpu.pipeline_mode<synchronous>, transform_indices = @transform_9, window_bounds = array<i64: 256, 120>}, {pipeline_mode = #tpu.pipeline_mode<synchronous>, transform_indices = @transform_10, window_bounds = array<i64: 1, 120>}, {pipeline_mode = #tpu.pipeline_mode<synchronous>, transform_indices = @transform_11, window_bounds = array<i64: 120, 84>}, {pipeline_mode = #tpu.pipeline_mode<synchronous>, transform_indices = @transform_12, window_bounds = array<i64: 1, 84>}, {pipeline_mode = #tpu.pipeline_mode<synchronous>, transform_indices = @transform_13, window_bounds = array<i64: 84, 10>}, {pipeline_mode = #tpu.pipeline_mode<synchronous>, transform_indices = @transform_14, window_bounds = array<i64: 1, 10>}, {transform_indices = @transform_15, window_bounds = array<i64: 1, 1, 10>}]} {
    %c0 = arith.constant 0 : index
    %c0_0 = arith.constant 0 : index
    %c0_1 = arith.constant 0 : index
    %0 = vector.load %arg1[%c0, %c0_0, %c0_1] : memref<1x1x784xf32, #tpu.memory_space<vmem>>, vector<1x1x784xf32>
    %1 = vector.shape_cast %0 : vector<1x1x784xf32> to vector<1x784xf32>
    %c0_2 = arith.constant 0 : index
    %c0_3 = arith.constant 0 : index
    %2 = vector.load %arg6[%c0_2, %c0_3] : memref<6x25xf32, #tpu.memory_space<vmem>>, vector<6x25xf32>
    %cst = arith.constant 0.000000e+00 : f32
    %3 = vector.broadcast %cst : f32 to vector<6x668xf32>
    %4 = vector.extract_strided_slice %2 {offsets = [0, 0], sizes = [6, 1], strides = [1, 1]} : vector<6x25xf32> to vector<6x1xf32>
    %5 = vector.extract_strided_slice %1 {offsets = [0, 0], sizes = [1, 668], strides = [1, 1]} : vector<1x784xf32> to vector<1x668xf32>
    %6 = vector.broadcast %4 : vector<6x1xf32> to vector<6x668xf32>
    %7 = vector.broadcast %5 : vector<1x668xf32> to vector<6x668xf32>
    %8 = arith.mulf %6, %7 : vector<6x668xf32>
    %9 = arith.addf %3, %8 : vector<6x668xf32>
    %10 = vector.extract_strided_slice %2 {offsets = [0, 1], sizes = [6, 1], strides = [1, 1]} : vector<6x25xf32> to vector<6x1xf32>
    %11 = vector.extract_strided_slice %1 {offsets = [0, 1], sizes = [1, 668], strides = [1, 1]} : vector<1x784xf32> to vector<1x668xf32>
    %12 = vector.broadcast %10 : vector<6x1xf32> to vector<6x668xf32>
    %13 = vector.broadcast %11 : vector<1x668xf32> to vector<6x668xf32>
    %14 = arith.mulf %12, %13 : vector<6x668xf32>
    %15 = arith.addf %9, %14 : vector<6x668xf32>
    %16 = vector.extract_strided_slice %2 {offsets = [0, 2], sizes = [6, 1], strides = [1, 1]} : vector<6x25xf32> to vector<6x1xf32>
    %17 = vector.extract_strided_slice %1 {offsets = [0, 2], sizes = [1, 668], strides = [1, 1]} : vector<1x784xf32> to vector<1x668xf32>
    %18 = vector.broadcast %16 : vector<6x1xf32> to vector<6x668xf32>
    %19 = vector.broadcast %17 : vector<1x668xf32> to vector<6x668xf32>
    %20 = arith.mulf %18, %19 : vector<6x668xf32>
    %21 = arith.addf %15, %20 : vector<6x668xf32>
    %22 = vector.extract_strided_slice %2 {offsets = [0, 3], sizes = [6, 1], strides = [1, 1]} : vector<6x25xf32> to vector<6x1xf32>
    %23 = vector.extract_strided_slice %1 {offsets = [0, 3], sizes = [1, 668], strides = [1, 1]} : vector<1x784xf32> to vector<1x668xf32>
    %24 = vector.broadcast %22 : vector<6x1xf32> to vector<6x668xf32>
    %25 = vector.broadcast %23 : vector<1x668xf32> to vector<6x668xf32>
    %26 = arith.mulf %24, %25 : vector<6x668xf32>
    %27 = arith.addf %21, %26 : vector<6x668xf32>
    %28 = vector.extract_strided_slice %2 {offsets = [0, 4], sizes = [6, 1], strides = [1, 1]} : vector<6x25xf32> to vector<6x1xf32>
    %29 = vector.extract_strided_slice %1 {offsets = [0, 4], sizes = [1, 668], strides = [1, 1]} : vector<1x784xf32> to vector<1x668xf32>
    %30 = vector.broadcast %28 : vector<6x1xf32> to vector<6x668xf32>
    %31 = vector.broadcast %29 : vector<1x668xf32> to vector<6x668xf32>
    %32 = arith.mulf %30, %31 : vector<6x668xf32>
    %33 = arith.addf %27, %32 : vector<6x668xf32>
    %34 = vector.extract_strided_slice %2 {offsets = [0, 5], sizes = [6, 1], strides = [1, 1]} : vector<6x25xf32> to vector<6x1xf32>
    %35 = vector.extract_strided_slice %1 {offsets = [0, 28], sizes = [1, 668], strides = [1, 1]} : vector<1x784xf32> to vector<1x668xf32>
    %36 = vector.broadcast %34 : vector<6x1xf32> to vector<6x668xf32>
    %37 = vector.broadcast %35 : vector<1x668xf32> to vector<6x668xf32>
    %38 = arith.mulf %36, %37 : vector<6x668xf32>
    %39 = arith.addf %33, %38 : vector<6x668xf32>
    %40 = vector.extract_strided_slice %2 {offsets = [0, 6], sizes = [6, 1], strides = [1, 1]} : vector<6x25xf32> to vector<6x1xf32>
    %41 = vector.extract_strided_slice %1 {offsets = [0, 29], sizes = [1, 668], strides = [1, 1]} : vector<1x784xf32> to vector<1x668xf32>
    %42 = vector.broadcast %40 : vector<6x1xf32> to vector<6x668xf32>
    %43 = vector.broadcast %41 : vector<1x668xf32> to vector<6x668xf32>
    %44 = arith.mulf %42, %43 : vector<6x668xf32>
    %45 = arith.addf %39, %44 : vector<6x668xf32>
    %46 = vector.extract_strided_slice %2 {offsets = [0, 7], sizes = [6, 1], strides = [1, 1]} : vector<6x25xf32> to vector<6x1xf32>
    %47 = vector.extract_strided_slice %1 {offsets = [0, 30], sizes = [1, 668], strides = [1, 1]} : vector<1x784xf32> to vector<1x668xf32>
    %48 = vector.broadcast %46 : vector<6x1xf32> to vector<6x668xf32>
    %49 = vector.broadcast %47 : vector<1x668xf32> to vector<6x668xf32>
    %50 = arith.mulf %48, %49 : vector<6x668xf32>
    %51 = arith.addf %45, %50 : vector<6x668xf32>
    %52 = vector.extract_strided_slice %2 {offsets = [0, 8], sizes = [6, 1], strides = [1, 1]} : vector<6x25xf32> to vector<6x1xf32>
    %53 = vector.extract_strided_slice %1 {offsets = [0, 31], sizes = [1, 668], strides = [1, 1]} : vector<1x784xf32> to vector<1x668xf32>
    %54 = vector.broadcast %52 : vector<6x1xf32> to vector<6x668xf32>
    %55 = vector.broadcast %53 : vector<1x668xf32> to vector<6x668xf32>
    %56 = arith.mulf %54, %55 : vector<6x668xf32>
    %57 = arith.addf %51, %56 : vector<6x668xf32>
    %58 = vector.extract_strided_slice %2 {offsets = [0, 9], sizes = [6, 1], strides = [1, 1]} : vector<6x25xf32> to vector<6x1xf32>
    %59 = vector.extract_strided_slice %1 {offsets = [0, 32], sizes = [1, 668], strides = [1, 1]} : vector<1x784xf32> to vector<1x668xf32>
    %60 = vector.broadcast %58 : vector<6x1xf32> to vector<6x668xf32>
    %61 = vector.broadcast %59 : vector<1x668xf32> to vector<6x668xf32>
    %62 = arith.mulf %60, %61 : vector<6x668xf32>
    %63 = arith.addf %57, %62 : vector<6x668xf32>
    %64 = vector.extract_strided_slice %2 {offsets = [0, 10], sizes = [6, 1], strides = [1, 1]} : vector<6x25xf32> to vector<6x1xf32>
    %65 = vector.extract_strided_slice %1 {offsets = [0, 56], sizes = [1, 668], strides = [1, 1]} : vector<1x784xf32> to vector<1x668xf32>
    %66 = vector.broadcast %64 : vector<6x1xf32> to vector<6x668xf32>
    %67 = vector.broadcast %65 : vector<1x668xf32> to vector<6x668xf32>
    %68 = arith.mulf %66, %67 : vector<6x668xf32>
    %69 = arith.addf %63, %68 : vector<6x668xf32>
    %70 = vector.extract_strided_slice %2 {offsets = [0, 11], sizes = [6, 1], strides = [1, 1]} : vector<6x25xf32> to vector<6x1xf32>
    %71 = vector.extract_strided_slice %1 {offsets = [0, 57], sizes = [1, 668], strides = [1, 1]} : vector<1x784xf32> to vector<1x668xf32>
    %72 = vector.broadcast %70 : vector<6x1xf32> to vector<6x668xf32>
    %73 = vector.broadcast %71 : vector<1x668xf32> to vector<6x668xf32>
    %74 = arith.mulf %72, %73 : vector<6x668xf32>
    %75 = arith.addf %69, %74 : vector<6x668xf32>
    %76 = vector.extract_strided_slice %2 {offsets = [0, 12], sizes = [6, 1], strides = [1, 1]} : vector<6x25xf32> to vector<6x1xf32>
    %77 = vector.extract_strided_slice %1 {offsets = [0, 58], sizes = [1, 668], strides = [1, 1]} : vector<1x784xf32> to vector<1x668xf32>
    %78 = vector.broadcast %76 : vector<6x1xf32> to vector<6x668xf32>
    %79 = vector.broadcast %77 : vector<1x668xf32> to vector<6x668xf32>
    %80 = arith.mulf %78, %79 : vector<6x668xf32>
    %81 = arith.addf %75, %80 : vector<6x668xf32>
    %82 = vector.extract_strided_slice %2 {offsets = [0, 13], sizes = [6, 1], strides = [1, 1]} : vector<6x25xf32> to vector<6x1xf32>
    %83 = vector.extract_strided_slice %1 {offsets = [0, 59], sizes = [1, 668], strides = [1, 1]} : vector<1x784xf32> to vector<1x668xf32>
    %84 = vector.broadcast %82 : vector<6x1xf32> to vector<6x668xf32>
    %85 = vector.broadcast %83 : vector<1x668xf32> to vector<6x668xf32>
    %86 = arith.mulf %84, %85 : vector<6x668xf32>
    %87 = arith.addf %81, %86 : vector<6x668xf32>
    %88 = vector.extract_strided_slice %2 {offsets = [0, 14], sizes = [6, 1], strides = [1, 1]} : vector<6x25xf32> to vector<6x1xf32>
    %89 = vector.extract_strided_slice %1 {offsets = [0, 60], sizes = [1, 668], strides = [1, 1]} : vector<1x784xf32> to vector<1x668xf32>
    %90 = vector.broadcast %88 : vector<6x1xf32> to vector<6x668xf32>
    %91 = vector.broadcast %89 : vector<1x668xf32> to vector<6x668xf32>
    %92 = arith.mulf %90, %91 : vector<6x668xf32>
    %93 = arith.addf %87, %92 : vector<6x668xf32>
    %94 = vector.extract_strided_slice %2 {offsets = [0, 15], sizes = [6, 1], strides = [1, 1]} : vector<6x25xf32> to vector<6x1xf32>
    %95 = vector.extract_strided_slice %1 {offsets = [0, 84], sizes = [1, 668], strides = [1, 1]} : vector<1x784xf32> to vector<1x668xf32>
    %96 = vector.broadcast %94 : vector<6x1xf32> to vector<6x668xf32>
    %97 = vector.broadcast %95 : vector<1x668xf32> to vector<6x668xf32>
    %98 = arith.mulf %96, %97 : vector<6x668xf32>
    %99 = arith.addf %93, %98 : vector<6x668xf32>
    %100 = vector.extract_strided_slice %2 {offsets = [0, 16], sizes = [6, 1], strides = [1, 1]} : vector<6x25xf32> to vector<6x1xf32>
    %101 = vector.extract_strided_slice %1 {offsets = [0, 85], sizes = [1, 668], strides = [1, 1]} : vector<1x784xf32> to vector<1x668xf32>
    %102 = vector.broadcast %100 : vector<6x1xf32> to vector<6x668xf32>
    %103 = vector.broadcast %101 : vector<1x668xf32> to vector<6x668xf32>
    %104 = arith.mulf %102, %103 : vector<6x668xf32>
    %105 = arith.addf %99, %104 : vector<6x668xf32>
    %106 = vector.extract_strided_slice %2 {offsets = [0, 17], sizes = [6, 1], strides = [1, 1]} : vector<6x25xf32> to vector<6x1xf32>
    %107 = vector.extract_strided_slice %1 {offsets = [0, 86], sizes = [1, 668], strides = [1, 1]} : vector<1x784xf32> to vector<1x668xf32>
    %108 = vector.broadcast %106 : vector<6x1xf32> to vector<6x668xf32>
    %109 = vector.broadcast %107 : vector<1x668xf32> to vector<6x668xf32>
    %110 = arith.mulf %108, %109 : vector<6x668xf32>
    %111 = arith.addf %105, %110 : vector<6x668xf32>
    %112 = vector.extract_strided_slice %2 {offsets = [0, 18], sizes = [6, 1], strides = [1, 1]} : vector<6x25xf32> to vector<6x1xf32>
    %113 = vector.extract_strided_slice %1 {offsets = [0, 87], sizes = [1, 668], strides = [1, 1]} : vector<1x784xf32> to vector<1x668xf32>
    %114 = vector.broadcast %112 : vector<6x1xf32> to vector<6x668xf32>
    %115 = vector.broadcast %113 : vector<1x668xf32> to vector<6x668xf32>
    %116 = arith.mulf %114, %115 : vector<6x668xf32>
    %117 = arith.addf %111, %116 : vector<6x668xf32>
    %118 = vector.extract_strided_slice %2 {offsets = [0, 19], sizes = [6, 1], strides = [1, 1]} : vector<6x25xf32> to vector<6x1xf32>
    %119 = vector.extract_strided_slice %1 {offsets = [0, 88], sizes = [1, 668], strides = [1, 1]} : vector<1x784xf32> to vector<1x668xf32>
    %120 = vector.broadcast %118 : vector<6x1xf32> to vector<6x668xf32>
    %121 = vector.broadcast %119 : vector<1x668xf32> to vector<6x668xf32>
    %122 = arith.mulf %120, %121 : vector<6x668xf32>
    %123 = arith.addf %117, %122 : vector<6x668xf32>
    %124 = vector.extract_strided_slice %2 {offsets = [0, 20], sizes = [6, 1], strides = [1, 1]} : vector<6x25xf32> to vector<6x1xf32>
    %125 = vector.extract_strided_slice %1 {offsets = [0, 112], sizes = [1, 668], strides = [1, 1]} : vector<1x784xf32> to vector<1x668xf32>
    %126 = vector.broadcast %124 : vector<6x1xf32> to vector<6x668xf32>
    %127 = vector.broadcast %125 : vector<1x668xf32> to vector<6x668xf32>
    %128 = arith.mulf %126, %127 : vector<6x668xf32>
    %129 = arith.addf %123, %128 : vector<6x668xf32>
    %130 = vector.extract_strided_slice %2 {offsets = [0, 21], sizes = [6, 1], strides = [1, 1]} : vector<6x25xf32> to vector<6x1xf32>
    %131 = vector.extract_strided_slice %1 {offsets = [0, 113], sizes = [1, 668], strides = [1, 1]} : vector<1x784xf32> to vector<1x668xf32>
    %132 = vector.broadcast %130 : vector<6x1xf32> to vector<6x668xf32>
    %133 = vector.broadcast %131 : vector<1x668xf32> to vector<6x668xf32>
    %134 = arith.mulf %132, %133 : vector<6x668xf32>
    %135 = arith.addf %129, %134 : vector<6x668xf32>
    %136 = vector.extract_strided_slice %2 {offsets = [0, 22], sizes = [6, 1], strides = [1, 1]} : vector<6x25xf32> to vector<6x1xf32>
    %137 = vector.extract_strided_slice %1 {offsets = [0, 114], sizes = [1, 668], strides = [1, 1]} : vector<1x784xf32> to vector<1x668xf32>
    %138 = vector.broadcast %136 : vector<6x1xf32> to vector<6x668xf32>
    %139 = vector.broadcast %137 : vector<1x668xf32> to vector<6x668xf32>
    %140 = arith.mulf %138, %139 : vector<6x668xf32>
    %141 = arith.addf %135, %140 : vector<6x668xf32>
    %142 = vector.extract_strided_slice %2 {offsets = [0, 23], sizes = [6, 1], strides = [1, 1]} : vector<6x25xf32> to vector<6x1xf32>
    %143 = vector.extract_strided_slice %1 {offsets = [0, 115], sizes = [1, 668], strides = [1, 1]} : vector<1x784xf32> to vector<1x668xf32>
    %144 = vector.broadcast %142 : vector<6x1xf32> to vector<6x668xf32>
    %145 = vector.broadcast %143 : vector<1x668xf32> to vector<6x668xf32>
    %146 = arith.mulf %144, %145 : vector<6x668xf32>
    %147 = arith.addf %141, %146 : vector<6x668xf32>
    %148 = vector.extract_strided_slice %2 {offsets = [0, 24], sizes = [6, 1], strides = [1, 1]} : vector<6x25xf32> to vector<6x1xf32>
    %149 = vector.extract_strided_slice %1 {offsets = [0, 116], sizes = [1, 668], strides = [1, 1]} : vector<1x784xf32> to vector<1x668xf32>
    %150 = vector.broadcast %148 : vector<6x1xf32> to vector<6x668xf32>
    %151 = vector.broadcast %149 : vector<1x668xf32> to vector<6x668xf32>
    %152 = arith.mulf %150, %151 : vector<6x668xf32>
    %153 = arith.addf %147, %152 : vector<6x668xf32>
    %c0_4 = arith.constant 0 : index
    %c0_5 = arith.constant 0 : index
    %154 = vector.load %arg2[%c0_4, %c0_5] : memref<668x576xf32, #tpu.memory_space<vmem>>, vector<668x576xf32>
    %cst_6 = arith.constant dense<0.000000e+00> : vector<6x576xf32>
    %155 = tpu.matmul %153, %154, %cst_6 {dimension_numbers = #tpu.dot_dimension_numbers<[1], [0], [0], [1], [0, 0, 1, 1], [], []>} : vector<6x668xf32>, vector<668x576xf32>, vector<6x576xf32> -> vector<6x576xf32>
    %c0_7 = arith.constant 0 : index
    %c0_8 = arith.constant 0 : index
    %156 = vector.load %arg7[%c0_7, %c0_8] : memref<6x1xf32, #tpu.memory_space<vmem>>, vector<6x1xf32>
    %157 = vector.broadcast %156 : vector<6x1xf32> to vector<6x576xf32>
    %158 = arith.addf %155, %157 : vector<6x576xf32>
    %cst_9 = arith.constant 0.000000e+00 : f32
    %159 = vector.broadcast %cst_9 : f32 to vector<6x576xf32>
    %160 = arith.maximumf %158, %159 : vector<6x576xf32>
    %161 = vector.extract_strided_slice %160 {offsets = [0, 0], sizes = [6, 551], strides = [1, 1]} : vector<6x576xf32> to vector<6x551xf32>
    %162 = vector.extract_strided_slice %160 {offsets = [0, 1], sizes = [6, 551], strides = [1, 1]} : vector<6x576xf32> to vector<6x551xf32>
    %163 = arith.maximumf %161, %162 : vector<6x551xf32>
    %164 = vector.extract_strided_slice %160 {offsets = [0, 24], sizes = [6, 551], strides = [1, 1]} : vector<6x576xf32> to vector<6x551xf32>
    %165 = arith.maximumf %163, %164 : vector<6x551xf32>
    %166 = vector.extract_strided_slice %160 {offsets = [0, 25], sizes = [6, 551], strides = [1, 1]} : vector<6x576xf32> to vector<6x551xf32>
    %167 = arith.maximumf %165, %166 : vector<6x551xf32>
    %c0_10 = arith.constant 0 : index
    %c0_11 = arith.constant 0 : index
    %168 = vector.load %arg3[%c0_10, %c0_11] : memref<551x144xf32, #tpu.memory_space<vmem>>, vector<551x144xf32>
    %cst_12 = arith.constant dense<0.000000e+00> : vector<6x144xf32>
    %169 = tpu.matmul %167, %168, %cst_12 {dimension_numbers = #tpu.dot_dimension_numbers<[1], [0], [0], [1], [0, 0, 1, 1], [], []>} : vector<6x551xf32>, vector<551x144xf32>, vector<6x144xf32> -> vector<6x144xf32>
    %c0_13 = arith.constant 0 : index
    %c0_14 = arith.constant 0 : index
    %170 = vector.load %arg8[%c0_13, %c0_14] : memref<400x6xf32, #tpu.memory_space<vmem>>, vector<400x6xf32>
    %cst_15 = arith.constant 0.000000e+00 : f32
    %171 = vector.broadcast %cst_15 : f32 to vector<16x92xf32>
    %172 = vector.extract_strided_slice %170 {offsets = [0, 0], sizes = [16, 6], strides = [1, 1]} : vector<400x6xf32> to vector<16x6xf32>
    %173 = vector.extract_strided_slice %169 {offsets = [0, 0], sizes = [6, 92], strides = [1, 1]} : vector<6x144xf32> to vector<6x92xf32>
    %cst_16 = arith.constant dense<0.000000e+00> : vector<16x92xf32>
    %174 = tpu.matmul %172, %173, %cst_16 {dimension_numbers = #tpu.dot_dimension_numbers<[1], [0], [0], [1], [0, 0, 1, 1], [], []>} : vector<16x6xf32>, vector<6x92xf32>, vector<16x92xf32> -> vector<16x92xf32>
    %175 = arith.addf %171, %174 : vector<16x92xf32>
    %176 = vector.extract_strided_slice %170 {offsets = [16, 0], sizes = [16, 6], strides = [1, 1]} : vector<400x6xf32> to vector<16x6xf32>
    %177 = vector.extract_strided_slice %169 {offsets = [0, 1], sizes = [6, 92], strides = [1, 1]} : vector<6x144xf32> to vector<6x92xf32>
    %cst_17 = arith.constant dense<0.000000e+00> : vector<16x92xf32>
    %178 = tpu.matmul %176, %177, %cst_17 {dimension_numbers = #tpu.dot_dimension_numbers<[1], [0], [0], [1], [0, 0, 1, 1], [], []>} : vector<16x6xf32>, vector<6x92xf32>, vector<16x92xf32> -> vector<16x92xf32>
    %179 = arith.addf %175, %178 : vector<16x92xf32>
    %180 = vector.extract_strided_slice %170 {offsets = [32, 0], sizes = [16, 6], strides = [1, 1]} : vector<400x6xf32> to vector<16x6xf32>
    %181 = vector.extract_strided_slice %169 {offsets = [0, 2], sizes = [6, 92], strides = [1, 1]} : vector<6x144xf32> to vector<6x92xf32>
    %cst_18 = arith.constant dense<0.000000e+00> : vector<16x92xf32>
    %182 = tpu.matmul %180, %181, %cst_18 {dimension_numbers = #tpu.dot_dimension_numbers<[1], [0], [0], [1], [0, 0, 1, 1], [], []>} : vector<16x6xf32>, vector<6x92xf32>, vector<16x92xf32> -> vector<16x92xf32>
    %183 = arith.addf %179, %182 : vector<16x92xf32>
    %184 = vector.extract_strided_slice %170 {offsets = [48, 0], sizes = [16, 6], strides = [1, 1]} : vector<400x6xf32> to vector<16x6xf32>
    %185 = vector.extract_strided_slice %169 {offsets = [0, 3], sizes = [6, 92], strides = [1, 1]} : vector<6x144xf32> to vector<6x92xf32>
    %cst_19 = arith.constant dense<0.000000e+00> : vector<16x92xf32>
    %186 = tpu.matmul %184, %185, %cst_19 {dimension_numbers = #tpu.dot_dimension_numbers<[1], [0], [0], [1], [0, 0, 1, 1], [], []>} : vector<16x6xf32>, vector<6x92xf32>, vector<16x92xf32> -> vector<16x92xf32>
    %187 = arith.addf %183, %186 : vector<16x92xf32>
    %188 = vector.extract_strided_slice %170 {offsets = [64, 0], sizes = [16, 6], strides = [1, 1]} : vector<400x6xf32> to vector<16x6xf32>
    %189 = vector.extract_strided_slice %169 {offsets = [0, 4], sizes = [6, 92], strides = [1, 1]} : vector<6x144xf32> to vector<6x92xf32>
    %cst_20 = arith.constant dense<0.000000e+00> : vector<16x92xf32>
    %190 = tpu.matmul %188, %189, %cst_20 {dimension_numbers = #tpu.dot_dimension_numbers<[1], [0], [0], [1], [0, 0, 1, 1], [], []>} : vector<16x6xf32>, vector<6x92xf32>, vector<16x92xf32> -> vector<16x92xf32>
    %191 = arith.addf %187, %190 : vector<16x92xf32>
    %192 = vector.extract_strided_slice %170 {offsets = [80, 0], sizes = [16, 6], strides = [1, 1]} : vector<400x6xf32> to vector<16x6xf32>
    %193 = vector.extract_strided_slice %169 {offsets = [0, 12], sizes = [6, 92], strides = [1, 1]} : vector<6x144xf32> to vector<6x92xf32>
    %cst_21 = arith.constant dense<0.000000e+00> : vector<16x92xf32>
    %194 = tpu.matmul %192, %193, %cst_21 {dimension_numbers = #tpu.dot_dimension_numbers<[1], [0], [0], [1], [0, 0, 1, 1], [], []>} : vector<16x6xf32>, vector<6x92xf32>, vector<16x92xf32> -> vector<16x92xf32>
    %195 = arith.addf %191, %194 : vector<16x92xf32>
    %196 = vector.extract_strided_slice %170 {offsets = [96, 0], sizes = [16, 6], strides = [1, 1]} : vector<400x6xf32> to vector<16x6xf32>
    %197 = vector.extract_strided_slice %169 {offsets = [0, 13], sizes = [6, 92], strides = [1, 1]} : vector<6x144xf32> to vector<6x92xf32>
    %cst_22 = arith.constant dense<0.000000e+00> : vector<16x92xf32>
    %198 = tpu.matmul %196, %197, %cst_22 {dimension_numbers = #tpu.dot_dimension_numbers<[1], [0], [0], [1], [0, 0, 1, 1], [], []>} : vector<16x6xf32>, vector<6x92xf32>, vector<16x92xf32> -> vector<16x92xf32>
    %199 = arith.addf %195, %198 : vector<16x92xf32>
    %200 = vector.extract_strided_slice %170 {offsets = [112, 0], sizes = [16, 6], strides = [1, 1]} : vector<400x6xf32> to vector<16x6xf32>
    %201 = vector.extract_strided_slice %169 {offsets = [0, 14], sizes = [6, 92], strides = [1, 1]} : vector<6x144xf32> to vector<6x92xf32>
    %cst_23 = arith.constant dense<0.000000e+00> : vector<16x92xf32>
    %202 = tpu.matmul %200, %201, %cst_23 {dimension_numbers = #tpu.dot_dimension_numbers<[1], [0], [0], [1], [0, 0, 1, 1], [], []>} : vector<16x6xf32>, vector<6x92xf32>, vector<16x92xf32> -> vector<16x92xf32>
    %203 = arith.addf %199, %202 : vector<16x92xf32>
    %204 = vector.extract_strided_slice %170 {offsets = [128, 0], sizes = [16, 6], strides = [1, 1]} : vector<400x6xf32> to vector<16x6xf32>
    %205 = vector.extract_strided_slice %169 {offsets = [0, 15], sizes = [6, 92], strides = [1, 1]} : vector<6x144xf32> to vector<6x92xf32>
    %cst_24 = arith.constant dense<0.000000e+00> : vector<16x92xf32>
    %206 = tpu.matmul %204, %205, %cst_24 {dimension_numbers = #tpu.dot_dimension_numbers<[1], [0], [0], [1], [0, 0, 1, 1], [], []>} : vector<16x6xf32>, vector<6x92xf32>, vector<16x92xf32> -> vector<16x92xf32>
    %207 = arith.addf %203, %206 : vector<16x92xf32>
    %208 = vector.extract_strided_slice %170 {offsets = [144, 0], sizes = [16, 6], strides = [1, 1]} : vector<400x6xf32> to vector<16x6xf32>
    %209 = vector.extract_strided_slice %169 {offsets = [0, 16], sizes = [6, 92], strides = [1, 1]} : vector<6x144xf32> to vector<6x92xf32>
    %cst_25 = arith.constant dense<0.000000e+00> : vector<16x92xf32>
    %210 = tpu.matmul %208, %209, %cst_25 {dimension_numbers = #tpu.dot_dimension_numbers<[1], [0], [0], [1], [0, 0, 1, 1], [], []>} : vector<16x6xf32>, vector<6x92xf32>, vector<16x92xf32> -> vector<16x92xf32>
    %211 = arith.addf %207, %210 : vector<16x92xf32>
    %212 = vector.extract_strided_slice %170 {offsets = [160, 0], sizes = [16, 6], strides = [1, 1]} : vector<400x6xf32> to vector<16x6xf32>
    %213 = vector.extract_strided_slice %169 {offsets = [0, 24], sizes = [6, 92], strides = [1, 1]} : vector<6x144xf32> to vector<6x92xf32>
    %cst_26 = arith.constant dense<0.000000e+00> : vector<16x92xf32>
    %214 = tpu.matmul %212, %213, %cst_26 {dimension_numbers = #tpu.dot_dimension_numbers<[1], [0], [0], [1], [0, 0, 1, 1], [], []>} : vector<16x6xf32>, vector<6x92xf32>, vector<16x92xf32> -> vector<16x92xf32>
    %215 = arith.addf %211, %214 : vector<16x92xf32>
    %216 = vector.extract_strided_slice %170 {offsets = [176, 0], sizes = [16, 6], strides = [1, 1]} : vector<400x6xf32> to vector<16x6xf32>
    %217 = vector.extract_strided_slice %169 {offsets = [0, 25], sizes = [6, 92], strides = [1, 1]} : vector<6x144xf32> to vector<6x92xf32>
    %cst_27 = arith.constant dense<0.000000e+00> : vector<16x92xf32>
    %218 = tpu.matmul %216, %217, %cst_27 {dimension_numbers = #tpu.dot_dimension_numbers<[1], [0], [0], [1], [0, 0, 1, 1], [], []>} : vector<16x6xf32>, vector<6x92xf32>, vector<16x92xf32> -> vector<16x92xf32>
    %219 = arith.addf %215, %218 : vector<16x92xf32>
    %220 = vector.extract_strided_slice %170 {offsets = [192, 0], sizes = [16, 6], strides = [1, 1]} : vector<400x6xf32> to vector<16x6xf32>
    %221 = vector.extract_strided_slice %169 {offsets = [0, 26], sizes = [6, 92], strides = [1, 1]} : vector<6x144xf32> to vector<6x92xf32>
    %cst_28 = arith.constant dense<0.000000e+00> : vector<16x92xf32>
    %222 = tpu.matmul %220, %221, %cst_28 {dimension_numbers = #tpu.dot_dimension_numbers<[1], [0], [0], [1], [0, 0, 1, 1], [], []>} : vector<16x6xf32>, vector<6x92xf32>, vector<16x92xf32> -> vector<16x92xf32>
    %223 = arith.addf %219, %222 : vector<16x92xf32>
    %224 = vector.extract_strided_slice %170 {offsets = [208, 0], sizes = [16, 6], strides = [1, 1]} : vector<400x6xf32> to vector<16x6xf32>
    %225 = vector.extract_strided_slice %169 {offsets = [0, 27], sizes = [6, 92], strides = [1, 1]} : vector<6x144xf32> to vector<6x92xf32>
    %cst_29 = arith.constant dense<0.000000e+00> : vector<16x92xf32>
    %226 = tpu.matmul %224, %225, %cst_29 {dimension_numbers = #tpu.dot_dimension_numbers<[1], [0], [0], [1], [0, 0, 1, 1], [], []>} : vector<16x6xf32>, vector<6x92xf32>, vector<16x92xf32> -> vector<16x92xf32>
    %227 = arith.addf %223, %226 : vector<16x92xf32>
    %228 = vector.extract_strided_slice %170 {offsets = [224, 0], sizes = [16, 6], strides = [1, 1]} : vector<400x6xf32> to vector<16x6xf32>
    %229 = vector.extract_strided_slice %169 {offsets = [0, 28], sizes = [6, 92], strides = [1, 1]} : vector<6x144xf32> to vector<6x92xf32>
    %cst_30 = arith.constant dense<0.000000e+00> : vector<16x92xf32>
    %230 = tpu.matmul %228, %229, %cst_30 {dimension_numbers = #tpu.dot_dimension_numbers<[1], [0], [0], [1], [0, 0, 1, 1], [], []>} : vector<16x6xf32>, vector<6x92xf32>, vector<16x92xf32> -> vector<16x92xf32>
    %231 = arith.addf %227, %230 : vector<16x92xf32>
    %232 = vector.extract_strided_slice %170 {offsets = [240, 0], sizes = [16, 6], strides = [1, 1]} : vector<400x6xf32> to vector<16x6xf32>
    %233 = vector.extract_strided_slice %169 {offsets = [0, 36], sizes = [6, 92], strides = [1, 1]} : vector<6x144xf32> to vector<6x92xf32>
    %cst_31 = arith.constant dense<0.000000e+00> : vector<16x92xf32>
    %234 = tpu.matmul %232, %233, %cst_31 {dimension_numbers = #tpu.dot_dimension_numbers<[1], [0], [0], [1], [0, 0, 1, 1], [], []>} : vector<16x6xf32>, vector<6x92xf32>, vector<16x92xf32> -> vector<16x92xf32>
    %235 = arith.addf %231, %234 : vector<16x92xf32>
    %236 = vector.extract_strided_slice %170 {offsets = [256, 0], sizes = [16, 6], strides = [1, 1]} : vector<400x6xf32> to vector<16x6xf32>
    %237 = vector.extract_strided_slice %169 {offsets = [0, 37], sizes = [6, 92], strides = [1, 1]} : vector<6x144xf32> to vector<6x92xf32>
    %cst_32 = arith.constant dense<0.000000e+00> : vector<16x92xf32>
    %238 = tpu.matmul %236, %237, %cst_32 {dimension_numbers = #tpu.dot_dimension_numbers<[1], [0], [0], [1], [0, 0, 1, 1], [], []>} : vector<16x6xf32>, vector<6x92xf32>, vector<16x92xf32> -> vector<16x92xf32>
    %239 = arith.addf %235, %238 : vector<16x92xf32>
    %240 = vector.extract_strided_slice %170 {offsets = [272, 0], sizes = [16, 6], strides = [1, 1]} : vector<400x6xf32> to vector<16x6xf32>
    %241 = vector.extract_strided_slice %169 {offsets = [0, 38], sizes = [6, 92], strides = [1, 1]} : vector<6x144xf32> to vector<6x92xf32>
    %cst_33 = arith.constant dense<0.000000e+00> : vector<16x92xf32>
    %242 = tpu.matmul %240, %241, %cst_33 {dimension_numbers = #tpu.dot_dimension_numbers<[1], [0], [0], [1], [0, 0, 1, 1], [], []>} : vector<16x6xf32>, vector<6x92xf32>, vector<16x92xf32> -> vector<16x92xf32>
    %243 = arith.addf %239, %242 : vector<16x92xf32>
    %244 = vector.extract_strided_slice %170 {offsets = [288, 0], sizes = [16, 6], strides = [1, 1]} : vector<400x6xf32> to vector<16x6xf32>
    %245 = vector.extract_strided_slice %169 {offsets = [0, 39], sizes = [6, 92], strides = [1, 1]} : vector<6x144xf32> to vector<6x92xf32>
    %cst_34 = arith.constant dense<0.000000e+00> : vector<16x92xf32>
    %246 = tpu.matmul %244, %245, %cst_34 {dimension_numbers = #tpu.dot_dimension_numbers<[1], [0], [0], [1], [0, 0, 1, 1], [], []>} : vector<16x6xf32>, vector<6x92xf32>, vector<16x92xf32> -> vector<16x92xf32>
    %247 = arith.addf %243, %246 : vector<16x92xf32>
    %248 = vector.extract_strided_slice %170 {offsets = [304, 0], sizes = [16, 6], strides = [1, 1]} : vector<400x6xf32> to vector<16x6xf32>
    %249 = vector.extract_strided_slice %169 {offsets = [0, 40], sizes = [6, 92], strides = [1, 1]} : vector<6x144xf32> to vector<6x92xf32>
    %cst_35 = arith.constant dense<0.000000e+00> : vector<16x92xf32>
    %250 = tpu.matmul %248, %249, %cst_35 {dimension_numbers = #tpu.dot_dimension_numbers<[1], [0], [0], [1], [0, 0, 1, 1], [], []>} : vector<16x6xf32>, vector<6x92xf32>, vector<16x92xf32> -> vector<16x92xf32>
    %251 = arith.addf %247, %250 : vector<16x92xf32>
    %252 = vector.extract_strided_slice %170 {offsets = [320, 0], sizes = [16, 6], strides = [1, 1]} : vector<400x6xf32> to vector<16x6xf32>
    %253 = vector.extract_strided_slice %169 {offsets = [0, 48], sizes = [6, 92], strides = [1, 1]} : vector<6x144xf32> to vector<6x92xf32>
    %cst_36 = arith.constant dense<0.000000e+00> : vector<16x92xf32>
    %254 = tpu.matmul %252, %253, %cst_36 {dimension_numbers = #tpu.dot_dimension_numbers<[1], [0], [0], [1], [0, 0, 1, 1], [], []>} : vector<16x6xf32>, vector<6x92xf32>, vector<16x92xf32> -> vector<16x92xf32>
    %255 = arith.addf %251, %254 : vector<16x92xf32>
    %256 = vector.extract_strided_slice %170 {offsets = [336, 0], sizes = [16, 6], strides = [1, 1]} : vector<400x6xf32> to vector<16x6xf32>
    %257 = vector.extract_strided_slice %169 {offsets = [0, 49], sizes = [6, 92], strides = [1, 1]} : vector<6x144xf32> to vector<6x92xf32>
    %cst_37 = arith.constant dense<0.000000e+00> : vector<16x92xf32>
    %258 = tpu.matmul %256, %257, %cst_37 {dimension_numbers = #tpu.dot_dimension_numbers<[1], [0], [0], [1], [0, 0, 1, 1], [], []>} : vector<16x6xf32>, vector<6x92xf32>, vector<16x92xf32> -> vector<16x92xf32>
    %259 = arith.addf %255, %258 : vector<16x92xf32>
    %260 = vector.extract_strided_slice %170 {offsets = [352, 0], sizes = [16, 6], strides = [1, 1]} : vector<400x6xf32> to vector<16x6xf32>
    %261 = vector.extract_strided_slice %169 {offsets = [0, 50], sizes = [6, 92], strides = [1, 1]} : vector<6x144xf32> to vector<6x92xf32>
    %cst_38 = arith.constant dense<0.000000e+00> : vector<16x92xf32>
    %262 = tpu.matmul %260, %261, %cst_38 {dimension_numbers = #tpu.dot_dimension_numbers<[1], [0], [0], [1], [0, 0, 1, 1], [], []>} : vector<16x6xf32>, vector<6x92xf32>, vector<16x92xf32> -> vector<16x92xf32>
    %263 = arith.addf %259, %262 : vector<16x92xf32>
    %264 = vector.extract_strided_slice %170 {offsets = [368, 0], sizes = [16, 6], strides = [1, 1]} : vector<400x6xf32> to vector<16x6xf32>
    %265 = vector.extract_strided_slice %169 {offsets = [0, 51], sizes = [6, 92], strides = [1, 1]} : vector<6x144xf32> to vector<6x92xf32>
    %cst_39 = arith.constant dense<0.000000e+00> : vector<16x92xf32>
    %266 = tpu.matmul %264, %265, %cst_39 {dimension_numbers = #tpu.dot_dimension_numbers<[1], [0], [0], [1], [0, 0, 1, 1], [], []>} : vector<16x6xf32>, vector<6x92xf32>, vector<16x92xf32> -> vector<16x92xf32>
    %267 = arith.addf %263, %266 : vector<16x92xf32>
    %268 = vector.extract_strided_slice %170 {offsets = [384, 0], sizes = [16, 6], strides = [1, 1]} : vector<400x6xf32> to vector<16x6xf32>
    %269 = vector.extract_strided_slice %169 {offsets = [0, 52], sizes = [6, 92], strides = [1, 1]} : vector<6x144xf32> to vector<6x92xf32>
    %cst_40 = arith.constant dense<0.000000e+00> : vector<16x92xf32>
    %270 = tpu.matmul %268, %269, %cst_40 {dimension_numbers = #tpu.dot_dimension_numbers<[1], [0], [0], [1], [0, 0, 1, 1], [], []>} : vector<16x6xf32>, vector<6x92xf32>, vector<16x92xf32> -> vector<16x92xf32>
    %271 = arith.addf %267, %270 : vector<16x92xf32>
    %c0_41 = arith.constant 0 : index
    %c0_42 = arith.constant 0 : index
    %272 = vector.load %arg4[%c0_41, %c0_42] : memref<92x64xf32, #tpu.memory_space<vmem>>, vector<92x64xf32>
    %cst_43 = arith.constant dense<0.000000e+00> : vector<16x64xf32>
    %273 = tpu.matmul %271, %272, %cst_43 {dimension_numbers = #tpu.dot_dimension_numbers<[1], [0], [0], [1], [0, 0, 1, 1], [], []>} : vector<16x92xf32>, vector<92x64xf32>, vector<16x64xf32> -> vector<16x64xf32>
    %c0_44 = arith.constant 0 : index
    %c0_45 = arith.constant 0 : index
    %274 = vector.load %arg9[%c0_44, %c0_45] : memref<16x1xf32, #tpu.memory_space<vmem>>, vector<16x1xf32>
    %275 = vector.broadcast %274 : vector<16x1xf32> to vector<16x64xf32>
    %276 = arith.addf %273, %275 : vector<16x64xf32>
    %cst_46 = arith.constant 0.000000e+00 : f32
    %277 = vector.broadcast %cst_46 : f32 to vector<16x64xf32>
    %278 = arith.maximumf %276, %277 : vector<16x64xf32>
    %279 = vector.extract_strided_slice %278 {offsets = [0, 0], sizes = [16, 55], strides = [1, 1]} : vector<16x64xf32> to vector<16x55xf32>
    %280 = vector.extract_strided_slice %278 {offsets = [0, 1], sizes = [16, 55], strides = [1, 1]} : vector<16x64xf32> to vector<16x55xf32>
    %281 = arith.maximumf %279, %280 : vector<16x55xf32>
    %282 = vector.extract_strided_slice %278 {offsets = [0, 8], sizes = [16, 55], strides = [1, 1]} : vector<16x64xf32> to vector<16x55xf32>
    %283 = arith.maximumf %281, %282 : vector<16x55xf32>
    %284 = vector.extract_strided_slice %278 {offsets = [0, 9], sizes = [16, 55], strides = [1, 1]} : vector<16x64xf32> to vector<16x55xf32>
    %285 = arith.maximumf %283, %284 : vector<16x55xf32>
    %c0_47 = arith.constant 0 : index
    %c0_48 = arith.constant 0 : index
    %286 = vector.load %arg5[%c0_47, %c0_48] : memref<55x16xf32, #tpu.memory_space<vmem>>, vector<55x16xf32>
    %cst_49 = arith.constant dense<0.000000e+00> : vector<16x16xf32>
    %287 = tpu.matmul %285, %286, %cst_49 {dimension_numbers = #tpu.dot_dimension_numbers<[1], [0], [0], [1], [0, 0, 1, 1], [], []>} : vector<16x55xf32>, vector<55x16xf32>, vector<16x16xf32> -> vector<16x16xf32>
    %c0_50 = arith.constant 0 : index
    %c0_51 = arith.constant 0 : index
    %288 = vector.load %arg11[%c0_50, %c0_51] : memref<1x120xf32, #tpu.memory_space<vmem>>, vector<1x120xf32>
    %289 = vector.extract_strided_slice %287 {offsets = [0, 0], sizes = [1, 16], strides = [1, 1]} : vector<16x16xf32> to vector<1x16xf32>
    %c0_52 = arith.constant 0 : index
    %c0_53 = arith.constant 0 : index
    %290 = vector.load %arg10[%c0_52, %c0_53] : memref<256x120xf32, #tpu.memory_space<vmem>>, vector<16x120xf32>
    %cst_54 = arith.constant dense<0.000000e+00> : vector<1x120xf32>
    %291 = tpu.matmul %289, %290, %cst_54 {dimension_numbers = #tpu.dot_dimension_numbers<[1], [0], [0], [1], [0, 0, 1, 1], [], []>} : vector<1x16xf32>, vector<16x120xf32>, vector<1x120xf32> -> vector<1x120xf32>
    %292 = arith.addf %288, %291 : vector<1x120xf32>
    %293 = vector.extract_strided_slice %287 {offsets = [1, 0], sizes = [1, 16], strides = [1, 1]} : vector<16x16xf32> to vector<1x16xf32>
    %c16 = arith.constant 16 : index
    %c0_55 = arith.constant 0 : index
    %294 = vector.load %arg10[%c16, %c0_55] : memref<256x120xf32, #tpu.memory_space<vmem>>, vector<16x120xf32>
    %cst_56 = arith.constant dense<0.000000e+00> : vector<1x120xf32>
    %295 = tpu.matmul %293, %294, %cst_56 {dimension_numbers = #tpu.dot_dimension_numbers<[1], [0], [0], [1], [0, 0, 1, 1], [], []>} : vector<1x16xf32>, vector<16x120xf32>, vector<1x120xf32> -> vector<1x120xf32>
    %296 = arith.addf %292, %295 : vector<1x120xf32>
    %297 = vector.extract_strided_slice %287 {offsets = [2, 0], sizes = [1, 16], strides = [1, 1]} : vector<16x16xf32> to vector<1x16xf32>
    %c32 = arith.constant 32 : index
    %c0_57 = arith.constant 0 : index
    %298 = vector.load %arg10[%c32, %c0_57] : memref<256x120xf32, #tpu.memory_space<vmem>>, vector<16x120xf32>
    %cst_58 = arith.constant dense<0.000000e+00> : vector<1x120xf32>
    %299 = tpu.matmul %297, %298, %cst_58 {dimension_numbers = #tpu.dot_dimension_numbers<[1], [0], [0], [1], [0, 0, 1, 1], [], []>} : vector<1x16xf32>, vector<16x120xf32>, vector<1x120xf32> -> vector<1x120xf32>
    %300 = arith.addf %296, %299 : vector<1x120xf32>
    %301 = vector.extract_strided_slice %287 {offsets = [3, 0], sizes = [1, 16], strides = [1, 1]} : vector<16x16xf32> to vector<1x16xf32>
    %c48 = arith.constant 48 : index
    %c0_59 = arith.constant 0 : index
    %302 = vector.load %arg10[%c48, %c0_59] : memref<256x120xf32, #tpu.memory_space<vmem>>, vector<16x120xf32>
    %cst_60 = arith.constant dense<0.000000e+00> : vector<1x120xf32>
    %303 = tpu.matmul %301, %302, %cst_60 {dimension_numbers = #tpu.dot_dimension_numbers<[1], [0], [0], [1], [0, 0, 1, 1], [], []>} : vector<1x16xf32>, vector<16x120xf32>, vector<1x120xf32> -> vector<1x120xf32>
    %304 = arith.addf %300, %303 : vector<1x120xf32>
    %305 = vector.extract_strided_slice %287 {offsets = [4, 0], sizes = [1, 16], strides = [1, 1]} : vector<16x16xf32> to vector<1x16xf32>
    %c64 = arith.constant 64 : index
    %c0_61 = arith.constant 0 : index
    %306 = vector.load %arg10[%c64, %c0_61] : memref<256x120xf32, #tpu.memory_space<vmem>>, vector<16x120xf32>
    %cst_62 = arith.constant dense<0.000000e+00> : vector<1x120xf32>
    %307 = tpu.matmul %305, %306, %cst_62 {dimension_numbers = #tpu.dot_dimension_numbers<[1], [0], [0], [1], [0, 0, 1, 1], [], []>} : vector<1x16xf32>, vector<16x120xf32>, vector<1x120xf32> -> vector<1x120xf32>
    %308 = arith.addf %304, %307 : vector<1x120xf32>
    %309 = vector.extract_strided_slice %287 {offsets = [5, 0], sizes = [1, 16], strides = [1, 1]} : vector<16x16xf32> to vector<1x16xf32>
    %c80 = arith.constant 80 : index
    %c0_63 = arith.constant 0 : index
    %310 = vector.load %arg10[%c80, %c0_63] : memref<256x120xf32, #tpu.memory_space<vmem>>, vector<16x120xf32>
    %cst_64 = arith.constant dense<0.000000e+00> : vector<1x120xf32>
    %311 = tpu.matmul %309, %310, %cst_64 {dimension_numbers = #tpu.dot_dimension_numbers<[1], [0], [0], [1], [0, 0, 1, 1], [], []>} : vector<1x16xf32>, vector<16x120xf32>, vector<1x120xf32> -> vector<1x120xf32>
    %312 = arith.addf %308, %311 : vector<1x120xf32>
    %313 = vector.extract_strided_slice %287 {offsets = [6, 0], sizes = [1, 16], strides = [1, 1]} : vector<16x16xf32> to vector<1x16xf32>
    %c96 = arith.constant 96 : index
    %c0_65 = arith.constant 0 : index
    %314 = vector.load %arg10[%c96, %c0_65] : memref<256x120xf32, #tpu.memory_space<vmem>>, vector<16x120xf32>
    %cst_66 = arith.constant dense<0.000000e+00> : vector<1x120xf32>
    %315 = tpu.matmul %313, %314, %cst_66 {dimension_numbers = #tpu.dot_dimension_numbers<[1], [0], [0], [1], [0, 0, 1, 1], [], []>} : vector<1x16xf32>, vector<16x120xf32>, vector<1x120xf32> -> vector<1x120xf32>
    %316 = arith.addf %312, %315 : vector<1x120xf32>
    %317 = vector.extract_strided_slice %287 {offsets = [7, 0], sizes = [1, 16], strides = [1, 1]} : vector<16x16xf32> to vector<1x16xf32>
    %c112 = arith.constant 112 : index
    %c0_67 = arith.constant 0 : index
    %318 = vector.load %arg10[%c112, %c0_67] : memref<256x120xf32, #tpu.memory_space<vmem>>, vector<16x120xf32>
    %cst_68 = arith.constant dense<0.000000e+00> : vector<1x120xf32>
    %319 = tpu.matmul %317, %318, %cst_68 {dimension_numbers = #tpu.dot_dimension_numbers<[1], [0], [0], [1], [0, 0, 1, 1], [], []>} : vector<1x16xf32>, vector<16x120xf32>, vector<1x120xf32> -> vector<1x120xf32>
    %320 = arith.addf %316, %319 : vector<1x120xf32>
    %321 = vector.extract_strided_slice %287 {offsets = [8, 0], sizes = [1, 16], strides = [1, 1]} : vector<16x16xf32> to vector<1x16xf32>
    %c128 = arith.constant 128 : index
    %c0_69 = arith.constant 0 : index
    %322 = vector.load %arg10[%c128, %c0_69] : memref<256x120xf32, #tpu.memory_space<vmem>>, vector<16x120xf32>
    %cst_70 = arith.constant dense<0.000000e+00> : vector<1x120xf32>
    %323 = tpu.matmul %321, %322, %cst_70 {dimension_numbers = #tpu.dot_dimension_numbers<[1], [0], [0], [1], [0, 0, 1, 1], [], []>} : vector<1x16xf32>, vector<16x120xf32>, vector<1x120xf32> -> vector<1x120xf32>
    %324 = arith.addf %320, %323 : vector<1x120xf32>
    %325 = vector.extract_strided_slice %287 {offsets = [9, 0], sizes = [1, 16], strides = [1, 1]} : vector<16x16xf32> to vector<1x16xf32>
    %c144 = arith.constant 144 : index
    %c0_71 = arith.constant 0 : index
    %326 = vector.load %arg10[%c144, %c0_71] : memref<256x120xf32, #tpu.memory_space<vmem>>, vector<16x120xf32>
    %cst_72 = arith.constant dense<0.000000e+00> : vector<1x120xf32>
    %327 = tpu.matmul %325, %326, %cst_72 {dimension_numbers = #tpu.dot_dimension_numbers<[1], [0], [0], [1], [0, 0, 1, 1], [], []>} : vector<1x16xf32>, vector<16x120xf32>, vector<1x120xf32> -> vector<1x120xf32>
    %328 = arith.addf %324, %327 : vector<1x120xf32>
    %329 = vector.extract_strided_slice %287 {offsets = [10, 0], sizes = [1, 16], strides = [1, 1]} : vector<16x16xf32> to vector<1x16xf32>
    %c160 = arith.constant 160 : index
    %c0_73 = arith.constant 0 : index
    %330 = vector.load %arg10[%c160, %c0_73] : memref<256x120xf32, #tpu.memory_space<vmem>>, vector<16x120xf32>
    %cst_74 = arith.constant dense<0.000000e+00> : vector<1x120xf32>
    %331 = tpu.matmul %329, %330, %cst_74 {dimension_numbers = #tpu.dot_dimension_numbers<[1], [0], [0], [1], [0, 0, 1, 1], [], []>} : vector<1x16xf32>, vector<16x120xf32>, vector<1x120xf32> -> vector<1x120xf32>
    %332 = arith.addf %328, %331 : vector<1x120xf32>
    %333 = vector.extract_strided_slice %287 {offsets = [11, 0], sizes = [1, 16], strides = [1, 1]} : vector<16x16xf32> to vector<1x16xf32>
    %c176 = arith.constant 176 : index
    %c0_75 = arith.constant 0 : index
    %334 = vector.load %arg10[%c176, %c0_75] : memref<256x120xf32, #tpu.memory_space<vmem>>, vector<16x120xf32>
    %cst_76 = arith.constant dense<0.000000e+00> : vector<1x120xf32>
    %335 = tpu.matmul %333, %334, %cst_76 {dimension_numbers = #tpu.dot_dimension_numbers<[1], [0], [0], [1], [0, 0, 1, 1], [], []>} : vector<1x16xf32>, vector<16x120xf32>, vector<1x120xf32> -> vector<1x120xf32>
    %336 = arith.addf %332, %335 : vector<1x120xf32>
    %337 = vector.extract_strided_slice %287 {offsets = [12, 0], sizes = [1, 16], strides = [1, 1]} : vector<16x16xf32> to vector<1x16xf32>
    %c192 = arith.constant 192 : index
    %c0_77 = arith.constant 0 : index
    %338 = vector.load %arg10[%c192, %c0_77] : memref<256x120xf32, #tpu.memory_space<vmem>>, vector<16x120xf32>
    %cst_78 = arith.constant dense<0.000000e+00> : vector<1x120xf32>
    %339 = tpu.matmul %337, %338, %cst_78 {dimension_numbers = #tpu.dot_dimension_numbers<[1], [0], [0], [1], [0, 0, 1, 1], [], []>} : vector<1x16xf32>, vector<16x120xf32>, vector<1x120xf32> -> vector<1x120xf32>
    %340 = arith.addf %336, %339 : vector<1x120xf32>
    %341 = vector.extract_strided_slice %287 {offsets = [13, 0], sizes = [1, 16], strides = [1, 1]} : vector<16x16xf32> to vector<1x16xf32>
    %c208 = arith.constant 208 : index
    %c0_79 = arith.constant 0 : index
    %342 = vector.load %arg10[%c208, %c0_79] : memref<256x120xf32, #tpu.memory_space<vmem>>, vector<16x120xf32>
    %cst_80 = arith.constant dense<0.000000e+00> : vector<1x120xf32>
    %343 = tpu.matmul %341, %342, %cst_80 {dimension_numbers = #tpu.dot_dimension_numbers<[1], [0], [0], [1], [0, 0, 1, 1], [], []>} : vector<1x16xf32>, vector<16x120xf32>, vector<1x120xf32> -> vector<1x120xf32>
    %344 = arith.addf %340, %343 : vector<1x120xf32>
    %345 = vector.extract_strided_slice %287 {offsets = [14, 0], sizes = [1, 16], strides = [1, 1]} : vector<16x16xf32> to vector<1x16xf32>
    %c224 = arith.constant 224 : index
    %c0_81 = arith.constant 0 : index
    %346 = vector.load %arg10[%c224, %c0_81] : memref<256x120xf32, #tpu.memory_space<vmem>>, vector<16x120xf32>
    %cst_82 = arith.constant dense<0.000000e+00> : vector<1x120xf32>
    %347 = tpu.matmul %345, %346, %cst_82 {dimension_numbers = #tpu.dot_dimension_numbers<[1], [0], [0], [1], [0, 0, 1, 1], [], []>} : vector<1x16xf32>, vector<16x120xf32>, vector<1x120xf32> -> vector<1x120xf32>
    %348 = arith.addf %344, %347 : vector<1x120xf32>
    %349 = vector.extract_strided_slice %287 {offsets = [15, 0], sizes = [1, 16], strides = [1, 1]} : vector<16x16xf32> to vector<1x16xf32>
    %c240 = arith.constant 240 : index
    %c0_83 = arith.constant 0 : index
    %350 = vector.load %arg10[%c240, %c0_83] : memref<256x120xf32, #tpu.memory_space<vmem>>, vector<16x120xf32>
    %cst_84 = arith.constant dense<0.000000e+00> : vector<1x120xf32>
    %351 = tpu.matmul %349, %350, %cst_84 {dimension_numbers = #tpu.dot_dimension_numbers<[1], [0], [0], [1], [0, 0, 1, 1], [], []>} : vector<1x16xf32>, vector<16x120xf32>, vector<1x120xf32> -> vector<1x120xf32>
    %352 = arith.addf %348, %351 : vector<1x120xf32>
    %cst_85 = arith.constant 0.000000e+00 : f32
    %353 = vector.broadcast %cst_85 : f32 to vector<1x120xf32>
    %354 = arith.maximumf %352, %353 : vector<1x120xf32>
    %c0_86 = arith.constant 0 : index
    %c0_87 = arith.constant 0 : index
    %355 = vector.load %arg12[%c0_86, %c0_87] : memref<120x84xf32, #tpu.memory_space<vmem>>, vector<120x84xf32>
    %cst_88 = arith.constant dense<0.000000e+00> : vector<1x84xf32>
    %356 = tpu.matmul %354, %355, %cst_88 {dimension_numbers = #tpu.dot_dimension_numbers<[1], [0], [0], [1], [0, 0, 1, 1], [], []>} : vector<1x120xf32>, vector<120x84xf32>, vector<1x84xf32> -> vector<1x84xf32>
    %c0_89 = arith.constant 0 : index
    %c0_90 = arith.constant 0 : index
    %357 = vector.load %arg13[%c0_89, %c0_90] : memref<1x84xf32, #tpu.memory_space<vmem>>, vector<1x84xf32>
    %358 = arith.addf %356, %357 : vector<1x84xf32>
    %cst_91 = arith.constant 0.000000e+00 : f32
    %359 = vector.broadcast %cst_91 : f32 to vector<1x84xf32>
    %360 = arith.maximumf %358, %359 : vector<1x84xf32>
    %c0_92 = arith.constant 0 : index
    %c0_93 = arith.constant 0 : index
    %361 = vector.load %arg14[%c0_92, %c0_93] : memref<84x10xf32, #tpu.memory_space<vmem>>, vector<84x10xf32>
    %cst_94 = arith.constant dense<0.000000e+00> : vector<1x10xf32>
    %362 = tpu.matmul %360, %361, %cst_94 {dimension_numbers = #tpu.dot_dimension_numbers<[1], [0], [0], [1], [0, 0, 1, 1], [], []>} : vector<1x84xf32>, vector<84x10xf32>, vector<1x10xf32> -> vector<1x10xf32>
    %c0_95 = arith.constant 0 : index
    %c0_96 = arith.constant 0 : index
    %363 = vector.load %arg15[%c0_95, %c0_96] : memref<1x10xf32, #tpu.memory_space<vmem>>, vector<1x10xf32>
    %364 = arith.addf %362, %363 : vector<1x10xf32>
    %c0_97 = arith.constant 0 : index
    %c0_98 = arith.constant 0 : index
    %c0_99 = arith.constant 0 : index
    %365 = vector.load %arg16[%c0_97, %c0_98, %c0_99] : memref<1x1x10xf32, #tpu.memory_space<vmem>>, vector<1x1x10xf32>
    %366 = vector.shape_cast %365 : vector<1x1x10xf32> to vector<1x10xf32>
    %367 = vector.shape_cast %364 : vector<1x10xf32> to vector<1x1x10xf32>
    tpu.vector_store %arg16[%c0_97, %c0_98, %c0_99], %367 {strides = array<i32>} : memref<1x1x10xf32, #tpu.memory_space<vmem>>, vector<1x1x10xf32>,
    return
  }
  func.func @transform_0(%arg0: i32) -> (i32, i32, i32) {
    %c0_i32 = arith.constant 0 : i32
    %c0_i32_0 = arith.constant 0 : i32
    %c0_i32_1 = arith.constant 0 : i32
    return %arg0, %c0_i32, %c0_i32_0 : i32, i32, i32
  }
  func.func @transform_1(%arg0: i32) -> (i32, i32) {
    %c0_i32 = arith.constant 0 : i32
    %c0_i32_0 = arith.constant 0 : i32
    %c0_i32_1 = arith.constant 0 : i32
    return %c0_i32, %c0_i32_0 : i32, i32
  }
  func.func @transform_2(%arg0: i32) -> (i32, i32) {
    %c0_i32 = arith.constant 0 : i32
    %c0_i32_0 = arith.constant 0 : i32
    %c0_i32_1 = arith.constant 0 : i32
    return %c0_i32, %c0_i32_0 : i32, i32
  }
  func.func @transform_3(%arg0: i32) -> (i32, i32) {
    %c0_i32 = arith.constant 0 : i32
    %c0_i32_0 = arith.constant 0 : i32
    %c0_i32_1 = arith.constant 0 : i32
    return %c0_i32, %c0_i32_0 : i32, i32
  }
  func.func @transform_4(%arg0: i32) -> (i32, i32) {
    %c0_i32 = arith.constant 0 : i32
    %c0_i32_0 = arith.constant 0 : i32
    %c0_i32_1 = arith.constant 0 : i32
    return %c0_i32, %c0_i32_0 : i32, i32
  }
  func.func @transform_5(%arg0: i32) -> (i32, i32) {
    %c0_i32 = arith.constant 0 : i32
    %c0_i32_0 = arith.constant 0 : i32
    %c0_i32_1 = arith.constant 0 : i32
    return %c0_i32, %c0_i32_0 : i32, i32
  }
  func.func @transform_6(%arg0: i32) -> (i32, i32) {
    %c0_i32 = arith.constant 0 : i32
    %c0_i32_0 = arith.constant 0 : i32
    %c0_i32_1 = arith.constant 0 : i32
    return %c0_i32, %c0_i32_0 : i32, i32
  }
  func.func @transform_7(%arg0: i32) -> (i32, i32) {
    %c0_i32 = arith.constant 0 : i32
    %c0_i32_0 = arith.constant 0 : i32
    %c0_i32_1 = arith.constant 0 : i32
    return %c0_i32, %c0_i32_0 : i32, i32
  }
  func.func @transform_8(%arg0: i32) -> (i32, i32) {
    %c0_i32 = arith.constant 0 : i32
    %c0_i32_0 = arith.constant 0 : i32
    %c0_i32_1 = arith.constant 0 : i32
    return %c0_i32, %c0_i32_0 : i32, i32
  }
  func.func @transform_9(%arg0: i32) -> (i32, i32) {
    %c0_i32 = arith.constant 0 : i32
    %c0_i32_0 = arith.constant 0 : i32
    %c0_i32_1 = arith.constant 0 : i32
    return %c0_i32, %c0_i32_0 : i32, i32
  }
  func.func @transform_10(%arg0: i32) -> (i32, i32) {
    %c0_i32 = arith.constant 0 : i32
    %c0_i32_0 = arith.constant 0 : i32
    %c0_i32_1 = arith.constant 0 : i32
    return %c0_i32, %c0_i32_0 : i32, i32
  }
  func.func @transform_11(%arg0: i32) -> (i32, i32) {
    %c0_i32 = arith.constant 0 : i32
    %c0_i32_0 = arith.constant 0 : i32
    %c0_i32_1 = arith.constant 0 : i32
    return %c0_i32, %c0_i32_0 : i32, i32
  }
  func.func @transform_12(%arg0: i32) -> (i32, i32) {
    %c0_i32 = arith.constant 0 : i32
    %c0_i32_0 = arith.constant 0 : i32
    %c0_i32_1 = arith.constant 0 : i32
    return %c0_i32, %c0_i32_0 : i32, i32
  }
  func.func @transform_13(%arg0: i32) -> (i32, i32) {
    %c0_i32 = arith.constant 0 : i32
    %c0_i32_0 = arith.constant 0 : i32
    %c0_i32_1 = arith.constant 0 : i32
    return %c0_i32, %c0_i32_0 : i32, i32
  }
  func.func @transform_14(%arg0: i32) -> (i32, i32) {
    %c0_i32 = arith.constant 0 : i32
    %c0_i32_0 = arith.constant 0 : i32
    %c0_i32_1 = arith.constant 0 : i32
    return %c0_i32, %c0_i32_0 : i32, i32
  }
  func.func @transform_15(%arg0: i32) -> (i32, i32, i32) {
    %c0_i32 = arith.constant 0 : i32
    %c0_i32_0 = arith.constant 0 : i32
    %c0_i32_1 = arith.constant 0 : i32
    return %arg0, %c0_i32, %c0_i32_0 : i32, i32, i32
  }
}

</mosaic_0001>

<bundles_post_ra>
// kernel: lenet_pallas_forward.1
= control target key start
LH: loop header
LB: loop body
LE: loop exit
PB: predicated region body
PF: predicated region fallthrough
CT: control target
= control target key end

     0   :  { %s12660_s0 = inlined_call_operand.vmem [shape: f32[2,1,784], index: 0, kind: input, shape index: {}]   ;;  %s12661_s1 = inlined_call_operand.vmem [shape: f32[668,576], index: 1, kind: input, shape index: {}]   ;;  %s12662_s2 = inlined_call_operand.vmem [shape: f32[551,144], index: 2, kind: input, shape index: {}]   ;;  %s12663_s3 = inlined_call_operand.vmem [shape: f32[92,64], index: 3, kind: input, shape index: {}]   ;;  %s12664_s4 = inlined_call_operand.vmem [shape: f32[55,16], index: 4, kind: input, shape index: {}]   ;;  %s12665_s5 = inlined_call_operand.vmem [shape: f32[6,25], index: 5, kind: input, shape index: {}]   ;;  %s12666_s6 = inlined_call_operand.vmem [shape: f32[6,1], index: 6, kind: input, shape index: {}]   ;;  %s12667_s7 = inlined_call_operand.vmem [shape: f32[400,6], index: 7, kind: input, shape index: {}]   ;;  %s12668_s8 = inlined_call_operand.vmem [shape: f32[16,1], index: 8, kind: input, shape index: {}]   ;;  %s12669_s9 = inlined_call_operand.vmem [shape: f32[256,120], index: 9, kind: input, shape index: {}]   ;;  %s12670_s10 = inlined_call_operand.vmem [shape: f32[1,120], index: 10, kind: input, shape index: {}]   ;;  %s12671_s11 = inlined_call_operand.vmem [shape: f32[120,84], index: 11, kind: input, shape index: {}]   ;;  %s12672_s12 = inlined_call_operand.vmem [shape: f32[1,84], index: 12, kind: input, shape index: {}]   ;;  %s12673_s13 = inlined_call_operand.vmem [shape: f32[84,10], index: 13, kind: input, shape index: {}]   ;;  %s12674_s14 = inlined_call_operand.vmem [shape: f32[1,10], index: 14, kind: input, shape index: {}]   ;;  %s12675_s15 = inlined_call_operand.hbm [shape: f32[2,1,10], index: 15, kind: output, shape index: {}]  }
   0x1   :  { %12795 = sst [smem:[#allocation46_spill]] %s12660_s0 }
   0x2   :  { %12796 = sst [smem:[#allocation47_spill]] %s12663_s3 }
   0x3   :  { %12797 = sst [smem:[#allocation48_spill]] %s12664_s4 }
   0x4   :  { %12798 = sst [smem:[#allocation49_spill]] %s12665_s5 }
   0x5   :  { %12799 = sst [smem:[#allocation50_spill]] %s12668_s8 }
   0x6   :  { %12800 = sst [smem:[#allocation51_spill]] %s12669_s9 }
   0x7   :  { %12801 = sst [smem:[#allocation52_spill]] %s12670_s10 }
   0x8   :  { %12802 = sst [smem:[#allocation53_spill]] %s12671_s11 }
   0x9   :  { %12803 = sst [smem:[#allocation54_spill]] %s12672_s12 }
   0xa   :  { %12804 = sst [smem:[#allocation55_spill]] %s12673_s13 }
   0xb   :  { %12805 = sst [smem:[#allocation56_spill]] %s12674_s14 }
   0xc   :  { %12806 = sst [smem:[#allocation57_spill]] %s12675_s15 }
   0xd   :  { %20 = vsyncpa [#allocation3], 0 }
   0xe   :  { %22 = vsyncpa [#allocation3 + $0x1], 0  ;;  %s9021_s18 = smov 0   ;;  %s9023_s19 = smov 0  }
   0xf   :  { %s9025_s20 = smov 0   ;;  %s9027_s21 = smov 0  }
  0x10 LB: > { %12807 = sst [smem:[#allocation5_spill]] %s8852_s18  ;;  %s9042_s22 = sadd.s32 4294967295, %s8864_s21   ;;  %s8864_s21 = sphi %s9027_s21, %s12975_s21   ;;  %s8860_s20 = sphi %s9025_s20, %s12978_s20   ;;  %s8856_s19 = sphi %s9023_s19, %s12977_s19   ;;  %s8852_s18 = sphi %s9021_s18, %s12976_s18  }
  0x11   : > { %12808 = sst [smem:[#allocation6_spill]] %s8856_s19  ;;  %s7157_s23 = sadd.s32 4294967294, %s8864_s21  }
  0x12   : > { %12809 = sst [smem:[#allocation7_spill]] %s8860_s20  ;;  %s9046_s24 = sadd.s32 1, %s8864_s21  }
  0x13   : > { %12810 = sst [smem:[#allocation8_spill]] %s8864_s21  ;;  %s355_s25 = sadd.s32 1, %s8860_s20 }
  0x14   : > { %12811 = sst [smem:[#allocation9_spill]] %s9042_s22  ;;  %s352_s26 = ssub.s32 %s8864_s21, %s9046_s24 }
  0x15   : > { %12812 = sst [smem:[#allocation10_spill]] %s9046_s24  ;;  %p365_p0 = scmp.ne.s32.totalorder %s8860_s20, %s8856_s19 }
  0x16   : > { %p353_p1 = scmp.eq.s32.totalorder %s352_s26, 0  ;;  %p366_p2 = scmp.eq.s32.totalorder %s9042_s22, 1 }
  0x17   : > { %p371_p3 = scmp.ne.s32.totalorder %s8856_s19, %s8852_s18  ;;  %p372_p4 = scmp.eq.s32.totalorder %s7157_s23, 1 }
  0x18   : > { %s9057_s27 = scalar_select %p353_p1, %s8860_s20, %s355_s25  }
  0x19   : > { %p9059_p5 = por %p366_p2, %p365_p0  ;;  %p9063_p6 = por %p372_p4, %p371_p3 }
  0x1a   : > { %12813 = sst [smem:[#allocation11_spill]] %s9057_s27  ;;  %p7160_p7 = scmp.ge.s32.totalorder %s8864_s21, 1 }
  0x1b   : > { %s12814_s28 = scalar_select %p9059_p5, 1, 0 }
  0x1c   : > { %s12816_s29 = scalar_select %p9063_p6, 1, 0 }
  0x1d   : > { %12815 = sst [smem:[#allocation12_spill]] %s12814_s28  ;;  %p439_p8 = scmp.lt.s32.totalorder %s8864_s21, 3 }
  0x1e   : > { %12817 = sst [smem:[#allocation13_spill]] %s12816_s29 }
  0x1f   : > { %p440_p9 = pnand %p7160_p7, %p439_p8 }
  0x21   : > { %443 = sbr.rel (%p440_p9) target bundleno = 3088 (0xc10), region = 80 }
  0x28   : > { %s12818_s5 = sld [smem:[#allocation49_spill]]  ;;  %v8866_v1 = vmov 1   ;;  %v8867_v2 = vmov 3   ;;  %v8868_v3 = vmov 2   ;;  %v8869_v4 = vmov 4   ;;  %p485_p10 = scmp.lt.s32.totalorder %s9042_s22, 1 }
  0x29   : > { %8760 = vset.pattern.permute.xlu0 %v8866_v1  ;;  %8762 = vset.pattern.permute.xlu1 %v8867_v2  ;;  %v8870_v5 = vmov 5   ;;  %v8871_v6 = vmov 6   ;;  %v8872_v7 = vmov 7   ;;  %v8873_v8 = vmov 9   ;;  %s12819_s0 = sld [smem:[#allocation46_spill]]  ;;  %s12694_s16 = smov 127  }
  0x2a   : > { %v8874_v9 = vmov 8   ;;  %v8875_v10 = vmov 12   ;;  %v8876_v11 = vmov 10   ;;  %v8877_v12 = vmov 15   ;;  %s486_s17 = scalar_select %p485_p10, %s9042_s22, 1 }
  0x2b   : > { %v8878_v13 = vmov 11   ;;  %v8879_v14 = vmov 18   ;;  %v8880_v15 = vmov 13   ;;  %v8881_v16 = vmov 21   ;;  %s12676_s25 = smov 124   ;;  %s12678_s26 = smov 100  }
  0x2c   : > { %v8882_v17 = vmov 14   ;;  %v8883_v18 = vmov 24   ;;  %v8884_v19 = vmov 16   ;;  %v8885_v20 = vmov 0   ;;  %s8646_s23 = smul.u32 7, %s486_s17  ;;  %s12692_s17 = smov 126  }
  0x2d   : > { %v8886_v21 = vmov 17   ;;  %v8887_v22 = vmov 19   ;;  %v8888_v23 = vmov 20   ;;  %v8889_v24 = vmov 22   ;;  %s12835_s27 = smov 69   ;;  %s12718_s21 = smov 40  }
  0x2e   : > { %v9072_v0 = vld [vmem:[%s12818_s5] sm:$0x3f]  ;;  %v8890_v25 = vmov 23   ;;  %v497_v26 = vlaneseq  ;;  %s12722_s24 = smov 15   ;;  %s12725_s18 = smov 12   ;;  %vm567_vm0 = vcmask 1039360  }
  0x2f   : > { %540 = vperm.xlu0 %8760, %v9072_v0   ;;  %632 = vperm.xlu1 %8762, %v9072_v0   ;;  %s9106_s30 = scalar_lea.vmem %s12819_s0, %s8646_s23  ;;  %s12690_s23 = smov 125   ;;  %vm613_vm1 = vcmask 1031168   ;;  %vm659_vm2 = vcmask 1022976   ;;  %vm705_vm3 = vcmask 1014784   ;;  %vm751_vm4 = vcmask 818176  }
  0x30   : > { %v9101_v27 = vshrl.u32 %v497_v26, 7  ;;  %v9111_v30 = vld [vmem:[%s9106_s30] sm:$0x7f]  ;;  %v1678_v26 = vld [vmem:[%s12661_s1 + $0x28] sm:$0xff]  ;;  %s12712_s0 = smov 43   ;;  %s12845_s5 = smov 124  }
  0x31   : > { %s12847_s20 = smov 99   ;;  %s12848_s29 = smov 98   ;;  %vm797_vm5 = vcmask 809984   ;;  %vm843_vm6 = vcmask 801792   ;;  %vm12794_vm7 = vcmask 793600   ;;  %vm12792_vm8 = vcmask 785408  }
  0x32   : > { %v507_v28 = vsub.s32 2, %v9101_v27  ;;  %v503_v29 = vsub.s32 1, %v9101_v27  ;;  %v499_v33 = vsub.s32 0, %v9101_v27  ;;  %s12849_s28 = smov 97   ;;  %s12850_s14 = smov 96   ;;  %vm12790_vm9 = vcmask 588800  }
  0x33   : > { %8761 = vset.pattern.permute.xlu0 %v8868_v3  ;;  %8763 = vset.pattern.permute.xlu1 %v8869_v4  ;;  %s12851_s12 = smov 72   ;;  %s12852_s15 = smov 71   ;;  %vm12791_vm10 = vcmask 580608   ;;  %vm12793_vm11 = vcmask 572416   ;;  %vm12761_vm12 = vcmask 564224   ;;  %vm12759_vm13 = vcmask 556032  }
  0x34   : > { %586 = vperm.xlu0 %8761, %v9072_v0   ;;  %678 = vperm.xlu1 %8763, %v9072_v0   ;;  %v9114_v31 = vrot.slane %v9111_v30, %v507_v28  ;;  %v9117_v32 = vrot.slane %v9111_v30, %v503_v29  ;;  %v9127_v37 = vrot.slane %v9111_v30, %v499_v33  ;;  %s12855_s22 = smov 68   ;;  %s12866_s19 = smov 40   ;;  %vm12764_vm14 = vcmask 359424  }
  0x35   : > { %s12868_s13 = smov 16   ;;  %s12872_s10 = smov 14   ;;  %vm12762_vm15 = vcmask 351232  }
  0x36   : > { %12820 = vst [vmem:[#allocation14_spill] sm:$0xff] %v9114_v31  ;;  %s12879_s11 = smov 13   ;;  %s12884_s9 = smov 12  }
  0x37   : > { %s8930_s4 = smov 89   ;;  %s12971_s8 = sld [smem:[#allocation57_spill]] }
  0x38   : > { %8764 = vset.pattern.permute.xlu1 %v8870_v5  ;;  %8765 = vset.pattern.permute.xlu0 %v8871_v6 }
  0x39   : > { %724 = vperm.xlu1 %8764, %v9072_v0   ;;  %770 = vperm.xlu0 %8765, %v9072_v0  }
  0x3d   : > { %8766 = vset.pattern.permute.xlu1 %v8872_v7  ;;  %8768 = vset.pattern.permute.xlu0 %v8873_v8 }
  0x3e   : > { %816 = vperm.xlu1 %8766, %v9072_v0   ;;  %908 = vperm.xlu0 %8768, %v9072_v0  }
  0x42   : > { %8767 = vset.pattern.permute.xlu1 %v8874_v9  ;;  %8771 = vset.pattern.permute.xlu0 %v8875_v10 }
  0x43   : > { %862 = vperm.xlu1 %8767, %v9072_v0   ;;  %1046 = vperm.xlu0 %8771, %v9072_v0  }
  0x47   : > { %8769 = vset.pattern.permute.xlu1 %v8876_v11  ;;  %8774 = vset.pattern.permute.xlu0 %v8877_v12 }
  0x48   : > { %954 = vperm.xlu1 %8769, %v9072_v0   ;;  %1184 = vperm.xlu0 %8774, %v9072_v0  }
  0x4c   : > { %8770 = vset.pattern.permute.xlu1 %v8878_v13  ;;  %8777 = vset.pattern.permute.xlu0 %v8879_v14 }
  0x4d   : > { %1000 = vperm.xlu1 %8770, %v9072_v0   ;;  %1322 = vperm.xlu0 %8777, %v9072_v0  }
  0x51   : > { %8772 = vset.pattern.permute.xlu1 %v8880_v15  ;;  %8780 = vset.pattern.permute.xlu0 %v8881_v16 }
  0x52   : > { %1092 = vperm.xlu1 %8772, %v9072_v0   ;;  %1470 = vperm.xlu0 %8780, %v9072_v0  }
  0x56   : > { %8773 = vset.pattern.permute.xlu1 %v8882_v17  ;;  %8783 = vset.pattern.permute.xlu0 %v8883_v18 }
  0x57   : > { %1138 = vperm.xlu1 %8773, %v9072_v0   ;;  %1623 = vperm.xlu0 %8783, %v9072_v0  }
  0x5b   : > { %8775 = vset.pattern.permute.xlu1 %v8884_v19  ;;  %8785 = vset.pattern.permute.xlu0 %v8885_v20 }
  0x5c   : > { %1230 = vperm.xlu1 %8775, %v9072_v0  }
  0x60   : > { %8776 = vset.pattern.permute.xlu1 %v8886_v21  ;;  %v1679_v21 = vld [vmem:[%s12661_s1 + $0x30] sm:$0xff] }
  0x61   : > { %1276 = vperm.xlu1 %8776, %v9072_v0  }
  0x65   : > { %8778 = vset.pattern.permute.xlu1 %v8887_v22  ;;  %v1676_v22 = vld [vmem:[%s12661_s1 + $0x18] sm:$0xff] }
  0x66   : > { %1368 = vperm.xlu1 %8778, %v9072_v0  }
  0x6a   : > { %8779 = vset.pattern.permute.xlu1 %v8888_v23 }
  0x6b   : > { %1414 = vperm.xlu1 %8779, %v9072_v0  }
  0x6f   : > { %8781 = vset.pattern.permute.xlu1 %v8889_v24  ;;  %v1681_v24 = vld [vmem:[%s12661_s1 + $0x40] sm:$0xff] }
  0x70   : > { %1521 = vperm.xlu1 %8781, %v9072_v0   ;;  %v8028_v33 = vpack.c.bf16 %v1681_v24, %v1676_v22  ;;  %v1711_v24 = vld [vmem:[%s12661_s1 + $0x130] sm:$0xff] }
  0x72   : > { %8029 = vmatprep.subr.bf16.mxu1 %v8028_v33 }
  0x74   : > { %8782 = vset.pattern.permute.xlu1 %v8890_v25  ;;  %v1673_v25 = vld [vmem:[%s12661_s1] sm:$0xff] }
  0x75   : > { %1572 = vperm.xlu1 %8782, %v9072_v0  }
  0x79   : > { %8784 = vset.pattern.permute.xlu1 %v8885_v20  ;;  %v1674_v20 = vld [vmem:[%s12661_s1 + $0x8] sm:$0xff] }
  0x7a   : > { %493 = vperm.xlu1 %8784, %v9072_v0   ;;  %v7858_v23 = vpack.c.bf16 %v1679_v21, %v1674_v20  ;;  %v1709_v20 = vld [vmem:[%s12661_s1 + $0x120] sm:$0xff]  ;;  %v1706_v21 = vld [vmem:[%s12661_s1 + $0x108] sm:$0xff] }
  0x7b   : > { %v8040_v33 = vpack.c.bf16 %v1711_v24, %v1706_v21  ;;  %v1734_v21 = vld [vmem:[%s12661_s1 + $0x1e8] sm:$0xff] }
  0x7c   : > { %7859 = vmatprep.subr.bf16.mxu0 %v7858_v23 }
  0xae   : > { %v9120_v34 = vpop.permute.xlu0 %540  ;;  %v9140_v42 = vpop.permute.xlu1 %632 }
  0xaf   : > { %v545_v35 = vmul.f32 %v9120_v34, %v9114_v31  ;;  %v544_v36 = vmul.f32 %v9120_v34, %v9117_v32  ;;  %v543_v39 = vmul.f32 %v9120_v34, %v9127_v37  ;;  %12821 = vst [vmem:[#allocation15_spill] sm:$0xff] %v9140_v42  ;;  %v636_v44 = vmul.f32 %v9140_v42, %v9117_v32 }
  0xb0   : > { %v637_v45 = vmul.f32 %v9140_v42, %v9114_v31  ;;  %v635_v48 = vmul.f32 %v9140_v42, %v9127_v37 }
  0xb1   : > { %559 = vrot.lane.b32.xlu0 %v545_v35, %s12694_s16  ;;  %557 = vrot.lane.b32.xlu1 %v544_v36, %s12694_s16  ;;  %v1675_v35 = vld [vmem:[%s12661_s1 + $0x10] sm:$0xff]  ;;  %v1680_v36 = vld [vmem:[%s12661_s1 + $0x38] sm:$0xff] }
  0xb3   : > { %v9131_v38 = vpop.permute.xlu0 %586  ;;  %v9151_v46 = vpop.permute.xlu1 %678 }
  0xb4   : > { %v590_v40 = vmul.f32 %v9131_v38, %v9117_v32  ;;  %v591_v41 = vmul.f32 %v9131_v38, %v9114_v31  ;;  %v589_v43 = vmul.f32 %v9131_v38, %v9127_v37  ;;  %12822 = vst [vmem:[#allocation16_spill] sm:$0xff] %v9151_v46  ;;  %v682_v47 = vmul.f32 %v9151_v46, %v9117_v32 }
  0xb5   : > { %555 = vrot.lane.b32.xlu1 %v543_v39, %s12694_s16  ;;  %v683_v49 = vmul.f32 %v9151_v46, %v9114_v31  ;;  %v681_v51 = vmul.f32 %v9151_v46, %v9127_v37  ;;  %s12704_s16 = smov 69  }
  0xb6   : > { %603 = vrot.lane.b32.xlu0 %v590_v40, %s12692_s17  ;;  %v7860_v40 = vpack.c.bf16 %v1678_v26, %v1673_v25  ;;  %v1703_v25 = vld [vmem:[%s12661_s1 + $0xf0] sm:$0xff]  ;;  %v1708_v26 = vld [vmem:[%s12661_s1 + $0x118] sm:$0xff] }
  0xb8   : > { %v9163_v50 = vpop.permute.xlu1 %724  ;;  %v9173_v54 = vpop.permute.xlu0 %770  ;;  %7861 = vmatpush1.bf16.msra.mxu0 %v7860_v40 }
  0xb9   : > { %605 = vrot.lane.b32.xlu1 %v591_v41, %s12692_s17  ;;  %12823 = vst [vmem:[#allocation17_spill] sm:$0xff] %v9163_v50  ;;  %v728_v52 = vmul.f32 %v9163_v50, %v9117_v32  ;;  %v729_v53 = vmul.f32 %v9163_v50, %v9114_v31  ;;  %12824 = vst [vmem:[#allocation18_spill] sm:$0xff] %v9173_v54  ;;  %v774_v55 = vmul.f32 %v9173_v54, %v9117_v32 }
  0xba   : > { %601 = vrot.lane.b32.xlu0 %v589_v43, %s12692_s17  ;;  %v727_v56 = vmul.f32 %v9163_v50, %v9127_v37  ;;  %v775_v57 = vmul.f32 %v9173_v54, %v9114_v31  ;;  %v773_v59 = vmul.f32 %v9173_v54, %v9127_v37  ;;  %v8030_v41 = vpack.c.bf16 %v1680_v36, %v1675_v35  ;;  %v1684_v43 = vld [vmem:[%s12661_s1 + $0x58] sm:$0xff]  ;;  %v1705_v36 = vld [vmem:[%s12661_s1 + $0x100] sm:$0xff]  ;;  %s12714_s17 = smov 42  }
  0xbb   : > { %v7872_v35 = vpack.c.bf16 %v1708_v26, %v1703_v25  ;;  %v1741_v26 = vld [vmem:[%s12661_s1 + $0x220] sm:$0xff] }
  0xbc   : > { %8031 = vmatpush1.bf16.msra.mxu1 %v8030_v41 }
  0xbd   : > { %649 = vrot.lane.b32.xlu1 %v636_v44, %s12690_s23  ;;  %v9184_v58 = vpop.permute.xlu1 %816  ;;  %v9207_v2 = vpop.permute.xlu0 %908  ;;  %v1689_v44 = vld [vmem:[%s12661_s1 + $0x80] sm:$0xff] }
  0xbe   : > { %651 = vrot.lane.b32.xlu0 %v637_v45, %s12690_s23  ;;  %12825 = vst [vmem:[#allocation19_spill] sm:$0xff] %v9184_v58  ;;  %v820_v60 = vmul.f32 %v9184_v58, %v9117_v32  ;;  %v821_v61 = vmul.f32 %v9184_v58, %v9114_v31  ;;  %v819_v0 = vmul.f32 %v9184_v58, %v9127_v37  ;;  %12827 = vst [vmem:[#allocation21_spill] sm:$0xff] %v9207_v2  ;;  %v1686_v45 = vld [vmem:[%s12661_s1 + $0x68] sm:$0xff] }
  0xbf   : > { %v912_v4 = vmul.f32 %v9207_v2, %v9117_v32  ;;  %v913_v5 = vmul.f32 %v9207_v2, %v9114_v31  ;;  %v911_v8 = vmul.f32 %v9207_v2, %v9127_v37 }
  0xc1   : > { %647 = vrot.lane.b32.xlu1 %v635_v48, %s12690_s23  ;;  %s12832_s23 = smov 70   ;;  %v1691_v48 = vld [vmem:[%s12661_s1 + $0x90] sm:$0xff] }
  0xc2   : > { %695 = vrot.lane.b32.xlu0 %v682_v47, %s12676_s25  ;;  %v9195_v62 = vpop.permute.xlu1 %862  ;;  %v9239_v14 = vpop.permute.xlu0 %1046  ;;  %v7862_v47 = vpack.c.bf16 %v1689_v44, %v1684_v43  ;;  %v1714_v43 = vld [vmem:[%s12661_s1 + $0x148] sm:$0xff]  ;;  %v1719_v44 = vld [vmem:[%s12661_s1 + $0x170] sm:$0xff] }
  0xc3   : > { %12826 = vst [vmem:[#allocation20_spill] sm:$0xff] %v9195_v62  ;;  %v866_v63 = vmul.f32 %v9195_v62, %v9117_v32  ;;  %v867_v1 = vmul.f32 %v9195_v62, %v9114_v31  ;;  %v865_v3 = vmul.f32 %v9195_v62, %v9127_v37  ;;  %12830 = vst [vmem:[#allocation24_spill] sm:$0xff] %v9239_v14 }
  0xc4   : > { %v1050_v15 = vmul.f32 %v9239_v14, %v9117_v32  ;;  %v1051_v18 = vmul.f32 %v9239_v14, %v9114_v31  ;;  %v1049_v19 = vmul.f32 %v9239_v14, %v9127_v37  ;;  %7863 = vmatprep.subr.bf16.mxu0 %v7862_v47  ;;  %v7874_v47 = vpack.c.bf16 %v1719_v44, %v1714_v43 }
  0xc5   : > { %697 = vrot.lane.b32.xlu1 %v683_v49, %s12676_s25  ;;  %v1683_v49 = vld [vmem:[%s12661_s1 + $0x50] sm:$0xff] }
  0xc6   : > { %693 = vrot.lane.b32.xlu0 %v681_v51, %s12676_s25  ;;  %s12680_s25 = smov 99   ;;  %v1688_v51 = vld [vmem:[%s12661_s1 + $0x78] sm:$0xff] }
  0xc7   : > { %v9217_v6 = vpop.permute.xlu1 %954 }
  0xc8   : > { %12828 = vst [vmem:[#allocation22_spill] sm:$0xff] %v9217_v6  ;;  %v958_v7 = vmul.f32 %v9217_v6, %v9117_v32  ;;  %v959_v9 = vmul.f32 %v9217_v6, %v9114_v31  ;;  %v957_v11 = vmul.f32 %v9217_v6, %v9127_v37 }
  0xc9   : > { %741 = vrot.lane.b32.xlu1 %v728_v52, %s12678_s26 }
  0xca   : > { %743 = vrot.lane.b32.xlu0 %v729_v53, %s12678_s26  ;;  %v8032_v53 = vpack.c.bf16 %v1691_v48, %v1686_v45  ;;  %v1716_v45 = vld [vmem:[%s12661_s1 + $0x158] sm:$0xff]  ;;  %v1721_v48 = vld [vmem:[%s12661_s1 + $0x180] sm:$0xff] }
  0xcc   : > { %v9229_v10 = vpop.permute.xlu1 %1000  ;;  %8033 = vmatprep.subr.bf16.mxu1 %v8032_v53 }
  0xcd   : > { %739 = vrot.lane.b32.xlu1 %v727_v56, %s12678_s26  ;;  %s12682_s26 = smov 98   ;;  %12829 = vst [vmem:[#allocation23_spill] sm:$0xff] %v9229_v10  ;;  %v1004_v12 = vmul.f32 %v9229_v10, %v9117_v32  ;;  %v1005_v13 = vmul.f32 %v9229_v10, %v9114_v31  ;;  %v1003_v16 = vmul.f32 %v9229_v10, %v9127_v37  ;;  %v1685_v56 = vld [vmem:[%s12661_s1 + $0x60] sm:$0xff] }
  0xce   : > { %787 = vrot.lane.b32.xlu0 %v774_v55, %s12680_s25  ;;  %v7864_v55 = vpack.c.bf16 %v1688_v51, %v1683_v49  ;;  %v1713_v49 = vld [vmem:[%s12661_s1 + $0x140] sm:$0xff]  ;;  %v1718_v51 = vld [vmem:[%s12661_s1 + $0x168] sm:$0xff] }
  0xd0   : > { %7865 = vmatpush1.bf16.msra.mxu0 %v7864_v55  ;;  %v8044_v55 = vpack.c.bf16 %v1721_v48, %v1716_v45  ;;  %v1744_v45 = vld [vmem:[%s12661_s1 + $0x238] sm:$0xff]  ;;  %v1746_v48 = vld [vmem:[%s12661_s1 + $0x248] sm:$0xff] }
  0xd1   : > { %789 = vrot.lane.b32.xlu1 %v775_v57, %s12680_s25  ;;  %v9247_v17 = vpop.permute.xlu1 %1092  ;;  %v1690_v57 = vld [vmem:[%s12661_s1 + $0x88] sm:$0xff] }
  0xd2   : > { %785 = vrot.lane.b32.xlu0 %v773_v59, %s12680_s25  ;;  %s12684_s25 = smov 97   ;;  %12831 = vst [vmem:[#allocation25_spill] sm:$0xff] %v9247_v17  ;;  %v1096_v28 = vmul.f32 %v9247_v17, %v9117_v32  ;;  %v1097_v39 = vmul.f32 %v9247_v17, %v9114_v31 }
  0xd5   : > { %833 = vrot.lane.b32.xlu1 %v820_v60, %s12682_s26  ;;  %v8034_v60 = vpack.c.bf16 %v1690_v57, %v1685_v56  ;;  %v7876_v56 = vpack.c.bf16 %v1718_v51, %v1713_v49  ;;  %v1715_v57 = vld [vmem:[%s12661_s1 + $0x150] sm:$0xff] }
  0xd6   : > { %835 = vrot.lane.b32.xlu0 %v821_v61, %s12682_s26  ;;  %v9276_v29 = vpop.permute.xlu1 %1138  ;;  %v1095_v61 = vmul.f32 %v9247_v17, %v9127_v37 }
  0xd7   : > { %12833 = vst [vmem:[#allocation26_spill] sm:$0xff] %v9276_v29  ;;  %v1142_v59 = vmul.f32 %v9276_v29, %v9117_v32  ;;  %8035 = vmatpush1.bf16.msra.mxu1 %v8034_v60  ;;  %v1141_v22 = vmul.f32 %v9276_v29, %v9127_v37 }
  0xd9   : > { %831 = vrot.lane.b32.xlu1 %v819_v0, %s12682_s26  ;;  %s12686_s26 = smov 96   ;;  %v1699_v0 = vld [vmem:[%s12661_s1 + $0xd0] sm:$0xff] }
  0xda   : > { %879 = vrot.lane.b32.xlu0 %v866_v63, %s12684_s25  ;;  %v1694_v63 = vld [vmem:[%s12661_s1 + $0xa8] sm:$0xff] }
  0xdb   : > { %v9306_v52 = vpop.permute.xlu1 %1230 }
  0xdc   : > { %12834 = vst [vmem:[#allocation27_spill] sm:$0xff] %v9306_v52  ;;  %v1233_v24 = vmul.f32 %v9306_v52, %v9127_v37 }
  0xdd   : > { %881 = vrot.lane.b32.xlu1 %v867_v1, %s12684_s25  ;;  %v1696_v1 = vld [vmem:[%s12661_s1 + $0xb8] sm:$0xff] }
  0xde   : > { %877 = vrot.lane.b32.xlu0 %v865_v3, %s12684_s25  ;;  %s12688_s25 = smov 72   ;;  %v7866_v3 = vpack.c.bf16 %v1699_v0, %v1694_v63  ;;  %v1724_v63 = vld [vmem:[%s12661_s1 + $0x198] sm:$0xff]  ;;  %v1729_v0 = vld [vmem:[%s12661_s1 + $0x1c0] sm:$0xff] }
  0xe0   : > { %7867 = vmatprep.subr.bf16.mxu0 %v7866_v3  ;;  %v1234_v3 = vmul.f32 %v9306_v52, %v9117_v32 }
  0xe1   : > { %925 = vrot.lane.b32.xlu1 %v912_v4, %s12686_s26  ;;  %v1701_v4 = vld [vmem:[%s12661_s1 + $0xe0] sm:$0xff] }
  0xe2   : > { %927 = vrot.lane.b32.xlu0 %v913_v5, %s12686_s26  ;;  %v1693_v5 = vld [vmem:[%s12661_s1 + $0xa0] sm:$0xff] }
  0xe5   : > { %923 = vrot.lane.b32.xlu1 %v911_v8, %s12686_s26  ;;  %s12696_s26 = smov 71   ;;  %v8036_v8 = vpack.c.bf16 %v1701_v4, %v1696_v1  ;;  %v1726_v1 = vld [vmem:[%s12661_s1 + $0x1a8] sm:$0xff]  ;;  %v7878_v4 = vpack.c.bf16 %v1729_v0, %v1724_v63  ;;  %v1745_v63 = vld [vmem:[%s12661_s1 + $0x240] sm:$0xff] }
  0xe6   : > { %971 = vrot.lane.b32.xlu0 %v958_v7, %s12688_s25  ;;  %v1698_v7 = vld [vmem:[%s12661_s1 + $0xc8] sm:$0xff] }
  0xe7   : > { %8037 = vmatprep.subr.bf16.mxu1 %v8036_v8  ;;  %v1728_v8 = vld [vmem:[%s12661_s1 + $0x1b8] sm:$0xff]  ;;  %v1750_v0 = vld [vmem:[%s12661_s1 + $0x268] sm:$0xff] }
  0xe9   : > { %973 = vrot.lane.b32.xlu1 %v959_v9, %s12688_s25  ;;  %v7868_v9 = vpack.c.bf16 %v1698_v7, %v1693_v5  ;;  %v1731_v5 = vld [vmem:[%s12661_s1 + $0x1d0] sm:$0xff] }
  0xea   : > { %969 = vrot.lane.b32.xlu0 %v957_v11, %s12688_s25  ;;  %s12699_s25 = smov 70   ;;  %v1695_v11 = vld [vmem:[%s12661_s1 + $0xb0] sm:$0xff] }
  0xeb   : > { %7869 = vmatpush1.bf16.msra.mxu0 %v7868_v9  ;;  %v1723_v7 = vld [vmem:[%s12661_s1 + $0x190] sm:$0xff]  ;;  %v8048_v9 = vpack.c.bf16 %v1731_v5, %v1726_v1  ;;  %v1754_v5 = vld [vmem:[%s12661_s1 + $0x288] sm:$0xff] }
  0xed   : > { %1017 = vrot.lane.b32.xlu1 %v1004_v12, %s12696_s26  ;;  %v1700_v12 = vld [vmem:[%s12661_s1 + $0xd8] sm:$0xff] }
  0xee   : > { %1019 = vrot.lane.b32.xlu0 %v1005_v13, %s12696_s26  ;;  %v9345_v13 = vpop.permute.xlu0 %1184 }
  0xef   : > { %12836 = vst [vmem:[#allocation28_spill] sm:$0xff] %v9345_v13  ;;  %v1189_v40 = vmul.f32 %v9345_v13, %v9114_v31 }
  0xf1   : > { %1015 = vrot.lane.b32.xlu1 %v1003_v16, %s12696_s26  ;;  %s12707_s26 = smov 68   ;;  %v1143_v16 = vmul.f32 %v9276_v29, %v9114_v31 }
  0xf2   : > { %1063 = vrot.lane.b32.xlu0 %v1050_v15, %s12699_s25  ;;  %v8038_v15 = vpack.c.bf16 %v1700_v12, %v1695_v11  ;;  %v7880_v11 = vpack.c.bf16 %v1728_v8, %v1723_v7  ;;  %v1725_v12 = vld [vmem:[%s12661_s1 + $0x1a0] sm:$0xff]  ;;  %v9475_v44 = vpop.permute.xlu0 %1322  ;;  %v1759_v7 = vld [vmem:[%s12661_s1 + $0x2b0] sm:$0xff]  ;;  %v1756_v8 = vld [vmem:[%s12661_s1 + $0x298] sm:$0xff]  ;;  %s12865_s25 = smov 41  }
  0xf3   : > { %v1326_v1 = vmul.f32 %v9475_v44, %v9117_v32 }
  0xf4   : > { %8039 = vmatpush1.bf16.msra.mxu1 %v8038_v15  ;;  %v1730_v15 = vld [vmem:[%s12661_s1 + $0x1c8] sm:$0xff] }
  0xf5   : > { %1065 = vrot.lane.b32.xlu1 %v1051_v18, %s12832_s23  ;;  %v9349_v18 = vpop.permute.xlu1 %1276  ;;  %8041 = vmatprep.subr.bf16.mxu1 %v8040_v33  ;;  %v1738_v33 = vld [vmem:[%s12661_s1 + $0x208] sm:$0xff] }
  0xf6   : > { %1061 = vrot.lane.b32.xlu0 %v1049_v19, %s12832_s23  ;;  %12837 = vst [vmem:[#allocation29_spill] sm:$0xff] %v9349_v18  ;;  %v1704_v19 = vld [vmem:[%s12661_s1 + $0xf8] sm:$0xff]  ;;  %v1280_v43 = vmul.f32 %v9349_v18, %v9117_v32  ;;  %v1281_v49 = vmul.f32 %v9349_v18, %v9114_v31 }
  0xf7   : > { %v7870_v23 = vpack.c.bf16 %v1709_v20, %v1704_v19  ;;  %v1235_v19 = vmul.f32 %v9306_v52, %v9114_v31 }
  0xf9   : > { %1109 = vrot.lane.b32.xlu1 %v1096_v28, %s12704_s16  ;;  %v1188_v28 = vmul.f32 %v9345_v13, %v9117_v32  ;;  %7871 = vmatprep.subr.bf16.mxu0 %v7870_v23  ;;  %v9402_v53 = vpop.permute.xlu1 %1368  ;;  %v1736_v23 = vld [vmem:[%s12661_s1 + $0x1f8] sm:$0xff] }
  0xfa   : > { %1111 = vrot.lane.b32.xlu0 %v1097_v39, %s12704_s16  ;;  %v1710_v39 = vld [vmem:[%s12661_s1 + $0x128] sm:$0xff]  ;;  %7873 = vmatpush1.bf16.msra.mxu0 %v7872_v35  ;;  %s12710_s16 = smov 44   ;;  %v8052_v35 = vpack.c.bf16 %v1741_v26, %v1736_v23  ;;  %v1760_v23 = vld [vmem:[%s12661_s1 + $0x2b8] sm:$0xff] }
  0xfb   : > { %v8042_v41 = vpack.c.bf16 %v1710_v39, %v1705_v36  ;;  %7875 = vmatprep.subr.bf16.mxu0 %v7874_v47  ;;  %v1735_v39 = vld [vmem:[%s12661_s1 + $0x1f0] sm:$0xff]  ;;  %v1749_v47 = vld [vmem:[%s12661_s1 + $0x260] sm:$0xff] }
  0xfc   : > { %v7886_v51 = vpack.c.bf16 %v1749_v47, %v1744_v45 }
  0xfd   : > { %1107 = vrot.lane.b32.xlu1 %v1095_v61, %s12835_s27  ;;  %8043 = vmatpush1.bf16.msra.mxu1 %v8042_v41  ;;  %v1187_v61 = vmul.f32 %v9345_v13, %v9127_v37  ;;  %v9443_v20 = vpop.permute.xlu1 %1414 }
  0xfe   : > { %1155 = vrot.lane.b32.xlu0 %v1142_v59, %s12707_s26  ;;  %v1720_v59 = vld [vmem:[%s12661_s1 + $0x178] sm:$0xff]  ;;  %8045 = vmatprep.subr.bf16.mxu1 %v8044_v55  ;;  %v1751_v55 = vld [vmem:[%s12661_s1 + $0x270] sm:$0xff] }
  0xff   : > { %v8046_v60 = vpack.c.bf16 %v1720_v59, %v1715_v57  ;;  %7877 = vmatpush1.bf16.msra.mxu0 %v7876_v56  ;;  %v1743_v56 = vld [vmem:[%s12661_s1 + $0x230] sm:$0xff]  ;;  %v1748_v57 = vld [vmem:[%s12661_s1 + $0x258] sm:$0xff] }
 0x100   : > { %7879 = vmatprep.subr.bf16.mxu0 %v7878_v4  ;;  %v1279_v4 = vmul.f32 %v9349_v18, %v9127_v37 }
 0x101   : > { %1157 = vrot.lane.b32.xlu1 %v1143_v16, %s12707_s26  ;;  %8047 = vmatpush1.bf16.msra.mxu1 %v8046_v60  ;;  %v8050_v16 = vpack.c.bf16 %v1730_v15, %v1725_v12  ;;  %v9498_v59 = vpop.permute.xlu1 %1521  ;;  %v8056_v60 = vpack.c.bf16 %v1751_v55, %v1746_v48  ;;  %v1753_v12 = vld [vmem:[%s12661_s1 + $0x280] sm:$0xff]  ;;  %v1758_v15 = vld [vmem:[%s12661_s1 + $0x2a8] sm:$0xff] }
 0x102   : > { %1153 = vrot.lane.b32.xlu0 %v1141_v22, %s12707_s26  ;;  %8049 = vmatprep.subr.bf16.mxu1 %v8048_v9  ;;  %v1739_v22 = vld [vmem:[%s12661_s1 + $0x210] sm:$0xff]  ;;  %v7890_v9 = vpack.c.bf16 %v1759_v7, %v1754_v5  ;;  %v1765_v48 = vld [vmem:[%s12661_s1 + $0x2e0] sm:$0xff]  ;;  %v1778_v7 = vld [vmem:[%s12661_s1 + $0x348] sm:$0xff]  ;;  %s12846_s26 = smov 100  }
 0x103   : > { %7881 = vmatpush1.bf16.msra.mxu0 %v7880_v11  ;;  %v7882_v25 = vpack.c.bf16 %v1739_v22, %v1734_v21  ;;  %v1761_v11 = vld [vmem:[%s12661_s1 + $0x2c0] sm:$0xff]  ;;  %v7892_v21 = vpack.c.bf16 %v1758_v15, %v1753_v12  ;;  %v1755_v22 = vld [vmem:[%s12661_s1 + $0x290] sm:$0xff]  ;;  %v1371_v12 = vmul.f32 %v9402_v53, %v9127_v37 }
 0x104   : > { %v1773_v5 = vld [vmem:[%s12661_s1 + $0x320] sm:$0xff] }
 0x105   : > { %1201 = vrot.lane.b32.xlu1 %v1188_v28, %s12710_s16  ;;  %8051 = vmatpush1.bf16.msra.mxu1 %v8050_v16  ;;  %v1733_v28 = vld [vmem:[%s12661_s1 + $0x1e0] sm:$0xff]  ;;  %v1327_v16 = vmul.f32 %v9475_v44, %v9114_v31  ;;  %v9541_v26 = vpop.permute.xlu1 %1572 }
 0x106   : > { %1203 = vrot.lane.b32.xlu0 %v1189_v40, %s12710_s16  ;;  %v7884_v36 = vpack.c.bf16 %v1738_v33, %v1733_v28  ;;  %v1740_v40 = vld [vmem:[%s12661_s1 + $0x218] sm:$0xff]  ;;  %7883 = vmatprep.subr.bf16.mxu0 %v7882_v25  ;;  %v8062_v25 = vpack.c.bf16 %v1760_v23, %v1755_v22  ;;  %12838 = vst [vmem:[#allocation30_spill] sm:$0xff] %v9541_v26  ;;  %v9543_v28 = vpop.permute.xlu0 %1470  ;;  %v1786_v22 = vld [vmem:[%s12661_s1 + $0x388] sm:$0xff] }
 0x107   : > { %v8054_v41 = vpack.c.bf16 %v1740_v40, %v1735_v39  ;;  %8053 = vmatprep.subr.bf16.mxu1 %v8052_v35  ;;  %v1764_v33 = vld [vmem:[%s12661_s1 + $0x2d8] sm:$0xff]  ;;  %v1769_v35 = vld [vmem:[%s12661_s1 + $0x300] sm:$0xff]  ;;  %v1771_v40 = vld [vmem:[%s12661_s1 + $0x310] sm:$0xff] }
 0x108   : > { %7885 = vmatpush1.bf16.msra.mxu0 %v7884_v36  ;;  %v1766_v36 = vld [vmem:[%s12661_s1 + $0x2e8] sm:$0xff]  ;;  %v7894_v39 = vpack.c.bf16 %v1769_v35, %v1764_v33  ;;  %v1788_v33 = vld [vmem:[%s12661_s1 + $0x398] sm:$0xff] }
 0x109   : > { %1199 = vrot.lane.b32.xlu1 %v1187_v61, %s12710_s16  ;;  %8055 = vmatpush1.bf16.msra.mxu1 %v8054_v41  ;;  %v7888_v61 = vpack.c.bf16 %v1748_v57, %v1743_v56  ;;  %v1763_v41 = vld [vmem:[%s12661_s1 + $0x2d0] sm:$0xff]  ;;  %v8064_v45 = vpack.c.bf16 %v1771_v40, %v1766_v36  ;;  %v1774_v56 = vld [vmem:[%s12661_s1 + $0x328] sm:$0xff]  ;;  %s12842_s16 = smov 127  }
 0x10a   : > { %1247 = vrot.lane.b32.xlu0 %v1234_v3, %s12712_s0  ;;  %7887 = vmatprep.subr.bf16.mxu0 %v7886_v51  ;;  %v8058_v3 = vpack.c.bf16 %v1750_v0, %v1745_v63  ;;  %v1372_v51 = vmul.f32 %v9402_v53, %v9117_v32  ;;  %v1779_v57 = vld [vmem:[%s12661_s1 + $0x350] sm:$0xff]  ;;  %v1781_v0 = vld [vmem:[%s12661_s1 + $0x360] sm:$0xff]  ;;  %v1790_v40 = vld [vmem:[%s12661_s1 + $0x3a8] sm:$0xff] }
 0x10b   : > { %8057 = vmatprep.subr.bf16.mxu1 %v8056_v60  ;;  %v1776_v60 = vld [vmem:[%s12661_s1 + $0x338] sm:$0xff]  ;;  %v7898_v63 = vpack.c.bf16 %v1779_v57, %v1774_v56  ;;  %v1801_v57 = vld [vmem:[%s12661_s1 + $0x400] sm:$0xff] }
 0x10c   : > { %7889 = vmatpush1.bf16.msra.mxu0 %v7888_v61  ;;  %v1373_v61 = vmul.f32 %v9402_v53, %v9114_v31 }
 0x10d   : > { %1249 = vrot.lane.b32.xlu1 %v1235_v19, %s12712_s0  ;;  %8059 = vmatpush1.bf16.msra.mxu1 %v8058_v3  ;;  %v8060_v19 = vpack.c.bf16 %v1761_v11, %v1756_v8  ;;  %v9590_v3 = vpop.permute.xlu0 %1623  ;;  %v1775_v8 = vld [vmem:[%s12661_s1 + $0x330] sm:$0xff]  ;;  %v1780_v11 = vld [vmem:[%s12661_s1 + $0x358] sm:$0xff] }
 0x10e   : > { %1245 = vrot.lane.b32.xlu0 %v1233_v24, %s12712_s0  ;;  %s12716_s0 = smov 41   ;;  %v1325_v24 = vmul.f32 %v9475_v44, %v9127_v37  ;;  %7891 = vmatprep.subr.bf16.mxu0 %v7890_v9  ;;  %12839 = vst [vmem:[#allocation31_spill] sm:$0xff] %v9590_v3  ;;  %v7900_v9 = vpack.c.bf16 %v1778_v7, %v1773_v5  ;;  %v1800_v5 = vld [vmem:[%s12661_s1 + $0x3f8] sm:$0xff] }
 0x10f   : > { %8061 = vmatprep.subr.bf16.mxu1 %v8060_v19  ;;  %v8070_v15 = vpack.c.bf16 %v1780_v11, %v1775_v8  ;;  %v1784_v19 = vld [vmem:[%s12661_s1 + $0x378] sm:$0xff]  ;;  %v1474_v8 = vmul.f32 %v9543_v28, %v9117_v32 }
 0x110   : > { %7893 = vmatpush1.bf16.msra.mxu0 %v7892_v21  ;;  %v1789_v21 = vld [vmem:[%s12661_s1 + $0x3a0] sm:$0xff]  ;;  %v1804_v11 = vld [vmem:[%s12661_s1 + $0x418] sm:$0xff] }
 0x111   : > { %1293 = vrot.lane.b32.xlu1 %v1280_v43, %s12714_s17  ;;  %8063 = vmatpush1.bf16.msra.mxu1 %v8062_v25  ;;  %v1768_v43 = vld [vmem:[%s12661_s1 + $0x2f8] sm:$0xff]  ;;  %v7902_v23 = vpack.c.bf16 %v1789_v21, %v1784_v19  ;;  %v1783_v25 = vld [vmem:[%s12661_s1 + $0x370] sm:$0xff]  ;;  %v1475_v19 = vmul.f32 %v9543_v28, %v9114_v31 }
 0x112   : > { %1295 = vrot.lane.b32.xlu0 %v1281_v49, %s12714_s17  ;;  %v7896_v47 = vpack.c.bf16 %v1768_v43, %v1763_v41  ;;  %v1770_v49 = vld [vmem:[%s12661_s1 + $0x308] sm:$0xff]  ;;  %7895 = vmatprep.subr.bf16.mxu0 %v7894_v39  ;;  %v7904_v36 = vpack.c.bf16 %v1788_v33, %v1783_v25  ;;  %v1785_v39 = vld [vmem:[%s12661_s1 + $0x380] sm:$0xff]  ;;  %v1808_v25 = vld [vmem:[%s12661_s1 + $0x438] sm:$0xff] }
 0x113   : > { %v8066_v55 = vpack.c.bf16 %v1770_v49, %v1765_v48  ;;  %8065 = vmatprep.subr.bf16.mxu1 %v8064_v45  ;;  %v1424_v45 = vmul.f32 %v9443_v20, %v9114_v31  ;;  %v1422_v48 = vmul.f32 %v9443_v20, %v9127_v37  ;;  %v1794_v49 = vld [vmem:[%s12661_s1 + $0x3c8] sm:$0xff]  ;;  %v1805_v33 = vld [vmem:[%s12661_s1 + $0x420] sm:$0xff] }
 0x114   : > { %7897 = vmatpush1.bf16.msra.mxu0 %v7896_v47  ;;  %v8074_v47 = vpack.c.bf16 %v1790_v40, %v1785_v39  ;;  %v1473_v40 = vmul.f32 %v9543_v28, %v9127_v37 }
 0x115   : > { %1291 = vrot.lane.b32.xlu1 %v1279_v4, %s12714_s17  ;;  %8067 = vmatpush1.bf16.msra.mxu1 %v8066_v55  ;;  %v8068_v4 = vpack.c.bf16 %v1781_v0, %v1776_v60  ;;  %s12720_s17 = smov 16   ;;  %v1796_v55 = vld [vmem:[%s12661_s1 + $0x3d8] sm:$0xff]  ;;  %v1793_v60 = vld [vmem:[%s12661_s1 + $0x3c0] sm:$0xff] }
 0x116   : > { %1339 = vrot.lane.b32.xlu0 %v1326_v1, %s12716_s0  ;;  %v9588_v1 = vpop.permute.xlu1 %493  ;;  %7899 = vmatprep.subr.bf16.mxu0 %v7898_v63  ;;  %v8076_v63 = vpack.c.bf16 %v1801_v57, %v1796_v55  ;;  %v1816_v55 = vld [vmem:[%s12661_s1 + $0x478] sm:$0xff]  ;;  %v1821_v57 = vld [vmem:[%s12661_s1 + $0x4a0] sm:$0xff] }
 0x117   : > { %8069 = vmatprep.subr.bf16.mxu1 %v8068_v4  ;;  %v1795_v4 = vld [vmem:[%s12661_s1 + $0x3d0] sm:$0xff] }
 0x118   : > { %7901 = vmatpush1.bf16.msra.mxu0 %v7900_v9  ;;  %v8078_v9 = vpack.c.bf16 %v1800_v5, %v1795_v4  ;;  %v1815_v4 = vld [vmem:[%s12661_s1 + $0x470] sm:$0xff]  ;;  %v1820_v5 = vld [vmem:[%s12661_s1 + $0x498] sm:$0xff] }
 0x119   : > { %1341 = vrot.lane.b32.xlu1 %v1327_v16, %s12716_s0  ;;  %v1423_v16 = vmul.f32 %v9443_v20, %v9117_v32  ;;  %8071 = vmatpush1.bf16.msra.mxu1 %v8070_v15  ;;  %v1806_v15 = vld [vmem:[%s12661_s1 + $0x428] sm:$0xff] }
 0x11a   : > { %1337 = vrot.lane.b32.xlu0 %v1325_v24, %s12716_s0  ;;  %v1791_v24 = vld [vmem:[%s12661_s1 + $0x3b0] sm:$0xff]  ;;  %7903 = vmatprep.subr.bf16.mxu0 %v7902_v23  ;;  %s12843_s0 = smov 126  }
 0x11b   : > { %v8072_v35 = vpack.c.bf16 %v1791_v24, %v1786_v22  ;;  %v1811_v22 = vld [vmem:[%s12661_s1 + $0x450] sm:$0xff] }
 0x11c   : > { %7905 = vmatpush1.bf16.msra.mxu0 %v7904_v36  ;;  %v8080_v23 = vpack.c.bf16 %v1811_v22, %v1806_v15  ;;  %v1803_v24 = vld [vmem:[%s12661_s1 + $0x410] sm:$0xff]  ;;  %v1810_v36 = vld [vmem:[%s12661_s1 + $0x448] sm:$0xff]  ;;  %v1524_v15 = vmul.f32 %v9498_v59, %v9127_v37 }
 0x11d   : > { %1385 = vrot.lane.b32.xlu1 %v1372_v51, %s12718_s21  ;;  %8073 = vmatprep.subr.bf16.mxu1 %v8072_v35  ;;  %v1799_v51 = vld [vmem:[%s12661_s1 + $0x3f0] sm:$0xff]  ;;  %v7912_v35 = vpack.c.bf16 %v1808_v25, %v1803_v24  ;;  %v1826_v22 = vld [vmem:[%s12661_s1 + $0x4c8] sm:$0xff] }
 0x11e   : > { %1387 = vrot.lane.b32.xlu0 %v1373_v61, %s12718_s21  ;;  %8075 = vmatpush1.bf16.msra.mxu1 %v8074_v47  ;;  %v7906_v56 = vpack.c.bf16 %v1799_v51, %v1794_v49  ;;  %v1798_v61 = vld [vmem:[%s12661_s1 + $0x3e8] sm:$0xff]  ;;  %v1819_v51 = vld [vmem:[%s12661_s1 + $0x490] sm:$0xff] }
 0x11f   : > { %v7908_v0 = vpack.c.bf16 %v1798_v61, %v1793_v60  ;;  %8077 = vmatprep.subr.bf16.mxu1 %v8076_v63  ;;  %v1814_v49 = vld [vmem:[%s12661_s1 + $0x468] sm:$0xff]  ;;  %v1813_v60 = vld [vmem:[%s12661_s1 + $0x460] sm:$0xff]  ;;  %v8084_v63 = vpack.c.bf16 %v1821_v57, %v1816_v55  ;;  %v1831_v24 = vld [vmem:[%s12661_s1 + $0x4f0] sm:$0xff] }
 0x120   : > { %7907 = vmatprep.subr.bf16.mxu0 %v7906_v56  ;;  %v7914_v56 = vpack.c.bf16 %v1819_v51, %v1814_v49  ;;  %v1818_v61 = vld [vmem:[%s12661_s1 + $0x488] sm:$0xff]  ;;  %v1823_v25 = vld [vmem:[%s12661_s1 + $0x4b0] sm:$0xff]  ;;  %v1576_v49 = vmul.f32 %v9541_v26, %v9117_v32 }
 0x121   : > { %1383 = vrot.lane.b32.xlu1 %v1371_v12, %s12718_s21  ;;  %v1809_v12 = vld [vmem:[%s12661_s1 + $0x440] sm:$0xff]  ;;  %7909 = vmatpush1.bf16.msra.mxu0 %v7908_v0  ;;  %s12730_s21 = smov 14   ;;  %v7916_v0 = vpack.c.bf16 %v1818_v61, %v1813_v60  ;;  %v1575_v60 = vmul.f32 %v9541_v26, %v9127_v37  ;;  %v511_v61 = vsub.s32 3, %v9101_v27 }
 0x122   : > { %1438 = vrot.lane.b32.xlu0 %v1423_v16, %s12720_s17  ;;  %v7910_v21 = vpack.c.bf16 %v1809_v12, %v1804_v11  ;;  %8079 = vmatpush1.bf16.msra.mxu1 %v8078_v9  ;;  %v1526_v9 = vmul.f32 %v9498_v59, %v9114_v31  ;;  %v8086_v11 = vpack.c.bf16 %v1820_v5, %v1815_v4  ;;  %v515_v4 = vsub.s32 4, %v9101_v27 }
 0x123   : > { %v9635_v41 = vpop.permute.xlu0 %559  ;;  %v9637_v43 = vpop.permute.xlu1 %557  ;;  %8081 = vmatprep.subr.bf16.mxu1 %v8080_v23 }
 0x124   : > { %12840 = vst [vmem:[#allocation32_spill] sm:$0xff] %v9635_v41  ;;  %7911 = vmatprep.subr.bf16.mxu0 %v7910_v21  ;;  %v1829_v21 = vld [vmem:[%s12661_s1 + $0x4e0] sm:$0xff] }
 0x125   : > { %1440 = vrot.lane.b32.xlu1 %v1424_v45, %s12720_s17  ;;  %v8082_v45 = vpack.c.bf16 %v1810_v36, %v1805_v33  ;;  %7913 = vmatpush1.bf16.msra.mxu0 %v7912_v35  ;;  %v1828_v33 = vld [vmem:[%s12661_s1 + $0x4d8] sm:$0xff]  ;;  %v8088_v35 = vpack.c.bf16 %v1831_v24, %v1826_v22 }
 0x126   : > { %1436 = vrot.lane.b32.xlu0 %v1422_v48, %s12720_s17  ;;  %v1525_v48 = vmul.f32 %v9498_v59, %v9117_v32  ;;  %7915 = vmatprep.subr.bf16.mxu0 %v7914_v56  ;;  %v7920_v36 = vpack.c.bf16 %v1828_v33, %v1823_v25  ;;  %v1577_v56 = vmul.f32 %v9541_v26, %v9114_v31  ;;  %s12844_s17 = smov 125  }
 0x127   : > { %v9669_v7 = vpop.permute.xlu1 %555  ;;  %8083 = vmatpush1.bf16.msra.mxu1 %v8082_v45  ;;  %v1830_v45 = vld [vmem:[%s12661_s1 + $0x4e8] sm:$0xff] }
 0x128   : > { %v9682_v16 = vpop.permute.xlu0 %603  ;;  %8085 = vmatprep.subr.bf16.mxu1 %v8084_v63 }
 0x129   : > { %1489 = vrot.lane.b32.xlu1 %v1474_v8, %s12722_s24  ;;  %7917 = vmatpush1.bf16.msra.mxu0 %v7916_v0  ;;  %v1627_v0 = vmul.f32 %v9590_v3, %v9117_v32 }
 0x12a   : > { %1491 = vrot.lane.b32.xlu0 %v1475_v19, %s12722_s24  ;;  %v1824_v19 = vld [vmem:[%s12661_s1 + $0x4b8] sm:$0xff] }
 0x12b   : > { %v9703_v39 = vpop.permute.xlu1 %605  ;;  %8087 = vmatpush1.bf16.msra.mxu1 %v8086_v11  ;;  %v7918_v23 = vpack.c.bf16 %v1829_v21, %v1824_v19  ;;  %v9798_v11 = vrot.slane %v9111_v30, %v511_v61  ;;  %v1626_v19 = vmul.f32 %v9590_v3, %v9127_v37  ;;  %v9805_v21 = vrot.slane %v9111_v30, %v515_v4 }
 0x12c   : > { %v9707_v47 = vpop.permute.xlu0 %601  ;;  %8089 = vmatprep.subr.bf16.mxu1 %v8088_v35 }
 0x12d   : > { %1487 = vrot.lane.b32.xlu1 %v1473_v40, %s12722_s24  ;;  %v1825_v40 = vld [vmem:[%s12661_s1 + $0x4c0] sm:$0xff]  ;;  %7919 = vmatprep.subr.bf16.mxu0 %v7918_v23  ;;  %s12728_s24 = smov 13   ;;  %12841 = vst [vmem:[#allocation33_spill] sm:$0xff] %v9805_v21  ;;  %v546_v23 = vmul.f32 %v9120_v34, %v9798_v11  ;;  %v547_v25 = vmul.f32 %v9120_v34, %v9805_v21 }
 0x12e   : > { %1540 = vrot.lane.b32.xlu0 %v1525_v48, %s12730_s21  ;;  %v8090_v51 = vpack.c.bf16 %v1830_v45, %v1825_v40  ;;  %7921 = vmatpush1.bf16.msra.mxu0 %v7920_v36  ;;  %v592_v33 = vmul.f32 %v9131_v38, %v9798_v11  ;;  %v593_v36 = vmul.f32 %v9131_v38, %v9805_v21 }
 0x12f   : > { %v9737_v8 = vpop.permute.xlu1 %649  ;;  %v638_v45 = vmul.f32 %v9140_v42, %v9798_v11  ;;  %v915_v26 = vmul.f32 %v9207_v2, %v9805_v21 }
 0x130   : > { %v9741_v12 = vpop.permute.xlu0 %651  ;;  %8091 = vmatpush1.bf16.msra.mxu1 %v8090_v51  ;;  %v639_v51 = vmul.f32 %v9140_v42, %v9805_v21 }
 0x131   : > { %1542 = vrot.lane.b32.xlu1 %v1526_v9, %s12730_s21  ;;  %v1628_v9 = vmul.f32 %v9590_v3, %v9114_v31  ;;  %v869_v31 = vmul.f32 %v9195_v62, %v9805_v21  ;;  %v914_v3 = vmul.f32 %v9207_v2, %v9798_v11 }
 0x132   : > { %1538 = vrot.lane.b32.xlu0 %v1524_v15, %s12730_s21  ;;  %s12857_s21 = smov 44  }
 0x133   : > { %v9771_v48 = vpop.permute.xlu1 %647 }
 0x134   : > { %v9775_v55 = vpop.permute.xlu0 %695 }
 0x135   : > { %1591 = vrot.lane.b32.xlu1 %v1576_v49, %s12728_s24 }
 0x136   : > { %1593 = vrot.lane.b32.xlu0 %v1577_v56, %s12728_s24 }
 0x137   : > { %v9781_v57 = vpop.permute.xlu1 %697 }
 0x138   : > { %v9786_v63 = vpop.permute.xlu0 %693 }
 0x139   : > { %1589 = vrot.lane.b32.xlu1 %v1575_v60, %s12728_s24  ;;  %v684_v60 = vmul.f32 %v9151_v46, %v9798_v11  ;;  %s12860_s24 = smov 43  }
 0x13a   : > { %1642 = vrot.lane.b32.xlu0 %v1627_v0, %s12725_s18  ;;  %v685_v0 = vmul.f32 %v9151_v46, %v9805_v21 }
 0x13b   : > { %v9793_v5 = vpop.permute.xlu1 %741 }
 0x13c   : > { %v9800_v15 = vpop.permute.xlu0 %743 }
 0x13d   : > { %1644 = vrot.lane.b32.xlu1 %v1628_v9, %s12725_s18  ;;  %v730_v9 = vmul.f32 %v9163_v50, %v9798_v11 }
 0x13e   : > { %1640 = vrot.lane.b32.xlu0 %v1626_v19, %s12725_s18  ;;  %s12863_s18 = smov 42  }
 0x13f   : > { %v9809_v22 = vpop.permute.xlu1 %739 }
 0x140   : > { %v9813_v24 = vpop.permute.xlu0 %787 }
 0x141   : > { %561 = vrot.lane.b32.xlu1 %v546_v23, %s12842_s16  ;;  %v731_v23 = vmul.f32 %v9163_v50, %v9805_v21  ;;  %v1841_v50 = vld [vmem:[%s12661_s1 + $0x540] sm:$0xff] }
 0x142   : > { %563 = vrot.lane.b32.xlu0 %v547_v25, %s12842_s16 }
 0x143   : > { %v9819_v30 = vpop.permute.xlu1 %789 }
 0x144   : > { %v9823_v35 = vpop.permute.xlu0 %785 }
 0x145   : > { %607 = vrot.lane.b32.xlu1 %v592_v33, %s12843_s0  ;;  %v776_v33 = vmul.f32 %v9173_v54, %v9798_v11 }
 0x146   : > { %609 = vrot.lane.b32.xlu0 %v593_v36, %s12843_s0 }
 0x147   : > { %v9829_v40 = vpop.permute.xlu1 %833 }
 0x148   : > { %v9833_v49 = vpop.permute.xlu0 %835 }
 0x149   : > { %653 = vrot.lane.b32.xlu1 %v638_v45, %s12844_s17  ;;  %v777_v45 = vmul.f32 %v9173_v54, %v9805_v21  ;;  %v1834_v54 = vld [vmem:[%s12661_s1 + $0x508] sm:$0xff] }
 0x14a   : > { %655 = vrot.lane.b32.xlu0 %v639_v51, %s12844_s17 }
 0x14b   : > { %v9839_v56 = vpop.permute.xlu1 %831 }
 0x14c   : > { %v9843_v61 = vpop.permute.xlu0 %879 }
 0x14d   : > { %699 = vrot.lane.b32.xlu1 %v684_v60, %s12845_s5  ;;  %v822_v60 = vmul.f32 %v9184_v58, %v9798_v11 }
 0x14e   : > { %701 = vrot.lane.b32.xlu0 %v685_v0, %s12845_s5 }
 0x14f   : > { %v9849_v4 = vpop.permute.xlu1 %881 }
 0x150   : > { %v9853_v19 = vpop.permute.xlu0 %877 }
 0x151   : > { %745 = vrot.lane.b32.xlu1 %v730_v9, %s12846_s26  ;;  %v823_v9 = vmul.f32 %v9184_v58, %v9805_v21 }
 0x152   : > { %747 = vrot.lane.b32.xlu0 %v731_v23, %s12846_s26 }
 0x153   : > { %v9859_v25 = vpop.permute.xlu1 %925 }
 0x154   : > { %v9863_v36 = vpop.permute.xlu0 %927 }
 0x155   : > { %791 = vrot.lane.b32.xlu1 %v776_v33, %s12847_s20  ;;  %v868_v33 = vmul.f32 %v9195_v62, %v9798_v11 }
 0x156   : > { %793 = vrot.lane.b32.xlu0 %v777_v45, %s12847_s20 }
 0x157   : > { %v9869_v51 = vpop.permute.xlu1 %923 }
 0x158   : > { %v9873_v0 = vpop.permute.xlu0 %971 }
 0x159   : > { %837 = vrot.lane.b32.xlu1 %v822_v60, %s12848_s29  ;;  %v1839_v60 = vld [vmem:[%s12661_s1 + $0x530] sm:$0xff] }
 0x15a   : > { %839 = vrot.lane.b32.xlu0 %v823_v9, %s12848_s29  ;;  %v1836_v9 = vld [vmem:[%s12661_s1 + $0x518] sm:$0xff]  ;;  %v7922_v58 = vpack.c.bf16 %v1839_v60, %v1834_v54 }
 0x15b   : > { %v9879_v23 = vpop.permute.xlu1 %973  ;;  %v8092_v62 = vpack.c.bf16 %v1841_v50, %v1836_v9  ;;  %v1052_v9 = vmul.f32 %v9239_v14, %v9798_v11 }
 0x15c   : > { %v9883_v45 = vpop.permute.xlu0 %969  ;;  %7923 = vmatprep.subr.bf16.mxu0 %v7922_v58  ;;  %v961_v58 = vmul.f32 %v9217_v6, %v9805_v21 }
 0x15d   : > { %883 = vrot.lane.b32.xlu1 %v868_v33, %s12849_s28  ;;  %8093 = vmatprep.subr.bf16.mxu1 %v8092_v62  ;;  %v1006_v62 = vmul.f32 %v9229_v10, %v9798_v11 }
 0x15e   : > { %885 = vrot.lane.b32.xlu0 %v869_v31, %s12849_s28  ;;  %v960_v31 = vmul.f32 %v9217_v6, %v9798_v11 }
 0x15f   : > { %v9901_v46 = vpop.permute.xlu1 %1017 }
 0x160   : > { %v9905_v42 = vpop.permute.xlu0 %1019 }
 0x161   : > { %929 = vrot.lane.b32.xlu1 %v914_v3, %s12850_s14  ;;  %v1007_v3 = vmul.f32 %v9229_v10, %v9805_v21  ;;  %v1099_v10 = vmul.f32 %v9247_v17, %v9805_v21 }
 0x162   : > { %931 = vrot.lane.b32.xlu0 %v915_v26, %s12850_s14 }
 0x163   : > { %v9911_v54 = vpop.permute.xlu1 %1015 }
 0x164   : > { %v9915_v50 = vpop.permute.xlu0 %1063 }
 0x165   : > { %975 = vrot.lane.b32.xlu1 %v960_v31, %s12851_s12 }
 0x166   : > { %977 = vrot.lane.b32.xlu0 %v961_v58, %s12851_s12  ;;  %v1053_v58 = vmul.f32 %v9239_v14, %v9805_v21  ;;  %v1145_v14 = vmul.f32 %v9276_v29, %v9805_v21 }
 0x167   : > { %v9921_v33 = vpop.permute.xlu1 %1065 }
 0x168   : > { %v9925_v26 = vpop.permute.xlu0 %1061 }
 0x169   : > { %1021 = vrot.lane.b32.xlu1 %v1006_v62, %s12852_s15  ;;  %v1098_v62 = vmul.f32 %v9247_v17, %v9798_v11  ;;  %v1191_v17 = vmul.f32 %v9345_v13, %v9805_v21 }
 0x16a   : > { %1023 = vrot.lane.b32.xlu0 %v1007_v3, %s12852_s15 }
 0x16b   : > { %v9931_v60 = vpop.permute.xlu1 %1109 }
 0x16c   : > { %v9935_v31 = vpop.permute.xlu0 %1111 }
 0x16d   : > { %1067 = vrot.lane.b32.xlu1 %v1052_v9, %s12832_s23  ;;  %v1144_v9 = vmul.f32 %v9276_v29, %v9798_v11  ;;  %v1237_v29 = vmul.f32 %v9306_v52, %v9805_v21 }
 0x16e   : > { %1069 = vrot.lane.b32.xlu0 %v1053_v58, %s12832_s23 }
 0x16f   : > { %v9941_v6 = vpop.permute.xlu1 %1107 }
 0x170   : > { %v9945_v3 = vpop.permute.xlu0 %1155 }
 0x171   : > { %12853 = vst [vmem:[#allocation34_spill] sm:$0xff] %v9945_v3  ;;  %1113 = vrot.lane.b32.xlu1 %v1098_v62, %s12835_s27  ;;  %v1190_v62 = vmul.f32 %v9345_v13, %v9798_v11 }
 0x172   : > { %1115 = vrot.lane.b32.xlu0 %v1099_v10, %s12835_s27 }
 0x173   : > { %v9951_v2 = vpop.permute.xlu1 %1157 }
 0x174   : > { %v9955_v58 = vpop.permute.xlu0 %1153 }
 0x175   : > { %12854 = vst [vmem:[#allocation35_spill] sm:$0xff] %v9955_v58  ;;  %1159 = vrot.lane.b32.xlu1 %v1144_v9, %s12855_s22  ;;  %v1236_v9 = vmul.f32 %v9306_v52, %v9798_v11  ;;  %v1283_v52 = vmul.f32 %v9349_v18, %v9805_v21 }
 0x176   : > { %1161 = vrot.lane.b32.xlu0 %v1145_v14, %s12855_s22 }
 0x177   : > { %v9961_v3 = vpop.permute.xlu1 %1201 }
 0x178   : > { %v9965_v10 = vpop.permute.xlu0 %1203 }
 0x179   : > { %12856 = vst [vmem:[#allocation36_spill] sm:$0xff] %v9965_v10  ;;  %1205 = vrot.lane.b32.xlu1 %v1190_v62, %s12857_s21  ;;  %v569_v62 = vsel %vm567_vm0, %v9637_v43, %v9635_v41  ;;  %v615_v41 = vsel %vm613_vm1, %v9682_v16, %v9703_v39 }
 0x17a   : > { %1207 = vrot.lane.b32.xlu0 %v1191_v17, %s12857_s21  ;;  %v1282_v17 = vmul.f32 %v9349_v18, %v9798_v11 }
 0x17b   : > { %v9971_v58 = vpop.permute.xlu1 %1199 }
 0x17c   : > { %12858 = vst [vmem:[#allocation37_spill] sm:$0xff] %v9971_v58  ;;  %v9975_v14 = vpop.permute.xlu0 %1247 }
 0x17d   : > { %12859 = vst [vmem:[#allocation38_spill] sm:$0xff] %v9975_v14  ;;  %1251 = vrot.lane.b32.xlu1 %v1236_v9, %s12860_s24  ;;  %v528_v9 = vmul.f32 %v9117_v32, %v9588_v1  ;;  %v527_v14 = vmul.f32 %v9127_v37, %v9588_v1  ;;  %v614_v32 = vsel %vm613_vm1, %v9707_v47, %v9682_v16 }
 0x17e   : > { %1253 = vrot.lane.b32.xlu0 %v1237_v29, %s12860_s24  ;;  %v568_v29 = vsel %vm567_vm0, %v9669_v7, %v9637_v43  ;;  %v1328_v43 = vmul.f32 %v9475_v44, %v9798_v11  ;;  %v661_v37 = vsel %vm659_vm2, %v9737_v8, %v9741_v12  ;;  %v660_v16 = vsel %vm659_vm2, %v9771_v48, %v9737_v8 }
 0x17f   : > { %v9981_v13 = vpop.permute.xlu1 %1249  ;;  %v580_v18 = vadd.f32 %v569_v62, %v528_v9  ;;  %v579_v7 = vadd.f32 %v568_v29, %v527_v14  ;;  %v707_v14 = vsel %vm705_vm3, %v9775_v55, %v9781_v57  ;;  %v706_v29 = vsel %vm705_vm3, %v9786_v63, %v9775_v55 }
 0x180   : > { %12861 = vst [vmem:[#allocation39_spill] sm:$0xff] %v9981_v13  ;;  %v9988_v58 = vpop.permute.xlu0 %1245  ;;  %v753_v48 = vsel %vm751_vm4, %v9793_v5, %v9800_v15  ;;  %v752_v55 = vsel %vm751_vm4, %v9809_v22, %v9793_v5  ;;  %v1425_v22 = vmul.f32 %v9443_v20, %v9798_v11 }
 0x181   : > { %12862 = vst [vmem:[#allocation40_spill] sm:$0xff] %v9988_v58  ;;  %1297 = vrot.lane.b32.xlu1 %v1282_v17, %s12863_s18  ;;  %v626_v62 = vadd.f32 %v615_v41, %v580_v18  ;;  %v625_v47 = vadd.f32 %v614_v32, %v579_v7  ;;  %v1374_v41 = vmul.f32 %v9402_v53, %v9798_v11 }
 0x182   : > { %1299 = vrot.lane.b32.xlu0 %v1283_v52, %s12863_s18  ;;  %v1329_v52 = vmul.f32 %v9475_v44, %v9805_v21 }
 0x183   : > { %v10007_v58 = vpop.permute.xlu1 %1293  ;;  %v672_v9 = vadd.f32 %v661_v37, %v626_v62  ;;  %v671_v8 = vadd.f32 %v660_v16, %v625_v47  ;;  %v799_v37 = vsel %vm797_vm5, %v9813_v24, %v9819_v30  ;;  %v798_v16 = vsel %vm797_vm5, %v9823_v35, %v9813_v24 }
 0x184   : > { %v10014_v17 = vpop.permute.xlu0 %1295  ;;  %v844_v24 = vsel %vm843_vm6, %v9839_v56, %v9829_v40 }
 0x185   : > { %12864 = vst [vmem:[#allocation41_spill] sm:$0xff] %v10014_v17  ;;  %1343 = vrot.lane.b32.xlu1 %v1328_v43, %s12865_s25  ;;  %v1375_v43 = vmul.f32 %v9402_v53, %v9805_v21  ;;  %v718_v7 = vadd.f32 %v707_v14, %v672_v9  ;;  %v717_v63 = vadd.f32 %v706_v29, %v671_v8 }
 0x186   : > { %1345 = vrot.lane.b32.xlu0 %v1329_v52, %s12865_s25  ;;  %v519_v52 = vsub.s32 5, %v9101_v27  ;;  %v845_v14 = vsel %vm843_vm6, %v9829_v40, %v9833_v49  ;;  %v1426_v29 = vmul.f32 %v9443_v20, %v9805_v21  ;;  %v891_v8 = vsel %vm12794_vm7, %v9843_v61, %v9849_v4 }
 0x187   : > { %v10029_v18 = vpop.permute.xlu1 %1291  ;;  %v764_v62 = vadd.f32 %v753_v48, %v718_v7  ;;  %v763_v47 = vadd.f32 %v752_v55, %v717_v63  ;;  %v10072_v48 = vld [vmem:[%s9106_s30] sm:$0x7f]  ;;  %v890_v40 = vsel %vm12794_vm7, %v9853_v19, %v9843_v61  ;;  %v1476_v55 = vmul.f32 %v9543_v28, %v9798_v11  ;;  %s12871_s30 = smov 15  }
 0x188   : > { %v10036_v32 = vpop.permute.xlu0 %1339  ;;  %v936_v61 = vsel %vm12792_vm8, %v9869_v51, %v9859_v25 }
 0x189   : > { %1389 = vrot.lane.b32.xlu1 %v1374_v41, %s12866_s19  ;;  %v810_v41 = vadd.f32 %v799_v37, %v764_v62  ;;  %v809_v35 = vadd.f32 %v798_v16, %v763_v47  ;;  %v937_v37 = vsel %vm12792_vm8, %v9859_v25, %v9863_v36 }
 0x18a   : > { %1391 = vrot.lane.b32.xlu0 %v1375_v43, %s12866_s19  ;;  %v10075_v43 = vrot.slane %v10072_v48, %v519_v52  ;;  %v1477_v52 = vmul.f32 %v9543_v28, %v9805_v21 }
 0x18b   : > { %v10052_v5 = vpop.permute.xlu1 %1341  ;;  %v856_v7 = vadd.f32 %v845_v14, %v810_v41  ;;  %v855_v63 = vadd.f32 %v844_v24, %v809_v35  ;;  %v982_v14 = vsel %vm12790_vm9, %v9883_v45, %v9873_v0  ;;  %v1029_v41 = vsel %vm12791_vm10, %v9901_v46, %v9905_v42 }
 0x18c   : > { %12867 = vst [vmem:[#allocation42_spill] sm:$0xff] %v10052_v5  ;;  %v10059_v9 = vpop.permute.xlu0 %1337  ;;  %12869 = vst [vmem:[#allocation43_spill] sm:$0xff] %v10075_v43  ;;  %v548_v25 = vmul.f32 %v9120_v34, %v10075_v43  ;;  %v1527_v35 = vmul.f32 %v9498_v59, %v9798_v11  ;;  %v1075_v34 = vsel %vm12793_vm11, %v9915_v50, %v9921_v33 }
 0x18d   : > { %1442 = vrot.lane.b32.xlu1 %v1425_v22, %s12868_s13  ;;  %v902_v16 = vadd.f32 %v891_v8, %v856_v7  ;;  %v901_v19 = vadd.f32 %v890_v40, %v855_v63  ;;  %v983_v22 = vsel %vm12790_vm9, %v9873_v0, %v9879_v23  ;;  %v1028_v0 = vsel %vm12791_vm10, %v9911_v54, %v9901_v46 }
 0x18e   : > { %1444 = vrot.lane.b32.xlu0 %v1426_v29, %s12868_s13  ;;  %v1074_v40 = vsel %vm12793_vm11, %v9925_v26, %v9915_v50  ;;  %v1528_v46 = vmul.f32 %v9498_v59, %v9805_v21  ;;  %v1121_v63 = vsel %vm12761_vm12, %v9931_v60, %v9935_v31  ;;  %v1120_v50 = vsel %vm12761_vm12, %v9941_v6, %v9931_v60 }
 0x18f   : > { %v10080_v56 = vpop.permute.xlu1 %1385  ;;  %v948_v47 = vadd.f32 %v937_v37, %v902_v16  ;;  %v947_v51 = vadd.f32 %v936_v61, %v901_v19  ;;  %v12874_v61 = vld [vmem:[#allocation34_spill] sm:$0xff]  ;;  %vm12765_vm12 = vcmask 334848  }
 0x190   : > { %v10087_v62 = vpop.permute.xlu0 %1387  ;;  %v1167_v19 = vsel %vm12759_vm13, %v12874_v61, %v9951_v2 }
 0x191   : > { %12870 = vst [vmem:[#allocation44_spill] sm:$0xff] %v10087_v62  ;;  %1493 = vrot.lane.b32.xlu1 %v1476_v55, %s12871_s30  ;;  %v994_v8 = vadd.f32 %v983_v22, %v948_v47  ;;  %v993_v45 = vadd.f32 %v982_v14, %v947_v51  ;;  %v12875_v47 = vld [vmem:[#allocation35_spill] sm:$0xff]  ;;  %v1213_v51 = vsel %vm12764_vm14, %v9961_v3, %v9965_v10 }
 0x192   : > { %1495 = vrot.lane.b32.xlu0 %v1477_v52, %s12871_s30  ;;  %v594_v52 = vmul.f32 %v9131_v38, %v10075_v43  ;;  %v1166_v38 = vsel %vm12759_vm13, %v12875_v47, %v12874_v61  ;;  %vm12766_vm13 = vcmask 343040  }
 0x193   : > { %v10102_v29 = vpop.permute.xlu1 %1383  ;;  %v1040_v7 = vadd.f32 %v1029_v41, %v994_v8  ;;  %v1039_v54 = vadd.f32 %v1028_v0, %v993_v45  ;;  %v12878_v0 = vld [vmem:[#allocation37_spill] sm:$0xff] }
 0x194   : > { %v10109_v24 = vpop.permute.xlu0 %1438  ;;  %v1212_v45 = vsel %vm12764_vm14, %v12878_v0, %v9961_v3  ;;  %vm1450_vm14 = vcmask 130048  }
 0x195   : > { %565 = vrot.lane.b32.xlu1 %v548_v25, %s12842_s16  ;;  %v1086_v16 = vadd.f32 %v1075_v34, %v1040_v7  ;;  %v1085_v26 = vadd.f32 %v1074_v40, %v1039_v54  ;;  %v12876_v25 = vld [vmem:[#allocation30_spill] sm:$0xff]  ;;  %v12881_v54 = vld [vmem:[#allocation40_spill] sm:$0xff] }
 0x196   : > { %1544 = vrot.lane.b32.xlu0 %v1527_v35, %s12872_s10  ;;  %v1578_v6 = vmul.f32 %v12876_v25, %v9798_v11  ;;  %v1579_v35 = vmul.f32 %v12876_v25, %v9805_v21  ;;  %v12880_v7 = vld [vmem:[#allocation38_spill] sm:$0xff] }
 0x197   : > { %v10124_v55 = vpop.permute.xlu1 %1440  ;;  %v1132_v22 = vadd.f32 %v1121_v63, %v1086_v16  ;;  %v1131_v60 = vadd.f32 %v1120_v50, %v1085_v26  ;;  %v1259_v40 = vsel %vm12762_vm15, %v12880_v7, %v9981_v13  ;;  %v1258_v63 = vsel %vm12762_vm15, %v12881_v54, %v12880_v7  ;;  %v12882_v16 = vld [vmem:[#allocation15_spill] sm:$0xff] }
 0x198   : > { %12873 = vst [vmem:[#allocation45_spill] sm:$0xff] %v10124_v55  ;;  %v1437_v37 = vpop.permute.xlu0 %1436  ;;  %v640_v3 = vmul.f32 %v12882_v16, %v10075_v43  ;;  %v1305_v26 = vsel %vm12766_vm13, %v10007_v58, %v10014_v17  ;;  %vm12767_vm15 = vcmask 326656   ;;  %v1983_v17 = vld [vmem:[%s12661_s1 + $0x9b0] sm:$0xff] }
 0x199   : > { %1546 = vrot.lane.b32.xlu1 %v1528_v46, %s12872_s10  ;;  %v1178_v8 = vadd.f32 %v1167_v19, %v1132_v22  ;;  %v1177_v34 = vadd.f32 %v1166_v38, %v1131_v60  ;;  %v12883_v19 = vld [vmem:[#allocation31_spill] sm:$0xff]  ;;  %v1304_v38 = vsel %vm12766_vm13, %v10029_v18, %v10007_v58  ;;  %v1351_v60 = vsel %vm12765_vm12, %v10036_v32, %v10052_v5 }
 0x19a   : > { %611 = vrot.lane.b32.xlu0 %v594_v52, %s12843_s0  ;;  %v1629_v22 = vmul.f32 %v12883_v19, %v9798_v11  ;;  %v1630_v58 = vmul.f32 %v12883_v19, %v9805_v21  ;;  %v1397_v0 = vsel %vm12767_vm15, %v10080_v56, %v10087_v62  ;;  %vm1552_vm13 = vcmask 113664  }
 0x19b   : > { %v1490_v14 = vpop.permute.xlu1 %1489  ;;  %v1224_v46 = vadd.f32 %v1213_v51, %v1178_v8  ;;  %v1223_v50 = vadd.f32 %v1212_v45, %v1177_v34  ;;  %v12886_v34 = vld [vmem:[#allocation16_spill] sm:$0xff] }
 0x19c   : > { %v10149_v41 = vpop.permute.xlu0 %1491  ;;  %v686_v7 = vmul.f32 %v12886_v34, %v10075_v43  ;;  %v12891_v34 = vld [vmem:[#allocation20_spill] sm:$0xff] }
 0x19d   : > { %12877 = vst [vmem:[#allocation34_spill] sm:$0xff] %v10149_v41  ;;  %1595 = vrot.lane.b32.xlu1 %v1578_v6, %s12879_s11  ;;  %v1270_v47 = vadd.f32 %v1259_v40, %v1224_v46  ;;  %v1269_v6 = vadd.f32 %v1258_v63, %v1223_v50  ;;  %v1452_v46 = vsel %vm1450_vm14, %v10109_v24, %v10124_v55  ;;  %v1975_v55 = vld [vmem:[%s12661_s1 + $0x970] sm:$0xff] }
 0x19e   : > { %1597 = vrot.lane.b32.xlu0 %v1579_v35, %s12879_s11  ;;  %v1350_v35 = vsel %vm12765_vm12, %v10059_v9, %v10036_v32  ;;  %v1396_v32 = vsel %vm12767_vm15, %v10102_v29, %v10080_v56  ;;  %vm12768_vm12 = vcmask 121856   ;;  %v1451_v63 = vsel %vm1450_vm14, %v1437_v37, %v10109_v24 }
 0x19f   : > { %v1488_v52 = vpop.permute.xlu1 %1487  ;;  %v1316_v51 = vadd.f32 %v1305_v26, %v1270_v47  ;;  %v1315_v18 = vadd.f32 %v1304_v38, %v1269_v6  ;;  %v1503_v29 = vsel %vm12768_vm12, %v1490_v14, %v10149_v41  ;;  %vm1603_vm15 = vcmask 105472  }
 0x1a0   : > { %v1541_v61 = vpop.permute.xlu0 %1540  ;;  %v1502_v6 = vsel %vm12768_vm12, %v1488_v52, %v1490_v14  ;;  %vm1654_vm12 = vcmask 97280  }
 0x1a1   : > { %657 = vrot.lane.b32.xlu1 %v640_v3, %s12844_s17  ;;  %v1362_v40 = vadd.f32 %v1351_v60, %v1316_v51  ;;  %v1361_v9 = vadd.f32 %v1350_v35, %v1315_v18  ;;  %v12887_v3 = vld [vmem:[#allocation17_spill] sm:$0xff]  ;;  %s8924_s17 = smov 112  }
 0x1a2   : > { %1646 = vrot.lane.b32.xlu0 %v1629_v22, %s12884_s9  ;;  %v732_v50 = vmul.f32 %v12887_v3, %v10075_v43  ;;  %v12889_v22 = vld [vmem:[#allocation18_spill] sm:$0xff]  ;;  %v1835_v3 = vld [vmem:[%s12661_s1 + $0x510] sm:$0xff] }
 0x1a3   : > { %v10182_v8 = vpop.permute.xlu1 %1542  ;;  %v1408_v54 = vadd.f32 %v1397_v0, %v1362_v40  ;;  %v1407_v56 = vadd.f32 %v1396_v32, %v1361_v9  ;;  %v778_v47 = vmul.f32 %v12889_v22, %v10075_v43 }
 0x1a4   : > { %12885 = vst [vmem:[#allocation35_spill] sm:$0xff] %v10182_v8  ;;  %v1539_v45 = vpop.permute.xlu0 %1538  ;;  %v1554_v37 = vsel %vm1552_vm13, %v1541_v61, %v10182_v8  ;;  %v1935_v8 = vld [vmem:[%s12661_s1 + $0x830] sm:$0xff] }
 0x1a5   : > { %1648 = vrot.lane.b32.xlu1 %v1630_v58, %s12884_s9  ;;  %v1464_v38 = vadd.f32 %v1452_v46, %v1408_v54  ;;  %v1463_v24 = vadd.f32 %v1451_v63, %v1407_v56  ;;  %v1553_v51 = vsel %vm1552_vm13, %v1539_v45, %v1541_v61  ;;  %v12890_v58 = vld [vmem:[#allocation19_spill] sm:$0xff]  ;;  %v1833_v61 = vld [vmem:[%s12661_s1 + $0x500] sm:$0xff]  ;;  %v1844_v56 = vld [vmem:[%s12661_s1 + $0x558] sm:$0xff] }
 0x1a6   : > { %703 = vrot.lane.b32.xlu0 %v686_v7, %s12845_s5  ;;  %v824_v18 = vmul.f32 %v12890_v58, %v10075_v43  ;;  %v870_v7 = vmul.f32 %v12891_v34, %v10075_v43  ;;  %v1838_v45 = vld [vmem:[%s12661_s1 + $0x528] sm:$0xff]  ;;  %v12893_v63 = vld [vmem:[#allocation21_spill] sm:$0xff] }
 0x1a7   : > { %v1592_v16 = vpop.permute.xlu1 %1591  ;;  %v1515_v60 = vadd.f32 %v1503_v29, %v1464_v38  ;;  %v1514_v0 = vadd.f32 %v1502_v6, %v1463_v24  ;;  %v12894_v38 = vld [vmem:[#allocation22_spill] sm:$0xff]  ;;  %v7924_v58 = vpack.c.bf16 %v1838_v45, %v1833_v61  ;;  %v1848_v34 = vld [vmem:[%s12661_s1 + $0x578] sm:$0xff] }
 0x1a8   : > { %v10205_v26 = vpop.permute.xlu0 %1593  ;;  %v962_v6 = vmul.f32 %v12894_v38, %v10075_v43  ;;  %v1849_v24 = vld [vmem:[%s12661_s1 + $0x580] sm:$0xff]  ;;  %v1850_v45 = vld [vmem:[%s12661_s1 + $0x588] sm:$0xff] }
 0x1a9   : > { %12888 = vst [vmem:[#allocation30_spill] sm:$0xff] %v10205_v26  ;;  %749 = vrot.lane.b32.xlu1 %v732_v50, %s12846_s26  ;;  %v1605_v14 = vsel %vm1603_vm15, %v1592_v16, %v10205_v26  ;;  %v1566_v40 = vadd.f32 %v1554_v37, %v1515_v60  ;;  %v1565_v9 = vadd.f32 %v1553_v51, %v1514_v0  ;;  %v1840_v50 = vld [vmem:[%s12661_s1 + $0x538] sm:$0xff]  ;;  %v1846_v37 = vld [vmem:[%s12661_s1 + $0x568] sm:$0xff]  ;;  %v1851_v60 = vld [vmem:[%s12661_s1 + $0x590] sm:$0xff]  ;;  %s8921_s26 = smov 116  }
 0x1aa   : > { %795 = vrot.lane.b32.xlu0 %v778_v47, %s12847_s20  ;;  %v8094_v0 = vpack.c.bf16 %v1840_v50, %v1835_v3  ;;  %v1845_v61 = vld [vmem:[%s12661_s1 + $0x560] sm:$0xff]  ;;  %v1859_v50 = vld [vmem:[%s12661_s1 + $0x5d0] sm:$0xff]  ;;  %s8932_s20 = smov 80  }
 0x1ab   : > { %v1590_v35 = vpop.permute.xlu1 %1589  ;;  %v1617_v46 = vadd.f32 %v1605_v14, %v1566_v40  ;;  %v1843_v14 = vld [vmem:[%s12661_s1 + $0x550] sm:$0xff]  ;;  %v1853_v38 = vld [vmem:[%s12661_s1 + $0x5a0] sm:$0xff] }
 0x1ac   : > { %v1643_v52 = vpop.permute.xlu0 %1642  ;;  %v1604_v32 = vsel %vm1603_vm15, %v1590_v35, %v1592_v16  ;;  %v916_v16 = vmul.f32 %v12893_v63, %v10075_v43 }
 0x1ad   : > { %841 = vrot.lane.b32.xlu1 %v824_v18, %s12848_s29  ;;  %v1616_v29 = vadd.f32 %v1604_v32, %v1565_v9  ;;  %v7926_v32 = vpack.c.bf16 %v1849_v24, %v1844_v56  ;;  %v8096_v9 = vpack.c.bf16 %v1851_v60, %v1846_v37  ;;  %v1856_v56 = vld [vmem:[%s12661_s1 + $0x5b8] sm:$0xff]  ;;  %s8917_s29 = smov 104  }
 0x1ae   : > { %887 = vrot.lane.b32.xlu0 %v870_v7, %s12849_s28  ;;  %v12897_v7 = vld [vmem:[#allocation23_spill] sm:$0xff]  ;;  %v12900_v37 = vld [vmem:[#allocation25_spill] sm:$0xff]  ;;  %s12957_s28 = smov 100  }
 0x1af   : > { %v10230_v54 = vpop.permute.xlu1 %1644  ;;  %v1008_v40 = vmul.f32 %v12897_v7, %v10075_v43  ;;  %v1100_v60 = vmul.f32 %v12900_v37, %v10075_v43 }
 0x1b0   : > { %12892 = vst [vmem:[#allocation37_spill] sm:$0xff] %v10230_v54  ;;  %v1656_v22 = vsel %vm1654_vm12, %v1643_v52, %v10230_v54  ;;  %v1641_v47 = vpop.permute.xlu0 %1640 }
 0x1b1   : > { %v1655_v51 = vsel %vm1654_vm12, %v1641_v47, %v1643_v52  ;;  %933 = vrot.lane.b32.xlu1 %v916_v16, %s12850_s14  ;;  %v10258_v35 = vadd.f32 %v1656_v22, %v1617_v46  ;;  %v1854_v46 = vld [vmem:[%s12661_s1 + $0x5a8] sm:$0xff]  ;;  %v12899_v16 = vld [vmem:[#allocation24_spill] sm:$0xff]  ;;  %v7928_v22 = vpack.c.bf16 %v1848_v34, %v1843_v14  ;;  %v8098_v47 = vpack.c.bf16 %v1850_v45, %v1845_v61  ;;  %s12956_s14 = smov 125  }
 0x1b2   : > { %v10260_v18 = vadd.f32 %v1655_v51, %v1616_v29  ;;  %979 = vrot.lane.b32.xlu0 %v962_v6, %s12851_s12  ;;  %v1054_v3 = vmul.f32 %v12899_v16, %v10075_v43  ;;  %v1861_v29 = vld [vmem:[%s12661_s1 + $0x5e0] sm:$0xff]  ;;  %v1858_v6 = vld [vmem:[%s12661_s1 + $0x5c8] sm:$0xff]  ;;  %v7930_v51 = vpack.c.bf16 %v1859_v50, %v1854_v46  ;;  %v1860_v14 = vld [vmem:[%s12661_s1 + $0x5d8] sm:$0xff]  ;;  %s8920_s12 = smov 115  }
 0x1b3   : > { %12895 = vst [vmem:[#allocation38_spill] sm:$0xff] %v10258_v35  ;;  %2183 = vmatprep.mubr.f32.mxu0 %v10258_v35  ;;  %2396 = vmatprep.mubr.f32.mxu1 %v10258_v35  ;;  %v10271_v52 = vpop.permute.xlu1 %561  ;;  %v1864_v34 = vld [vmem:[%s12661_s1 + $0x5f8] sm:$0xff]  ;;  %v1866_v61 = vld [vmem:[%s12661_s1 + $0x608] sm:$0xff]  ;;  %v1871_v45 = vld [vmem:[%s12661_s1 + $0x630] sm:$0xff]  ;;  %v7932_v46 = vpack.c.bf16 %v1858_v6, %v1853_v38 }
 0x1b4   : > { %12896 = vst [vmem:[#allocation40_spill] sm:$0xff] %v10260_v18  ;;  %v10284_v63 = vpop.permute.xlu0 %563  ;;  %2184 = vmatmul.mubr.f32.vlgmr.msra.gmra.mrb[0].mxu0 %v10260_v18  ;;  %2397 = vmatmul.mubr.f32.vlgmr.msra.gmra.mrb[0].mxu1 %v10260_v18  ;;  %v1868_v50 = vld [vmem:[%s12661_s1 + $0x618] sm:$0xff]  ;;  %v8104_v38 = vpack.c.bf16 %v1871_v45, %v1866_v61  ;;  %v1870_v6 = vld [vmem:[%s12661_s1 + $0x628] sm:$0xff]  ;;  %v1873_v45 = vld [vmem:[%s12661_s1 + $0x640] sm:$0xff] }
 0x1b5   : > { %12898 = vst [vmem:[#allocation15_spill] sm:$0xff] %v10284_v63  ;;  %1025 = vrot.lane.b32.xlu1 %v1008_v40, %s12852_s15  ;;  %7925 = vmatpush1.bf16.msra.mxu0 %v7924_v58  ;;  %v8100_v58 = vpack.c.bf16 %v1861_v29, %v1856_v56  ;;  %v12901_v40 = vld [vmem:[#allocation26_spill] sm:$0xff]  ;;  %v12902_v29 = vld [vmem:[#allocation28_spill] sm:$0xff]  ;;  %s8928_s15 = smov 92  }
 0x1b6   : > { %1071 = vrot.lane.b32.xlu0 %v1054_v3, %s12832_s23  ;;  %8095 = vmatpush1.bf16.msra.mxu1 %v8094_v0  ;;  %v1855_v0 = vld [vmem:[%s12661_s1 + $0x5b0] sm:$0xff]  ;;  %v1192_v37 = vmul.f32 %v12902_v29, %v10075_v43  ;;  %v1878_v29 = vld [vmem:[%s12661_s1 + $0x668] sm:$0xff]  ;;  %s8926_s23 = smov 101  }
 0x1b7   : > { %v10307_v24 = vpop.permute.xlu1 %607  ;;  %7927 = vmatprep.subr.bf16.mxu0 %v7926_v32  ;;  %8097 = vmatprep.subr.bf16.mxu1 %v8096_v9  ;;  %v1146_v32 = vmul.f32 %v12901_v40, %v10075_v43  ;;  %v1869_v9 = vld [vmem:[%s12661_s1 + $0x620] sm:$0xff]  ;;  %v8102_v16 = vpack.c.bf16 %v1860_v14, %v1855_v0  ;;  %v1863_v3 = vld [vmem:[%s12661_s1 + $0x5f0] sm:$0xff] }
 0x1b8   : > { %v10320_v7 = vpop.permute.xlu0 %609  ;;  %v12904_v14 = vld [vmem:[#allocation27_spill] sm:$0xff]  ;;  %v1881_v40 = vld [vmem:[%s12661_s1 + $0x680] sm:$0xff] }
 0x1b9   : > { %1117 = vrot.lane.b32.xlu1 %v1100_v60, %s12835_s27  ;;  %7929 = vmatpush1.bf16.msra.mxu0 %v7928_v22  ;;  %v7934_v22 = vpack.c.bf16 %v1869_v9, %v1864_v34  ;;  %v1874_v60 = vld [vmem:[%s12661_s1 + $0x648] sm:$0xff]  ;;  %v1876_v34 = vld [vmem:[%s12661_s1 + $0x658] sm:$0xff]  ;;  %v1419_v9 = vsub.s32 6, %v9101_v27  ;;  %v1875_v27 = vld [vmem:[%s12661_s1 + $0x650] sm:$0xff]  ;;  %v617_v13 = vsel %vm613_vm1, %v10307_v24, %v10320_v7  ;;  %s8934_s27 = smov 78  }
 0x1ba   : > { %1163 = vrot.lane.b32.xlu0 %v1146_v32, %s12855_s22  ;;  %8099 = vmatpush1.bf16.msra.mxu1 %v8098_v47  ;;  %v1865_v47 = vld [vmem:[%s12661_s1 + $0x600] sm:$0xff]  ;;  %v7936_v32 = vpack.c.bf16 %v1868_v50, %v1863_v3  ;;  %v8108_v50 = vpack.c.bf16 %v1881_v40, %v1876_v34  ;;  %v1883_v40 = vld [vmem:[%s12661_s1 + $0x690] sm:$0xff]  ;;  %s8935_s22 = smov 77  }
 0x1bb   : > { %v10341_v56 = vpop.permute.xlu1 %653  ;;  %7931 = vmatprep.subr.bf16.mxu0 %v7930_v51  ;;  %8101 = vmatprep.subr.bf16.mxu1 %v8100_v58  ;;  %v1238_v51 = vmul.f32 %v12904_v14, %v10075_v43  ;;  %v1879_v58 = vld [vmem:[%s12661_s1 + $0x670] sm:$0xff]  ;;  %v8106_v61 = vpack.c.bf16 %v1870_v6, %v1865_v47  ;;  %v1884_v47 = vld [vmem:[%s12661_s1 + $0x698] sm:$0xff] }
 0x1bc   : > { %v10354_v0 = vpop.permute.xlu0 %655  ;;  %v7938_v3 = vpack.c.bf16 %v1879_v58, %v1874_v60  ;;  %v1886_v60 = vld [vmem:[%s12661_s1 + $0x6a8] sm:$0xff]  ;;  %v7940_v58 = vpack.c.bf16 %v1878_v29, %v1873_v45 }
 0x1bd   : > { %12903 = vst [vmem:[#allocation31_spill] sm:$0xff] %v10354_v0  ;;  %1209 = vrot.lane.b32.xlu1 %v1192_v37, %s12857_s21  ;;  %7933 = vmatpush1.bf16.msra.mxu0 %v7932_v46  ;;  %v12905_v37 = vld [vmem:[#allocation29_spill] sm:$0xff]  ;;  %v1894_v29 = vld [vmem:[%s12661_s1 + $0x6e8] sm:$0xff]  ;;  %s12958_s21 = sld [smem:[#allocation50_spill]] }
 0x1be   : > { %1255 = vrot.lane.b32.xlu0 %v1238_v51, %s12860_s24  ;;  %8103 = vmatpush1.bf16.msra.mxu1 %v8102_v16  ;;  %v1284_v46 = vmul.f32 %v12905_v37, %v10075_v43  ;;  %v1880_v16 = vld [vmem:[%s12661_s1 + $0x678] sm:$0xff]  ;;  %v1891_v51 = vld [vmem:[%s12661_s1 + $0x6d0] sm:$0xff] }
 0x1bf   : > { %v10376_v14 = vpop.permute.xlu1 %699  ;;  %7935 = vmatprep.subr.bf16.mxu0 %v7934_v22  ;;  %8105 = vmatprep.subr.bf16.mxu1 %v8104_v38  ;;  %v1330_v22 = vmul.f32 %v9475_v44, %v10075_v43  ;;  %v1889_v38 = vld [vmem:[%s12661_s1 + $0x6c0] sm:$0xff]  ;;  %v10405_v44 = vrot.slane %v10072_v48, %v1419_v9  ;;  %v8110_v34 = vpack.c.bf16 %v1880_v16, %v1875_v27  ;;  %v1888_v37 = vld [vmem:[%s12661_s1 + $0x6b8] sm:$0xff] }
 0x1c0   : > { %v10389_v6 = vpop.permute.xlu0 %701  ;;  %v7942_v45 = vpack.c.bf16 %v1889_v38, %v1884_v47  ;;  %v8112_v48 = vpack.c.bf16 %v1891_v51, %v1886_v60  ;;  %v1885_v9 = vld [vmem:[%s12661_s1 + $0x6a0] sm:$0xff]  ;;  %v7944_v16 = vpack.c.bf16 %v1888_v37, %v1883_v40  ;;  %v1898_v38 = vld [vmem:[%s12661_s1 + $0x708] sm:$0xff]  ;;  %v1900_v37 = vld [vmem:[%s12661_s1 + $0x718] sm:$0xff] }
 0x1c1   : > { %1301 = vrot.lane.b32.xlu1 %v1284_v46, %s12863_s18  ;;  %7937 = vmatpush1.bf16.msra.mxu0 %v7936_v32  ;;  %v1376_v32 = vmul.f32 %v9402_v53, %v10075_v43  ;;  %v1427_v53 = vmul.f32 %v9443_v20, %v10075_v43  ;;  %v1901_v27 = vld [vmem:[%s12661_s1 + $0x720] sm:$0xff]  ;;  %v1428_v51 = vmul.f32 %v10405_v44, %v9443_v20 }
 0x1c2   : > { %1347 = vrot.lane.b32.xlu0 %v1330_v22, %s12865_s25  ;;  %8107 = vmatpush1.bf16.msra.mxu1 %v8106_v61  ;;  %v1890_v61 = vld [vmem:[%s12661_s1 + $0x6c8] sm:$0xff]  ;;  %v1893_v22 = vld [vmem:[%s12661_s1 + $0x6e0] sm:$0xff]  ;;  %v1478_v20 = vmul.f32 %v9543_v28, %v10075_v43  ;;  %v1479_v35 = vmul.f32 %v9543_v28, %v10405_v44  ;;  %v1529_v28 = vmul.f32 %v9498_v59, %v10075_v43  ;;  %s12962_s25 = sld [smem:[#allocation51_spill]] }
 0x1c3   : > { %v10413_v18 = vpop.permute.xlu1 %745  ;;  %7939 = vmatprep.subr.bf16.mxu0 %v7938_v3  ;;  %8109 = vmatprep.subr.bf16.mxu1 %v8108_v50  ;;  %v1899_v3 = vld [vmem:[%s12661_s1 + $0x710] sm:$0xff]  ;;  %v1896_v50 = vld [vmem:[%s12661_s1 + $0x6f8] sm:$0xff]  ;;  %v8114_v47 = vpack.c.bf16 %v1890_v61, %v1885_v9  ;;  %v1530_v54 = vmul.f32 %v9498_v59, %v10405_v44  ;;  %v1580_v59 = vmul.f32 %v12876_v25, %v10075_v43  ;;  %s12959_s24 = smov %s12958_s21 }
 0x1c4   : > { %v10426_v46 = vpop.permute.xlu0 %747  ;;  %v8116_v40 = vpack.c.bf16 %v1901_v27, %v1896_v50  ;;  %v1911_v61 = vld [vmem:[%s12661_s1 + $0x770] sm:$0xff]  ;;  %v1908_v50 = vld [vmem:[%s12661_s1 + $0x758] sm:$0xff] }
 0x1c5   : > { %1393 = vrot.lane.b32.xlu1 %v1376_v32, %s12866_s19  ;;  %7941 = vmatpush1.bf16.msra.mxu0 %v7940_v58  ;;  %v7946_v58 = vpack.c.bf16 %v1899_v3, %v1894_v29  ;;  %v1904_v32 = vld [vmem:[%s12661_s1 + $0x738] sm:$0xff]  ;;  %v7948_v29 = vpack.c.bf16 %v1898_v38, %v1893_v22  ;;  %v1903_v3 = vld [vmem:[%s12661_s1 + $0x730] sm:$0xff]  ;;  %v1910_v38 = vld [vmem:[%s12661_s1 + $0x768] sm:$0xff]  ;;  %s8933_s19 = smov 79  }
 0x1c6   : > { %1446 = vrot.lane.b32.xlu0 %v1427_v53, %s12868_s13  ;;  %8111 = vmatpush1.bf16.msra.mxu1 %v8110_v34  ;;  %v1895_v34 = vld [vmem:[%s12661_s1 + $0x6f0] sm:$0xff] }
 0x1c7   : > { %v10447_v60 = vpop.permute.xlu1 %791  ;;  %7943 = vmatprep.subr.bf16.mxu0 %v7942_v45  ;;  %8113 = vmatprep.subr.bf16.mxu1 %v8112_v48  ;;  %v1909_v45 = vld [vmem:[%s12661_s1 + $0x760] sm:$0xff]  ;;  %v1906_v48 = vld [vmem:[%s12661_s1 + $0x748] sm:$0xff]  ;;  %v8118_v53 = vpack.c.bf16 %v1900_v37, %v1895_v34 }
 0x1c8   : > { %v10460_v9 = vpop.permute.xlu0 %793  ;;  %v8120_v22 = vpack.c.bf16 %v1911_v61, %v1906_v48  ;;  %v1921_v37 = vld [vmem:[%s12661_s1 + $0x7c0] sm:$0xff]  ;;  %v1918_v48 = vld [vmem:[%s12661_s1 + $0x7a8] sm:$0xff] }
 0x1c9   : > { %1448 = vrot.lane.b32.xlu1 %v1428_v51, %s12868_s13  ;;  %7945 = vmatpush1.bf16.msra.mxu0 %v7944_v16  ;;  %v7950_v16 = vpack.c.bf16 %v1909_v45, %v1904_v32  ;;  %v1914_v51 = vld [vmem:[%s12661_s1 + $0x788] sm:$0xff]  ;;  %v7952_v32 = vpack.c.bf16 %v1908_v50, %v1903_v3  ;;  %v1913_v45 = vld [vmem:[%s12661_s1 + $0x780] sm:$0xff]  ;;  %v1920_v3 = vld [vmem:[%s12661_s1 + $0x7b8] sm:$0xff]  ;;  %s8918_s13 = smov 103  }
 0x1ca   : > { %1497 = vrot.lane.b32.xlu0 %v1478_v20, %s12871_s30  ;;  %8115 = vmatpush1.bf16.msra.mxu1 %v8114_v47  ;;  %v1905_v47 = vld [vmem:[%s12661_s1 + $0x740] sm:$0xff]  ;;  %v1924_v50 = vld [vmem:[%s12661_s1 + $0x7d8] sm:$0xff] }
 0x1cb   : > { %v10481_v27 = vpop.permute.xlu1 %837  ;;  %7947 = vmatprep.subr.bf16.mxu0 %v7946_v58  ;;  %8117 = vmatprep.subr.bf16.mxu1 %v8116_v40  ;;  %v1919_v58 = vld [vmem:[%s12661_s1 + $0x7b0] sm:$0xff]  ;;  %v1916_v40 = vld [vmem:[%s12661_s1 + $0x798] sm:$0xff]  ;;  %v8122_v20 = vpack.c.bf16 %v1910_v38, %v1905_v47 }
 0x1cc   : > { %v10494_v34 = vpop.permute.xlu0 %839  ;;  %v1931_v38 = vld [vmem:[%s12661_s1 + $0x810] sm:$0xff] }
 0x1cd   : > { %1499 = vrot.lane.b32.xlu1 %v1479_v35, %s12871_s30  ;;  %7949 = vmatpush1.bf16.msra.mxu0 %v7948_v29  ;;  %v7954_v35 = vpack.c.bf16 %v1919_v58, %v1914_v51  ;;  %v8124_v29 = vpack.c.bf16 %v1921_v37, %v1916_v40  ;;  %v7956_v51 = vpack.c.bf16 %v1918_v48, %v1913_v45  ;;  %v1923_v58 = vld [vmem:[%s12661_s1 + $0x7d0] sm:$0xff]  ;;  %v1928_v40 = vld [vmem:[%s12661_s1 + $0x7f8] sm:$0xff]  ;;  %v1925_v37 = vld [vmem:[%s12661_s1 + $0x7e0] sm:$0xff]  ;;  %s8922_s30 = smov 113  }
 0x1ce   : > { %1548 = vrot.lane.b32.xlu0 %v1529_v28, %s12872_s10  ;;  %8119 = vmatpush1.bf16.msra.mxu1 %v8118_v53  ;;  %v1915_v53 = vld [vmem:[%s12661_s1 + $0x790] sm:$0xff]  ;;  %v1930_v45 = vld [vmem:[%s12661_s1 + $0x808] sm:$0xff] }
 0x1cf   : > { %v10515_v61 = vpop.permute.xlu1 %883  ;;  %7951 = vmatprep.subr.bf16.mxu0 %v7950_v16  ;;  %8121 = vmatprep.subr.bf16.mxu1 %v8120_v22  ;;  %v1929_v16 = vld [vmem:[%s12661_s1 + $0x800] sm:$0xff]  ;;  %v1926_v22 = vld [vmem:[%s12661_s1 + $0x7e8] sm:$0xff]  ;;  %v8126_v28 = vpack.c.bf16 %v1920_v3, %v1915_v53  ;;  %v1939_v53 = vld [vmem:[%s12661_s1 + $0x850] sm:$0xff] }
 0x1d0   : > { %v10528_v47 = vpop.permute.xlu0 %885  ;;  %v1934_v48 = vld [vmem:[%s12661_s1 + $0x828] sm:$0xff] }
 0x1d1   : > { %1550 = vrot.lane.b32.xlu1 %v1530_v54, %s12872_s10  ;;  %7953 = vmatpush1.bf16.msra.mxu0 %v7952_v32  ;;  %v1581_v54 = vmul.f32 %v12876_v25, %v10405_v44  ;;  %v7958_v32 = vpack.c.bf16 %v1929_v16, %v1924_v50  ;;  %v1631_v25 = vmul.f32 %v12883_v19, %v10075_v43  ;;  %v1965_v43 = vld [vmem:[%s12661_s1 + $0x920] sm:$0xff]  ;;  %s12963_s10 = sld [smem:[#allocation53_spill]] }
 0x1d2   : > { %1599 = vrot.lane.b32.xlu0 %v1580_v59, %s12879_s11  ;;  %8123 = vmatpush1.bf16.msra.mxu1 %v8122_v20  ;;  %v8128_v20 = vpack.c.bf16 %v1931_v38, %v1926_v22  ;;  %v7960_v50 = vpack.c.bf16 %v1928_v40, %v1923_v58  ;;  %v8130_v59 = vpack.c.bf16 %v1930_v45, %v1925_v37  ;;  %v1933_v22 = vld [vmem:[%s12661_s1 + $0x820] sm:$0xff]  ;;  %v1938_v38 = vld [vmem:[%s12661_s1 + $0x848] sm:$0xff]  ;;  %v1940_v58 = vld [vmem:[%s12661_s1 + $0x858] sm:$0xff] }
 0x1d3   : > { %v10552_v26 = vpop.permute.xlu1 %929  ;;  %7955 = vmatprep.subr.bf16.mxu0 %v7954_v35  ;;  %8125 = vmatprep.subr.bf16.mxu1 %v8124_v29  ;;  %v1936_v35 = vld [vmem:[%s12661_s1 + $0x838] sm:$0xff]  ;;  %v1941_v29 = vld [vmem:[%s12661_s1 + $0x860] sm:$0xff]  ;;  %v7962_v16 = vpack.c.bf16 %v1939_v53, %v1934_v48  ;;  %v1943_v53 = vld [vmem:[%s12661_s1 + $0x870] sm:$0xff] }
 0x1d4   : > { %v10565_v3 = vpop.permute.xlu0 %931  ;;  %v1944_v40 = vld [vmem:[%s12661_s1 + $0x878] sm:$0xff]  ;;  %v1949_v37 = vld [vmem:[%s12661_s1 + $0x8a0] sm:$0xff] }
 0x1d5   : > { %1601 = vrot.lane.b32.xlu1 %v1581_v54, %s12879_s11  ;;  %7957 = vmatpush1.bf16.msra.mxu0 %v7956_v51  ;;  %v1632_v51 = vmul.f32 %v12883_v19, %v10405_v44  ;;  %v1946_v19 = vld [vmem:[%s12661_s1 + $0x888] sm:$0xff]  ;;  %v1951_v44 = vld [vmem:[%s12661_s1 + $0x8b0] sm:$0xff]  ;;  %v7966_v48 = vpack.c.bf16 %v1949_v37, %v1944_v40  ;;  %v1953_v37 = vld [vmem:[%s12661_s1 + $0x8c0] sm:$0xff]  ;;  %s8936_s11 = smov 76  }
 0x1d6   : > { %1650 = vrot.lane.b32.xlu0 %v1631_v25, %s12884_s9  ;;  %8127 = vmatpush1.bf16.msra.mxu1 %v8126_v28  ;;  %v8132_v28 = vpack.c.bf16 %v1941_v29, %v1936_v35  ;;  %v1948_v25 = vld [vmem:[%s12661_s1 + $0x898] sm:$0xff]  ;;  %v1945_v35 = vld [vmem:[%s12661_s1 + $0x880] sm:$0xff] }
 0x1d7   : > { %v10586_v54 = vpop.permute.xlu1 %975  ;;  %7959 = vmatprep.subr.bf16.mxu0 %v7958_v32  ;;  %8129 = vmatprep.subr.bf16.mxu1 %v8128_v20  ;;  %v7964_v32 = vpack.c.bf16 %v1938_v38, %v1933_v22  ;;  %v8134_v20 = vpack.c.bf16 %v1940_v58, %v1935_v8  ;;  %v1950_v8 = vld [vmem:[%s12661_s1 + $0x8a8] sm:$0xff]  ;;  %v1956_v38 = vld [vmem:[%s12661_s1 + $0x8d8] sm:$0xff] }
 0x1d8   : > { %v10599_v45 = vpop.permute.xlu0 %977  ;;  %v8138_v58 = vpack.c.bf16 %v1950_v8, %v1945_v35  ;;  %v1966_v35 = vld [vmem:[%s12661_s1 + $0x928] sm:$0xff] }
 0x1d9   : > { %1652 = vrot.lane.b32.xlu1 %v1632_v51, %s12884_s9  ;;  %7961 = vmatpush1.bf16.msra.mxu0 %v7960_v50  ;;  %v8136_v50 = vpack.c.bf16 %v1951_v44, %v1946_v19  ;;  %v1961_v51 = vld [vmem:[%s12661_s1 + $0x900] sm:$0xff]  ;;  %v1958_v19 = vld [vmem:[%s12661_s1 + $0x8e8] sm:$0xff]  ;;  %v1955_v44 = vld [vmem:[%s12661_s1 + $0x8d0] sm:$0xff]  ;;  %s8927_s9 = smov 91  }
 0x1da   : > { %8131 = vmatpush1.bf16.msra.mxu1 %v8130_v59  ;;  %7963 = vmatprep.subr.bf16.mxu0 %v7962_v16  ;;  %v1954_v59 = vld [vmem:[%s12661_s1 + $0x8c8] sm:$0xff]  ;;  %v1959_v16 = vld [vmem:[%s12661_s1 + $0x8f0] sm:$0xff]  ;;  %v7972_v8 = vpack.c.bf16 %v1958_v19, %v1953_v37 }
 0x1db   : > { %v10617_v29 = vpop.permute.xlu1 %1021  ;;  %8133 = vmatprep.subr.bf16.mxu1 %v8132_v28  ;;  %v7968_v28 = vpack.c.bf16 %v1948_v25, %v1943_v53  ;;  %v7970_v40 = vpack.c.bf16 %v1959_v16, %v1954_v59  ;;  %v1969_v53 = vld [vmem:[%s12661_s1 + $0x940] sm:$0xff]  ;;  %v1979_v37 = vld [vmem:[%s12661_s1 + $0x990] sm:$0xff] }
 0x1dc   : > { %v10628_v22 = vpop.permute.xlu0 %1023 }
 0x1dd   : > { %7965 = vmatpush1.bf16.msra.mxu0 %v7964_v32  ;;  %v8140_v32 = vpack.c.bf16 %v1961_v51, %v1956_v38  ;;  %v1963_v38 = vld [vmem:[%s12661_s1 + $0x910] sm:$0xff]  ;;  %v1968_v51 = vld [vmem:[%s12661_s1 + $0x938] sm:$0xff] }
 0x1de   : > { %8135 = vmatpush1.bf16.msra.mxu1 %v8134_v20  ;;  %7967 = vmatprep.subr.bf16.mxu0 %v7966_v48  ;;  %v1960_v20 = vld [vmem:[%s12661_s1 + $0x8f8] sm:$0xff] }
 0x1df   : > { %v10645_v21 = vpop.permute.xlu1 %1067  ;;  %8137 = vmatprep.subr.bf16.mxu1 %v8136_v50  ;;  %v1964_v48 = vld [vmem:[%s12661_s1 + $0x918] sm:$0xff]  ;;  %v1971_v50 = vld [vmem:[%s12661_s1 + $0x950] sm:$0xff]  ;;  %v8142_v59 = vpack.c.bf16 %v1960_v20, %v1955_v44  ;;  %v7976_v20 = vpack.c.bf16 %v1968_v51, %v1963_v38  ;;  %v571_v38 = vsel %vm567_vm0, %v10271_v52, %v10284_v63  ;;  %v530_v63 = vmul.f32 %v9798_v11, %v9588_v1  ;;  %v1985_v11 = vld [vmem:[%s12661_s1 + $0x9c0] sm:$0xff] }
 0x1e0   : > { %v10656_v25 = vpop.permute.xlu0 %1069  ;;  %v7974_v16 = vpack.c.bf16 %v1969_v53, %v1964_v48  ;;  %v1976_v44 = vld [vmem:[%s12661_s1 + $0x978] sm:$0xff] }
 0x1e1   : > { %7969 = vmatpush1.bf16.msra.mxu0 %v7968_v28  ;;  %v8144_v28 = vpack.c.bf16 %v1971_v50, %v1966_v35  ;;  %v1973_v35 = vld [vmem:[%s12661_s1 + $0x960] sm:$0xff]  ;;  %v1978_v50 = vld [vmem:[%s12661_s1 + $0x988] sm:$0xff] }
 0x1e2   : > { %8139 = vmatpush1.bf16.msra.mxu1 %v8138_v58  ;;  %7971 = vmatprep.subr.bf16.mxu0 %v7970_v40  ;;  %v1970_v58 = vld [vmem:[%s12661_s1 + $0x948] sm:$0xff]  ;;  %v7980_v5 = vpack.c.bf16 %v1978_v50, %v1973_v35  ;;  %v582_v35 = vadd.f32 %v571_v38, %v530_v63  ;;  %v663_v63 = vsel %vm659_vm2, %v10341_v56, %v10354_v0 }
 0x1e3   : > { %v10673_v41 = vpop.permute.xlu1 %1113  ;;  %8141 = vmatprep.subr.bf16.mxu1 %v8140_v32  ;;  %v1974_v40 = vld [vmem:[%s12661_s1 + $0x968] sm:$0xff]  ;;  %v1981_v32 = vld [vmem:[%s12661_s1 + $0x9a0] sm:$0xff]  ;;  %v8146_v48 = vpack.c.bf16 %v1970_v58, %v1965_v43  ;;  %v1980_v43 = vld [vmem:[%s12661_s1 + $0x998] sm:$0xff]  ;;  %v662_v38 = vsel %vm659_vm2, %v9741_v12, %v10341_v56 }
 0x1e4   : > { %v10684_v19 = vpop.permute.xlu0 %1115  ;;  %v7978_v53 = vpack.c.bf16 %v1979_v37, %v1974_v40  ;;  %v1991_v58 = vld [vmem:[%s12661_s1 + $0x9f0] sm:$0xff]  ;;  %v12906_v40 = vld [vmem:[#allocation14_spill] sm:$0xff] }
 0x1e5   : > { %7973 = vmatpush1.bf16.msra.mxu0 %v7972_v8  ;;  %v8148_v8 = vpack.c.bf16 %v1981_v32, %v1976_v44  ;;  %v529_v37 = vmul.f32 %v12906_v40, %v9588_v1  ;;  %v12907_v44 = vld [vmem:[#allocation32_spill] sm:$0xff]  ;;  %v8150_v40 = vpack.c.bf16 %v1980_v43, %v1975_v55  ;;  %v1994_v50 = vld [vmem:[%s12661_s1 + $0xa08] sm:$0xff] }
 0x1e6   : > { %8143 = vmatpush1.bf16.msra.mxu1 %v8142_v59  ;;  %7975 = vmatprep.subr.bf16.mxu0 %v7974_v16  ;;  %v1984_v59 = vld [vmem:[%s12661_s1 + $0x9b8] sm:$0xff]  ;;  %v1989_v16 = vld [vmem:[%s12661_s1 + $0x9e0] sm:$0xff]  ;;  %v570_v32 = vsel %vm567_vm0, %v12907_v44, %v10271_v52  ;;  %v1999_v43 = vld [vmem:[%s12661_s1 + $0xa30] sm:$0xff]  ;;  %v709_v44 = vsel %vm705_vm3, %v10376_v14, %v10389_v6 }
 0x1e7   : > { %v10701_v62 = vpop.permute.xlu1 %1159  ;;  %8145 = vmatprep.subr.bf16.mxu1 %v8144_v28  ;;  %v1986_v28 = vld [vmem:[%s12661_s1 + $0x9c8] sm:$0xff]  ;;  %v7982_v10 = vpack.c.bf16 %v1989_v16, %v1984_v59  ;;  %v1988_v52 = vld [vmem:[%s12661_s1 + $0x9d8] sm:$0xff]  ;;  %v581_v59 = vadd.f32 %v570_v32, %v529_v37  ;;  %v7986_v32 = vpack.c.bf16 %v1999_v43, %v1994_v50  ;;  %v893_v43 = vsel %vm12794_vm7, %v10515_v61, %v10528_v47 }
 0x1e8   : > { %v10715_v51 = vpop.permute.xlu0 %1161  ;;  %v8152_v55 = vpack.c.bf16 %v1991_v58, %v1986_v28  ;;  %v7984_v28 = vpack.c.bf16 %v1988_v52, %v1983_v17  ;;  %v755_v17 = vsel %vm751_vm4, %v10413_v18, %v10426_v46 }
 0x1e9   : > { %7977 = vmatpush1.bf16.msra.mxu0 %v7976_v20  ;;  %v1990_v20 = vld [vmem:[%s12661_s1 + $0x9e8] sm:$0xff] }
 0x1ea   : > { %8147 = vmatpush1.bf16.msra.mxu1 %v8146_v48  ;;  %7979 = vmatprep.subr.bf16.mxu0 %v7978_v53  ;;  %v616_v48 = vsel %vm613_vm1, %v9703_v39, %v10307_v24  ;;  %v1996_v39 = vld [vmem:[%s12661_s1 + $0xa18] sm:$0xff]  ;;  %v2001_v24 = vld [vmem:[%s12661_s1 + $0xa40] sm:$0xff]  ;;  %v8154_v58 = vpack.c.bf16 %v1990_v20, %v1985_v11  ;;  %v800_v11 = vsel %vm797_vm5, %v9819_v30, %v10447_v60 }
 0x1eb   : > { %v10748_v53 = vpop.permute.xlu1 %1205  ;;  %8149 = vmatprep.subr.bf16.mxu1 %v8148_v8  ;;  %v628_v8 = vadd.f32 %v617_v13, %v582_v35  ;;  %v627_v37 = vadd.f32 %v616_v48, %v581_v59  ;;  %v708_v13 = vsel %vm705_vm3, %v9781_v57, %v10376_v14  ;;  %v8156_v12 = vpack.c.bf16 %v2001_v24, %v1996_v39 }
 0x1ec   : > { %v10759_v16 = vpop.permute.xlu0 %1207  ;;  %v801_v57 = vsel %vm797_vm5, %v10447_v60, %v10460_v9  ;;  %v892_v60 = vsel %vm12794_vm7, %v9849_v4, %v10515_v61  ;;  %v939_v39 = vsel %vm12792_vm8, %v10552_v26, %v10565_v3  ;;  %v984_v4 = vsel %vm12790_vm9, %v9879_v23, %v10586_v54 }
 0x1ed   : > { %7981 = vmatpush1.bf16.msra.mxu0 %v7980_v5  ;;  %v674_v0 = vadd.f32 %v663_v63, %v628_v8  ;;  %v673_v5 = vadd.f32 %v662_v38, %v627_v37  ;;  %v985_v38 = vsel %vm12790_vm9, %v10586_v54, %v10599_v45  ;;  %v1031_v37 = vsel %vm12791_vm10, %v10617_v29, %v10628_v22 }
 0x1ee   : > { %8151 = vmatpush1.bf16.msra.mxu1 %v8150_v40  ;;  %7983 = vmatprep.subr.bf16.mxu0 %v7982_v10  ;;  %v754_v10 = vsel %vm751_vm4, %v9800_v15, %v10413_v18  ;;  %v847_v15 = vsel %vm843_vm6, %v10481_v27, %v10494_v34  ;;  %v1076_v23 = vsel %vm12793_vm11, %v9921_v33, %v10645_v21  ;;  %vm12908_vm9 = vcmask 564224  }
 0x1ef   : > { %v10776_v35 = vpop.permute.xlu1 %1251  ;;  %8153 = vmatprep.subr.bf16.mxu1 %v8152_v55  ;;  %v720_v52 = vadd.f32 %v709_v44, %v674_v0  ;;  %v719_v40 = vadd.f32 %v708_v13, %v673_v5  ;;  %v846_v55 = vsel %vm843_vm6, %v9833_v49, %v10481_v27  ;;  %v938_v49 = vsel %vm12792_vm8, %v9863_v36, %v10552_v26 }
 0x1f0   : > { %v10781_v56 = vpop.permute.xlu0 %1253  ;;  %v1030_v36 = vsel %vm12791_vm10, %v9905_v42, %v10617_v29  ;;  %v1077_v13 = vsel %vm12793_vm11, %v10645_v21, %v10656_v25  ;;  %vm12909_vm10 = vmmov %vm12908_vm9  ;;  %vm12910_vm8 = vcmask 556032  }
 0x1f1   : > { %7985 = vmatpush1.bf16.msra.mxu0 %v7984_v28  ;;  %v766_v14 = vadd.f32 %v755_v17, %v720_v52  ;;  %v765_v0 = vadd.f32 %v754_v10, %v719_v40  ;;  %v1123_v17 = vsel %vm12908_vm9, %v10673_v41, %v10684_v19  ;;  %v1122_v42 = vsel %vm12909_vm10, %v9935_v31, %v10673_v41  ;;  %vm12911_vm11 = vmmov %vm12910_vm8  ;;  %v12913_v31 = vld [vmem:[#allocation36_spill] sm:$0xff] }
 0x1f2   : > { %8155 = vmatpush1.bf16.msra.mxu1 %v8154_v58  ;;  %7987 = vmatprep.subr.bf16.mxu0 %v7986_v32  ;;  %v1169_v40 = vsel %vm12910_vm8, %v10701_v62, %v10715_v51  ;;  %v1168_v21 = vsel %vm12911_vm11, %v9951_v2, %v10701_v62  ;;  %vm12912_vm9 = vcmask 359424   ;;  %vm12915_vm8 = vcmask 351232   ;;  %v12916_v2 = vld [vmem:[#allocation39_spill] sm:$0xff] }
 0x1f3   : > { %v1298_v20 = vpop.permute.xlu1 %1297  ;;  %8157 = vmatprep.subr.bf16.mxu1 %v8156_v12  ;;  %v812_v48 = vadd.f32 %v801_v57, %v766_v14  ;;  %v811_v50 = vadd.f32 %v800_v11, %v765_v0  ;;  %v1215_v11 = vsel %vm12912_vm9, %v10748_v53, %v10759_v16  ;;  %vm12914_vm10 = vmmov %vm12912_vm9  ;;  %vm12918_vm9 = vcmask 343040  }
 0x1f4   : > { %v10795_v18 = vpop.permute.xlu0 %1299  ;;  %v1214_v41 = vsel %vm12914_vm10, %v12913_v31, %v10748_v53  ;;  %vm12917_vm11 = vmmov %vm12915_vm8  ;;  %vm12921_vm10 = vcmask 334848  }
 0x1f5   : > { %v858_v30 = vadd.f32 %v847_v15, %v812_v48  ;;  %v857_v63 = vadd.f32 %v846_v55, %v811_v50  ;;  %v1261_v55 = vsel %vm12915_vm8, %v10776_v35, %v10781_v56  ;;  %v1260_v62 = vsel %vm12917_vm11, %v12916_v2, %v10776_v35  ;;  %vm12920_vm7 = vmmov %vm12918_vm9  ;;  %v12934_v2 = vld [vmem:[#allocation35_spill] sm:$0xff] }
 0x1f6   : > { %vm12923_vm8 = vmmov %vm12921_vm10  ;;  %vm12924_vm11 = vcmask 326656  }
 0x1f7   : > { %v1344_v59 = vpop.permute.xlu1 %1343  ;;  %v904_v8 = vadd.f32 %v893_v43, %v858_v30  ;;  %v903_v27 = vadd.f32 %v892_v60, %v857_v63  ;;  %v1307_v60 = vsel %vm12918_vm9, %v1298_v20, %v10795_v18  ;;  %vm12926_vm9 = vmmov %vm12924_vm11 }
 0x1f8   : > { %v10809_v24 = vpop.permute.xlu0 %1345 }
 0x1f9   : > { %v950_v28 = vadd.f32 %v939_v39, %v904_v8  ;;  %v949_v58 = vadd.f32 %v938_v49, %v903_v27  ;;  %v12919_v8 = vld [vmem:[#allocation41_spill] sm:$0xff]  ;;  %v1353_v27 = vsel %vm12921_vm10, %v1344_v59, %v10809_v24 }
 0x1fa   : > { %v1306_v53 = vsel %vm12920_vm7, %v12919_v8, %v1298_v20  ;;  %vm12928_vm7 = vcmask 121856  }
 0x1fb   : > { %v1390_v61 = vpop.permute.xlu1 %1389  ;;  %v996_v32 = vadd.f32 %v985_v38, %v950_v28  ;;  %v995_v26 = vadd.f32 %v984_v4, %v949_v58  ;;  %v12922_v28 = vld [vmem:[#allocation42_spill] sm:$0xff]  ;;  %vm12930_vm10 = vmmov %vm12928_vm7 }
 0x1fc   : > { %v10823_v44 = vpop.permute.xlu0 %1391  ;;  %v1352_v4 = vsel %vm12923_vm8, %v12922_v28, %v1344_v59  ;;  %v12936_v28 = vld [vmem:[#allocation31_spill] sm:$0xff]  ;;  %vm12944_vm8 = vcmask 556032  }
 0x1fd   : > { %v1042_v12 = vadd.f32 %v1031_v37, %v996_v32  ;;  %v1041_v5 = vadd.f32 %v1030_v36, %v995_v26  ;;  %v1399_v37 = vsel %vm12924_vm11, %v1390_v61, %v10823_v44  ;;  %v12925_v26 = vld [vmem:[#allocation44_spill] sm:$0xff]  ;;  %vm12945_vm11 = vcmask 359424  }
 0x1ff   : > { %v1443_v54 = vpop.permute.xlu1 %1442  ;;  %v1088_v10 = vadd.f32 %v1077_v13, %v1042_v12  ;;  %v1087_v29 = vadd.f32 %v1076_v23, %v1041_v5  ;;  %v1398_v13 = vsel %vm12926_vm9, %v12925_v26, %v1390_v61  ;;  %v12927_v5 = vld [vmem:[#allocation45_spill] sm:$0xff]  ;;  %v12931_v61 = vld [vmem:[#allocation43_spill] sm:$0xff]  ;;  %vm12946_vm9 = vcmask 351232  }
 0x200   : > { %v10837_v52 = vpop.permute.xlu0 %1444 }
 0x201   : > { %v1134_v57 = vadd.f32 %v1123_v17, %v1088_v10  ;;  %v1133_v14 = vadd.f32 %v1122_v42, %v1087_v29  ;;  %v1454_v12 = vsel %vm1450_vm14, %v1443_v54, %v10837_v52  ;;  %v1453_v17 = vsel %vm1450_vm14, %v12927_v5, %v1443_v54  ;;  %v12933_v54 = vld [vmem:[#allocation33_spill] sm:$0xff] }
 0x202   : > { %v2009_v5 = vld [vmem:[%s12661_s1 + $0xa80] sm:$0xff] }
 0x203   : > { %v1494_v33 = vpop.permute.xlu1 %1493  ;;  %v1180_v15 = vadd.f32 %v1169_v40, %v1134_v57  ;;  %v1179_v48 = vadd.f32 %v1168_v21, %v1133_v14  ;;  %v12929_v57 = vld [vmem:[#allocation34_spill] sm:$0xff]  ;;  %v532_v14 = vmul.f32 %v12931_v61, %v9588_v1 }
 0x204   : > { %v10851_v0 = vpop.permute.xlu0 %1495  ;;  %v1504_v21 = vsel %vm12930_vm10, %v12929_v57, %v1494_v33  ;;  %v2093_v61 = vld [vmem:[%s12666_s6] sm:$0x3f]  ;;  %vm12948_vm10 = vcmask 334848  }
 0x205   : > { %v1226_v50 = vadd.f32 %v1215_v11, %v1180_v15  ;;  %v1225_v30 = vadd.f32 %v1214_v41, %v1179_v48  ;;  %v1505_v42 = vsel %vm12928_vm7, %v1494_v33, %v10851_v0  ;;  %v12932_v11 = vld [vmem:[#allocation15_spill] sm:$0xff]  ;;  %v531_v41 = vmul.f32 %v12933_v54, %v9588_v1  ;;  %2096 = vperm.xlu0 %8785, %v2093_v61   ;;  %v2028_v61 = vld [vmem:[%s12661_s1 + $0xb18] sm:$0xff] }
 0x206   : > { %v2003_v54 = vld [vmem:[%s12661_s1 + $0xa50] sm:$0xff]  ;;  %vm12947_vm7 = vcmask 343040  }
 0x207   : > { %v566_v43 = vpop.permute.xlu1 %565  ;;  %v1272_v39 = vadd.f32 %v1261_v55, %v1226_v50  ;;  %v1271_v49 = vadd.f32 %v1260_v62, %v1225_v30 }
 0x208   : > { %v1545_v63 = vpop.permute.xlu0 %1544  ;;  %v572_v15 = vsel %vm567_vm0, %v12932_v11, %v566_v43  ;;  %v584_v50 = vadd.f32 %v566_v43, %v532_v14 }
 0x209   : > { %v1318_v38 = vadd.f32 %v1307_v60, %v1272_v39  ;;  %v1317_v35 = vadd.f32 %v1306_v53, %v1271_v49  ;;  %v1555_v62 = vsel %vm1552_vm13, %v12934_v2, %v1545_v63  ;;  %v583_v39 = vadd.f32 %v572_v15, %v531_v41  ;;  %v2008_v41 = vld [vmem:[%s12661_s1 + $0xa78] sm:$0xff] }
 0x20b   : > { %v10870_v58 = vpop.permute.xlu1 %1546  ;;  %v1364_v36 = vadd.f32 %v1353_v27, %v1318_v38  ;;  %v1363_v20 = vadd.f32 %v1352_v4, %v1317_v35  ;;  %v12935_v27 = vld [vmem:[#allocation30_spill] sm:$0xff] }
 0x20c   : > { %v612_v32 = vpop.permute.xlu0 %611  ;;  %v1556_v48 = vsel %vm1552_vm13, %v1545_v63, %v10870_v58  ;;  %v1993_v63 = vld [vmem:[%s12661_s1 + $0xa00] sm:$0xff] }
 0x20d   : > { %v1410_v23 = vadd.f32 %v1399_v37, %v1364_v36  ;;  %v1409_v10 = vadd.f32 %v1398_v13, %v1363_v20  ;;  %v618_v33 = vsel %vm613_vm1, %v10320_v7, %v612_v32  ;;  %v630_v1 = vadd.f32 %v612_v32, %v584_v50  ;;  %v1998_v7 = vld [vmem:[%s12661_s1 + $0xa28] sm:$0xff]  ;;  %v1995_v37 = vld [vmem:[%s12661_s1 + $0xa10] sm:$0xff]  ;;  %v2000_v32 = vld [vmem:[%s12661_s1 + $0xa38] sm:$0xff] }
 0x20e   : > { %v629_v35 = vadd.f32 %v618_v33, %v583_v39  ;;  %v2004_v36 = vld [vmem:[%s12661_s1 + $0xa58] sm:$0xff]  ;;  %v2014_v33 = vld [vmem:[%s12661_s1 + $0xaa8] sm:$0xff]  ;;  %vm12938_vm1 = vcmask 793600  }
 0x20f   : > { %v1596_v59 = vpop.permute.xlu1 %1595  ;;  %v1466_v40 = vadd.f32 %v1454_v12, %v1410_v23  ;;  %v1465_v31 = vadd.f32 %v1453_v17, %v1409_v10  ;;  %v12937_v20 = vld [vmem:[#allocation37_spill] sm:$0xff]  ;;  %v2006_v17 = vld [vmem:[%s12661_s1 + $0xa68] sm:$0xff]  ;;  %v7990_v50 = vpack.c.bf16 %v2009_v5, %v2004_v36 }
 0x210   : > { %v10882_v29 = vpop.permute.xlu0 %1597  ;;  %v1606_v38 = vsel %vm1603_vm15, %v12935_v27, %v1596_v59  ;;  %v2016_v39 = vld [vmem:[%s12661_s1 + $0xab8] sm:$0xff]  ;;  %v7992_v27 = vpack.c.bf16 %v2008_v41, %v2003_v54  ;;  %v2034_v54 = vld [vmem:[%s12661_s1 + $0xb48] sm:$0xff] }
 0x211   : > { %v1517_v55 = vadd.f32 %v1505_v42, %v1466_v40  ;;  %v1516_v60 = vadd.f32 %v1504_v21, %v1465_v31  ;;  %v1607_v8 = vsel %vm1603_vm15, %v1596_v59, %v10882_v29  ;;  %v2011_v59 = vld [vmem:[%s12661_s1 + $0xa90] sm:$0xff]  ;;  %v7988_v21 = vpack.c.bf16 %v1998_v7, %v1993_v63  ;;  %v2013_v63 = vld [vmem:[%s12661_s1 + $0xaa0] sm:$0xff] }
 0x212   : > { %v8158_v31 = vpack.c.bf16 %v2000_v32, %v1995_v37  ;;  %v8160_v2 = vpack.c.bf16 %v2011_v59, %v2006_v17  ;;  %v2020_v37 = vld [vmem:[%s12661_s1 + $0xad8] sm:$0xff] }
 0x213   : > { %v658_v30 = vpop.permute.xlu1 %657  ;;  %v1568_v49 = vadd.f32 %v1556_v48, %v1517_v55  ;;  %v1567_v4 = vadd.f32 %v1555_v62, %v1516_v60  ;;  %v2010_v62 = vld [vmem:[%s12661_s1 + $0xa88] sm:$0xff]  ;;  %v2019_v60 = vld [vmem:[%s12661_s1 + $0xad0] sm:$0xff]  ;;  %v2024_v32 = vld [vmem:[%s12661_s1 + $0xaf8] sm:$0xff] }
 0x214   : > { %v1647_v53 = vpop.permute.xlu0 %1646  ;;  %v664_v43 = vsel %vm659_vm2, %v12936_v28, %v658_v30  ;;  %v676_v13 = vadd.f32 %v658_v30, %v630_v1  ;;  %vm12939_vm2 = vcmask 785408  }
 0x215   : > { %v1619_v26 = vadd.f32 %v1607_v8, %v1568_v49  ;;  %v1657_v12 = vsel %vm1654_vm12, %v12937_v20, %v1647_v53  ;;  %v1618_v10 = vadd.f32 %v1606_v38, %v1567_v4  ;;  %v675_v42 = vadd.f32 %v664_v43, %v629_v35  ;;  %v2021_v8 = vld [vmem:[%s12661_s1 + $0xae0] sm:$0xff]  ;;  %v2026_v20 = vld [vmem:[%s12661_s1 + $0xb08] sm:$0xff] }
 0x216   : > { %v7994_v4 = vpack.c.bf16 %v2019_v60, %v2014_v33  ;;  %v8164_v35 = vpack.c.bf16 %v2021_v8, %v2016_v39 }
 0x217   : > { %v10921_v23 = vpop.permute.xlu1 %1648  ;;  %v10947_v48 = vadd.f32 %v1657_v12, %v1618_v10  ;;  %v2031_v12 = vld [vmem:[%s12661_s1 + $0xb30] sm:$0xff] }
 0x218   : > { %v1658_v40 = vsel %vm1654_vm12, %v1647_v53, %v10921_v23  ;;  %v704_v57 = vpop.permute.xlu0 %703 }
 0x219   : > { %v10937_v14 = vadd.f32 %v1658_v40, %v1619_v26  ;;  %v710_v11 = vsel %vm705_vm3, %v10389_v6, %v704_v57  ;;  %v722_v15 = vadd.f32 %v704_v57, %v676_v13  ;;  %v2005_v6 = vld [vmem:[%s12661_s1 + $0xa60] sm:$0xff]  ;;  %vm12940_vm3 = vcmask 588800  }
 0x21a   : > { %v721_v55 = vadd.f32 %v710_v11, %v675_v42  ;;  %v8162_v43 = vpack.c.bf16 %v2010_v62, %v2005_v6  ;;  %v2029_v13 = vld [vmem:[%s12661_s1 + $0xb20] sm:$0xff] }
 0x21b   : > { %v750_v30 = vpop.permute.xlu1 %749  ;;  %2254 = vmatprep.mubr.f32.mxu0 %v10937_v14  ;;  %2467 = vmatprep.mubr.f32.mxu1 %v10937_v14  ;;  %v2041_v6 = vld [vmem:[%s12661_s1 + $0xb80] sm:$0xff] }
 0x21c   : > { %v756_v53 = vsel %vm751_vm4, %v10426_v46, %v750_v30  ;;  %v768_v49 = vadd.f32 %v750_v30, %v722_v15  ;;  %v796_v1 = vpop.permute.xlu0 %795  ;;  %2255 = vmatmul.mubr.f32.vlgmr.msra.gmra.mrb[0].mxu0 %v10947_v48  ;;  %2468 = vmatmul.mubr.f32.vlgmr.msra.gmra.mrb[0].mxu1 %v10947_v48  ;;  %v2018_v46 = vld [vmem:[%s12661_s1 + $0xac8] sm:$0xff]  ;;  %v8168_v15 = vpack.c.bf16 %v2031_v12, %v2026_v20  ;;  %vm12941_vm4 = vcmask 580608   ;;  %v2043_v12 = vld [vmem:[%s12661_s1 + $0xb90] sm:$0xff] }
 0x21d   : > { %v767_v38 = vadd.f32 %v756_v53, %v721_v55  ;;  %v802_v28 = vsel %vm797_vm5, %v10460_v9, %v796_v1  ;;  %7989 = vmatpush1.bf16.msra.mxu0 %v7988_v21  ;;  %8159 = vmatpush1.bf16.msra.mxu1 %v8158_v31  ;;  %v2015_v9 = vld [vmem:[%s12661_s1 + $0xab0] sm:$0xff]  ;;  %v7996_v10 = vpack.c.bf16 %v2018_v46, %v2013_v63  ;;  %v2030_v31 = vld [vmem:[%s12661_s1 + $0xb28] sm:$0xff]  ;;  %vm12942_vm5 = vcmask 572416  }
 0x21e   : > { %v814_v7 = vadd.f32 %v796_v1, %v768_v49  ;;  %7991 = vmatprep.subr.bf16.mxu0 %v7990_v50  ;;  %8161 = vmatprep.subr.bf16.mxu1 %v8160_v2  ;;  %v8166_v57 = vpack.c.bf16 %v2020_v37, %v2015_v9  ;;  %v2023_v21 = vld [vmem:[%s12661_s1 + $0xaf0] sm:$0xff]  ;;  %v2036_v2 = vld [vmem:[%s12661_s1 + $0xb58] sm:$0xff]  ;;  %v2033_v49 = vld [vmem:[%s12661_s1 + $0xb40] sm:$0xff] }
 0x21f   : > { %v813_v36 = vadd.f32 %v802_v28, %v767_v38  ;;  %v842_v26 = vpop.permute.xlu1 %841  ;;  %v2039_v50 = vld [vmem:[%s12661_s1 + $0xb70] sm:$0xff]  ;;  %v8000_v60 = vpack.c.bf16 %v2028_v61, %v2023_v21  ;;  %v2038_v1 = vld [vmem:[%s12661_s1 + $0xb68] sm:$0xff]  ;;  %v8172_v38 = vpack.c.bf16 %v2041_v6, %v2036_v2  ;;  %v2040_v28 = vld [vmem:[%s12661_s1 + $0xb78] sm:$0xff] }
 0x220   : > { %v848_v5 = vsel %vm843_vm6, %v10494_v34, %v842_v26  ;;  %v860_v17 = vadd.f32 %v842_v26, %v814_v7  ;;  %v888_v59 = vpop.permute.xlu0 %887  ;;  %v7998_v34 = vpack.c.bf16 %v2029_v13, %v2024_v32  ;;  %v2049_v7 = vld [vmem:[%s12661_s1 + $0xbc0] sm:$0xff]  ;;  %v2059_v21 = vld [vmem:[%s12661_s1 + $0xc10] sm:$0xff]  ;;  %v2056_v61 = vld [vmem:[%s12661_s1 + $0xbf8] sm:$0xff]  ;;  %vm12943_vm6 = vcmask 564224  }
 0x221   : > { %v859_v42 = vadd.f32 %v848_v5, %v813_v36  ;;  %v894_v40 = vsel %vm12938_vm1, %v10528_v47, %v888_v59  ;;  %7993 = vmatpush1.bf16.msra.mxu0 %v7992_v27  ;;  %8163 = vmatpush1.bf16.msra.mxu1 %v8162_v43  ;;  %v2025_v47 = vld [vmem:[%s12661_s1 + $0xb00] sm:$0xff]  ;;  %v2044_v43 = vld [vmem:[%s12661_s1 + $0xb98] sm:$0xff]  ;;  %v8004_v36 = vpack.c.bf16 %v2038_v1, %v2033_v49  ;;  %v2058_v2 = vld [vmem:[%s12661_s1 + $0xc08] sm:$0xff]  ;;  %vm2103_vm1 = vcmask 1043456  }
 0x222   : > { %v906_v11 = vadd.f32 %v888_v59, %v860_v17  ;;  %7995 = vmatprep.subr.bf16.mxu0 %v7994_v4  ;;  %8165 = vmatprep.subr.bf16.mxu1 %v8164_v35  ;;  %v8170_v53 = vpack.c.bf16 %v2030_v31, %v2025_v47  ;;  %v2046_v4 = vld [vmem:[%s12661_s1 + $0xba8] sm:$0xff]  ;;  %v2051_v35 = vld [vmem:[%s12661_s1 + $0xbd0] sm:$0xff]  ;;  %v2048_v5 = vld [vmem:[%s12661_s1 + $0xbb8] sm:$0xff] }
 0x223   : > { %v905_v41 = vadd.f32 %v894_v40, %v859_v42  ;;  %v934_v55 = vpop.permute.xlu1 %933  ;;  %v8176_v59 = vpack.c.bf16 %v2051_v35, %v2046_v4  ;;  %v2054_v42 = vld [vmem:[%s12661_s1 + $0xbe8] sm:$0xff]  ;;  %v8008_v31 = vpack.c.bf16 %v2048_v5, %v2043_v12  ;;  %v2071_v49 = vld [vmem:[%s12661_s1 + $0xc70] sm:$0xff] }
 0x224   : > { %v940_v62 = vsel %vm12939_vm2, %v10565_v3, %v934_v55  ;;  %v952_v33 = vadd.f32 %v934_v55, %v906_v11  ;;  %v980_v30 = vpop.permute.xlu0 %979  ;;  %v8002_v3 = vpack.c.bf16 %v2039_v50, %v2034_v54  ;;  %v2061_v11 = vld [vmem:[%s12661_s1 + $0xc20] sm:$0xff]  ;;  %v2074_v4 = vld [vmem:[%s12661_s1 + $0xc88] sm:$0xff]  ;;  %vm12949_vm2 = vcmask 326656  }
 0x225   : > { %v951_v39 = vadd.f32 %v940_v62, %v905_v41  ;;  %v986_v8 = vsel %vm12940_vm3, %v10599_v45, %v980_v30  ;;  %7997 = vmatpush1.bf16.msra.mxu0 %v7996_v10  ;;  %8167 = vmatpush1.bf16.msra.mxu1 %v8166_v57  ;;  %v2035_v45 = vld [vmem:[%s12661_s1 + $0xb50] sm:$0xff]  ;;  %v2050_v10 = vld [vmem:[%s12661_s1 + $0xbc8] sm:$0xff]  ;;  %v2053_v50 = vld [vmem:[%s12661_s1 + $0xbe0] sm:$0xff]  ;;  %v8180_v6 = vpack.c.bf16 %v2061_v11, %v2056_v61  ;;  %vm8915_vm3 = vmmov 1  }
 0x226   : > { %v998_v27 = vadd.f32 %v980_v30, %v952_v33  ;;  %7999 = vmatprep.subr.bf16.mxu0 %v7998_v34  ;;  %8169 = vmatprep.subr.bf16.mxu1 %v8168_v15  ;;  %v8174_v20 = vpack.c.bf16 %v2040_v28, %v2035_v45  ;;  %v2055_v62 = vld [vmem:[%s12661_s1 + $0xbf0] sm:$0xff]  ;;  %v2064_v33 = vld [vmem:[%s12661_s1 + $0xc38] sm:$0xff]  ;;  %v2089_v11 = vld [vmem:[%s12661_s1 + $0xd00] sm:$0xf] }
 0x227   : > { %v997_v63 = vadd.f32 %v986_v8, %v951_v39  ;;  %v1026_v46 = vpop.permute.xlu1 %1025  ;;  %v2069_v8 = vld [vmem:[%s12661_s1 + $0xc60] sm:$0xff] }
 0x228   : > { %v1032_v9 = vsel %vm12941_vm4, %v10628_v22, %v1026_v46  ;;  %v1044_v37 = vadd.f32 %v1026_v46, %v998_v27  ;;  %v1072_v32 = vpop.permute.xlu0 %1071  ;;  %v8006_v22 = vpack.c.bf16 %v2049_v7, %v2044_v43  ;;  %v2063_v43 = vld [vmem:[%s12661_s1 + $0xc30] sm:$0xff]  ;;  %v2065_v7 = vld [vmem:[%s12661_s1 + $0xc40] sm:$0xff]  ;;  %vm11172_vm4 = vmpackc.low %vm2103_vm1, %vm8915_vm3  ;;  %vm4918_vm3 = vcmask 719872  }
 0x229   : > { %v1043_v26 = vadd.f32 %v1032_v9, %v997_v63  ;;  %v1078_v13 = vsel %vm12942_vm5, %v10656_v25, %v1072_v32  ;;  %8001 = vmatpush1.bf16.msra.mxu0 %v8000_v60  ;;  %8171 = vmatpush1.bf16.msra.mxu1 %v8170_v53  ;;  %v2045_v25 = vld [vmem:[%s12661_s1 + $0xba0] sm:$0xff]  ;;  %v2066_v53 = vld [vmem:[%s12661_s1 + $0xc48] sm:$0xff]  ;;  %v2068_v63 = vld [vmem:[%s12661_s1 + $0xc58] sm:$0xff]  ;;  %vm12952_vm5 = vcmask 121856  }
 0x22a   : > { %v1090_v17 = vadd.f32 %v1072_v32, %v1044_v37  ;;  %8003 = vmatprep.subr.bf16.mxu0 %v8002_v3  ;;  %8173 = vmatprep.subr.bf16.mxu1 %v8172_v38  ;;  %v8178_v55 = vpack.c.bf16 %v2050_v10, %v2045_v25  ;;  %v8012_v3 = vpack.c.bf16 %v2058_v2, %v2053_v50  ;;  %v2079_v32 = vld [vmem:[%s12661_s1 + $0xcb0] sm:$0xff]  ;;  %v2078_v25 = vld [vmem:[%s12661_s1 + $0xca8] sm:$0xff] }
 0x22b   : > { %v1089_v40 = vadd.f32 %v1078_v13, %v1043_v26  ;;  %v1118_v57 = vpop.permute.xlu1 %1117  ;;  %v8184_v46 = vpack.c.bf16 %v2071_v49, %v2066_v53  ;;  %v2081_v26 = vld [vmem:[%s12661_s1 + $0xcc0] sm:$0xff]  ;;  %v8016_v12 = vpack.c.bf16 %v2068_v63, %v2063_v43  ;;  %v1922_v49 = vld [vmem:[%s12661_s1 + $0x7c8] sm:$0xff] }
 0x22c   : > { %v1124_v34 = vsel %vm12943_vm6, %v10684_v19, %v1118_v57  ;;  %v1136_v15 = vadd.f32 %v1118_v57, %v1090_v17  ;;  %v1164_v47 = vpop.permute.xlu0 %1163  ;;  %v8010_v19 = vpack.c.bf16 %v2059_v21, %v2054_v42  ;;  %v2075_v42 = vld [vmem:[%s12661_s1 + $0xc90] sm:$0xff]  ;;  %v1917_v53 = vld [vmem:[%s12661_s1 + $0x7a0] sm:$0xff]  ;;  %vm12953_vm6 = vmmov %vm12952_vm5 }
 0x22d   : > { %v1135_v54 = vadd.f32 %v1124_v34, %v1089_v40  ;;  %v1170_v41 = vsel %vm12944_vm8, %v10715_v51, %v1164_v47  ;;  %8005 = vmatpush1.bf16.msra.mxu0 %v8004_v36  ;;  %8175 = vmatpush1.bf16.msra.mxu1 %v8174_v20  ;;  %v2060_v51 = vld [vmem:[%s12661_s1 + $0xc18] sm:$0xff]  ;;  %v2086_v34 = vld [vmem:[%s12661_s1 + $0xce8] sm:$0xff]  ;;  %vm2977_vm8 = vcmask 318464  }
 0x22e   : > { %8007 = vmatprep.subr.bf16.mxu0 %v8006_v22  ;;  %8177 = vmatprep.subr.bf16.mxu1 %v8176_v59  ;;  %v1182_v60 = vadd.f32 %v1164_v47, %v1136_v15  ;;  %v8182_v28 = vpack.c.bf16 %v2060_v51, %v2055_v62  ;;  %v2076_v36 = vld [vmem:[%s12661_s1 + $0xc98] sm:$0xff]  ;;  %v2073_v59 = vld [vmem:[%s12661_s1 + $0xc80] sm:$0xff]  ;;  %v2091_v15 = vld [vmem:[%s12661_s1 + $0xd10] sm:$0xf] }
 0x22f   : > { %v1181_v30 = vadd.f32 %v1170_v41, %v1135_v54  ;;  %v1210_v39 = vpop.permute.xlu1 %1209  ;;  %v8188_v10 = vpack.c.bf16 %v2081_v26, %v2076_v36  ;;  %v2084_v40 = vld [vmem:[%s12661_s1 + $0xcd8] sm:$0xff]  ;;  %v8020_v54 = vpack.c.bf16 %v2078_v25, %v2073_v59  ;;  %v2090_v51 = vld [vmem:[%s12661_s1 + $0xd08] sm:$0xf] }
 0x230   : > { %v1216_v1 = vsel %vm12945_vm11, %v10759_v16, %v1210_v39  ;;  %v1256_v27 = vpop.permute.xlu0 %1255  ;;  %v8014_v16 = vpack.c.bf16 %v2069_v8, %v2064_v33  ;;  %v1228_v35 = vadd.f32 %v1210_v39, %v1182_v60  ;;  %v2088_v62 = vld [vmem:[%s12661_s1 + $0xcf8] sm:$0xf]  ;;  %v1757_v33 = vld [vmem:[%s12661_s1 + $0x2a0] sm:$0xff]  ;;  %v1762_v8 = vld [vmem:[%s12661_s1 + $0x2c8] sm:$0xff]  ;;  %vm3254_vm11 = vcmask 48128  }
 0x231   : > { %v1227_v38 = vadd.f32 %v1216_v1, %v1181_v30  ;;  %v1262_v45 = vsel %vm12946_vm9, %v10781_v56, %v1256_v27  ;;  %8009 = vmatpush1.bf16.msra.mxu0 %v8008_v31  ;;  %8179 = vmatpush1.bf16.msra.mxu1 %v8178_v55  ;;  %v2070_v56 = vld [vmem:[%s12661_s1 + $0xc68] sm:$0xff]  ;;  %vm3261_vm9 = vcmask 1045504  }
 0x232   : > { %8011 = vmatprep.subr.bf16.mxu0 %v8010_v19  ;;  %8181 = vmatprep.subr.bf16.mxu1 %v8180_v6  ;;  %v8186_v22 = vpack.c.bf16 %v2070_v56, %v2065_v7  ;;  %v1274_v57 = vadd.f32 %v1256_v27, %v1228_v35  ;;  %v2083_v19 = vld [vmem:[%s12661_s1 + $0xcd0] sm:$0xff]  ;;  %v8192_v6 = vpack.c.bf16 %v2091_v15, %v2086_v34  ;;  %v1682_v59 = vld [vmem:[%s12661_s1 + $0x48] sm:$0xff] }
 0x233   : > { %v1273_v9 = vadd.f32 %v1262_v45, %v1227_v38  ;;  %v1302_v37 = vpop.permute.xlu1 %1301  ;;  %v8025_v27 = vpack.c.bf16 %v2088_v62, %v2083_v19  ;;  %v8198_v38 = vpack.c.bf16 %v1762_v8, %v1757_v33  ;;  %v8230_v45 = vpack.c.bf16 %v1922_v49, %v1917_v53  ;;  %v1842_v25 = vld [vmem:[%s12661_s1 + $0x548] sm:$0xff]  ;;  %v1687_v15 = vld [vmem:[%s12661_s1 + $0x70] sm:$0xff]  ;;  %v1697_v33 = vld [vmem:[%s12661_s1 + $0xc0] sm:$0xff] }
 0x234   : > { %v1308_v13 = vsel %vm12947_vm7, %v10795_v18, %v1302_v37  ;;  %v1348_v20 = vpop.permute.xlu0 %1347  ;;  %v8018_v18 = vpack.c.bf16 %v2079_v32, %v2074_v4  ;;  %v1320_v30 = vadd.f32 %v1302_v37, %v1274_v57  ;;  %v1772_v57 = vld [vmem:[%s12661_s1 + $0x318] sm:$0xff]  ;;  %v1857_v53 = vld [vmem:[%s12661_s1 + $0x5c0] sm:$0xff]  ;;  %v1862_v49 = vld [vmem:[%s12661_s1 + $0x5e8] sm:$0xff]  ;;  %vm4645_vm7 = vcmask 744448  }
 0x235   : > { %v1319_v5 = vadd.f32 %v1308_v13, %v1273_v9  ;;  %v1354_v17 = vsel %vm12948_vm10, %v10809_v24, %v1348_v20  ;;  %8013 = vmatpush1.bf16.msra.mxu0 %v8012_v3  ;;  %8183 = vmatpush1.bf16.msra.mxu1 %v8182_v28  ;;  %v2080_v24 = vld [vmem:[%s12661_s1 + $0xcb8] sm:$0xff]  ;;  %vm4736_vm10 = vcmask 736256  }
 0x236   : > { %8015 = vmatprep.subr.bf16.mxu0 %v8014_v16  ;;  %8185 = vmatprep.subr.bf16.mxu1 %v8184_v46  ;;  %v8190_v50 = vpack.c.bf16 %v2080_v24, %v2075_v42  ;;  %v1366_v28 = vadd.f32 %v1348_v20, %v1320_v30  ;;  %v1767_v42 = vld [vmem:[%s12661_s1 + $0x2f0] sm:$0xff]  ;;  %v1702_v30 = vld [vmem:[%s12661_s1 + $0xe8] sm:$0xff] }
 0x237   : > { %v1365_v21 = vadd.f32 %v1354_v17, %v1319_v5  ;;  %v1394_v61 = vpop.permute.xlu1 %1393 }
 0x238   : > { %v1400_v47 = vsel %vm12949_vm2, %v10823_v44, %v1394_v61  ;;  %v1447_v31 = vpop.permute.xlu0 %1446  ;;  %v2085_v44 = vld [vmem:[%s12661_s1 + $0xce0] sm:$0xff]  ;;  %v1412_v46 = vadd.f32 %v1394_v61, %v1366_v28  ;;  %v1707_v28 = vld [vmem:[%s12661_s1 + $0x110] sm:$0xff]  ;;  %vm4827_vm2 = vcmask 728064  }
 0x239   : > { %v1411_v41 = vadd.f32 %v1400_v47, %v1365_v21  ;;  %v1455_v55 = vsel %vm1450_vm14, %v10837_v52, %v1447_v31  ;;  %8017 = vmatpush1.bf16.msra.mxu0 %v8016_v12  ;;  %8187 = vmatpush1.bf16.msra.mxu1 %v8186_v22  ;;  %v8022_v52 = vpack.c.bf16 %v2089_v11, %v2084_v40  ;;  %v1677_v22 = vld [vmem:[%s12661_s1 + $0x20] sm:$0xff]  ;;  %v1927_v21 = vld [vmem:[%s12661_s1 + $0x7f0] sm:$0xff]  ;;  %v1692_v47 = vld [vmem:[%s12661_s1 + $0x98] sm:$0xff] }
 0x23a   : > { %8019 = vmatprep.subr.bf16.mxu0 %v8018_v18  ;;  %8189 = vmatprep.subr.bf16.mxu1 %v8188_v10  ;;  %v8195_v3 = vpack.c.bf16 %v2090_v51, %v2085_v44  ;;  %v8200_v11 = vpack.c.bf16 %v1682_v59, %v1677_v22  ;;  %v1782_v44 = vld [vmem:[%s12661_s1 + $0x368] sm:$0xff]  ;;  %v8204_v62 = vpack.c.bf16 %v1692_v47, %v1687_v15  ;;  %v1812_v22 = vld [vmem:[%s12661_s1 + $0x458] sm:$0xff]  ;;  %v1737_v47 = vld [vmem:[%s12661_s1 + $0x200] sm:$0xff] }
 0x23b   : > { %v1467_v60 = vadd.f32 %v1455_v55, %v1411_v41  ;;  %v1449_v39 = vpop.permute.xlu1 %1448  ;;  %v1852_v41 = vld [vmem:[%s12661_s1 + $0x598] sm:$0xff]  ;;  %v1777_v55 = vld [vmem:[%s12661_s1 + $0x340] sm:$0xff] }
 0x23c   : > { %v1498_v1 = vpop.permute.xlu0 %1497  ;;  %v1456_v16 = vsel %vm1450_vm14, %v1447_v31, %v1449_v39  ;;  %v8206_v39 = vpack.c.bf16 %v1782_v44, %v1777_v55  ;;  %v1972_v59 = vld [vmem:[%s12661_s1 + $0x958] sm:$0xff]  ;;  %v1827_v44 = vld [vmem:[%s12661_s1 + $0x4d0] sm:$0xff] }
 0x23d   : > { %8021 = vmatpush1.bf16.msra.mxu0 %v8020_v54  ;;  %8191 = vmatpush1.bf16.msra.mxu1 %v8190_v50  ;;  %v1468_v35 = vadd.f32 %v1456_v16, %v1412_v46  ;;  %v1506_v9 = vsel %vm12953_vm6, %v10851_v0, %v1498_v1  ;;  %v1847_v54 = vld [vmem:[%s12661_s1 + $0x570] sm:$0xff]  ;;  %v8202_v50 = vpack.c.bf16 %v1772_v57, %v1767_v42  ;;  %v1817_v57 = vld [vmem:[%s12661_s1 + $0x480] sm:$0xff]  ;;  %vm5191_vm6 = vcmask 637952  }
 0x23e   : > { %8024 = vmatprep.subr.msk.bf16.mxu0 %vm11172_vm4, %v8022_v52  ;;  %8194 = vmatprep.subr.msk.bf16.mxu1 %vm11172_vm4, %v8192_v6  ;;  %v1518_v13 = vadd.f32 %v1506_v9, %v1467_v60  ;;  %v1937_v52 = vld [vmem:[%s12661_s1 + $0x840] sm:$0xff]  ;;  %v1942_v6 = vld [vmem:[%s12661_s1 + $0x868] sm:$0xff]  ;;  %v8236_v51 = vpack.c.bf16 %v1852_v41, %v1847_v54  ;;  %v1867_v46 = vld [vmem:[%s12661_s1 + $0x610] sm:$0xff] }
 0x23f   : > { %v1500_v43 = vpop.permute.xlu1 %1499  ;;  %v12954_v60 = vld [vmem:[#allocation38_spill] sm:$0xff]  ;;  %v8238_v8 = vpack.c.bf16 %v1942_v6, %v1937_v52  ;;  %v1832_v52 = vld [vmem:[%s12661_s1 + $0x4f8] sm:$0xff]  ;;  %v1987_v6 = vld [vmem:[%s12661_s1 + $0x9d0] sm:$0xff] }
 0x240   : > { %v1549_v63 = vpop.permute.xlu0 %1548  ;;  %v1507_v56 = vsel %vm12952_vm5, %v1498_v1, %v1500_v43  ;;  %v1787_v1 = vld [vmem:[%s12661_s1 + $0x390] sm:$0xff]  ;;  %v1712_v43 = vld [vmem:[%s12661_s1 + $0x138] sm:$0xff]  ;;  %v1962_v9 = vld [vmem:[%s12661_s1 + $0x908] sm:$0xff]  ;;  %vm5100_vm5 = vcmask 646144  }
 0x241   : > { %8027 = vmatpush1.bf16.msk.msra.mxu0 %vm11172_vm4, %v8025_v27  ;;  %8197 = vmatpush1.bf16.msk.msra.mxu1 %vm11172_vm4, %v8195_v3  ;;  %v1519_v32 = vadd.f32 %v1507_v56, %v1468_v35  ;;  %v1557_v36 = vsel %vm1552_vm13, %v10870_v58, %v1549_v63  ;;  %v1837_v58 = vld [vmem:[%s12661_s1 + $0x520] sm:$0xff]  ;;  %v1947_v27 = vld [vmem:[%s12661_s1 + $0x890] sm:$0xff]  ;;  %v1952_v3 = vld [vmem:[%s12661_s1 + $0x8b8] sm:$0xff] }
 0x242   : > { %8199 = vmatprep.subr.bf16.mxu0 %v8198_v38  ;;  %8231 = vmatprep.subr.bf16.mxu1 %v8230_v45  ;;  %v1569_v0 = vadd.f32 %v1557_v36, %v1518_v13  ;;  %v8232_v34 = vpack.c.bf16 %v1842_v25, %v1837_v58  ;;  %v8208_v38 = vpack.c.bf16 %v1702_v30, %v1697_v33  ;;  %v1797_v56 = vld [vmem:[%s12661_s1 + $0x3e0] sm:$0xff]  ;;  %v1742_v54 = vld [vmem:[%s12661_s1 + $0x228] sm:$0xff]  ;;  %v1747_v30 = vld [vmem:[%s12661_s1 + $0x250] sm:$0xff] }
 0x243   : > { %v1551_v7 = vpop.permute.xlu1 %1550  ;;  %v8240_v45 = vpack.c.bf16 %v1862_v49, %v1857_v53  ;;  %v8242_v16 = vpack.c.bf16 %v1952_v3, %v1947_v27  ;;  %v1957_v35 = vld [vmem:[%s12661_s1 + $0x8e0] sm:$0xff]  ;;  %v1907_v53 = vld [vmem:[%s12661_s1 + $0x750] sm:$0xff]  ;;  %v1912_v49 = vld [vmem:[%s12661_s1 + $0x778] sm:$0xff] }
 0x244   : > { %v1600_v4 = vpop.permute.xlu0 %1599  ;;  %v1558_v37 = vsel %vm1552_vm13, %v1549_v63, %v1551_v7  ;;  %vm2099_vm13 = vcmask 228352   ;;  %v1872_v7 = vld [vmem:[%s12661_s1 + $0x638] sm:$0xff]  ;;  %v1717_v36 = vld [vmem:[%s12661_s1 + $0x160] sm:$0xff]  ;;  %v2002_v3 = vld [vmem:[%s12661_s1 + $0xa48] sm:$0xff] }
 0x245   : > { %v1570_v5 = vadd.f32 %v1558_v37, %v1519_v32  ;;  %v1608_v17 = vsel %vm1603_vm15, %v10882_v29, %v1600_v4  ;;  %v8212_v37 = vpack.c.bf16 %v1712_v43, %v1707_v28  ;;  %v8244_v32 = vpack.c.bf16 %v1872_v7, %v1867_v46  ;;  %v1997_v27 = vld [vmem:[%s12661_s1 + $0xa20] sm:$0xff]  ;;  %v2007_v28 = vld [vmem:[%s12661_s1 + $0xa70] sm:$0xff]  ;;  %v2012_v43 = vld [vmem:[%s12661_s1 + $0xa98] sm:$0xff] }
 0x246   : > { %v1620_v24 = vadd.f32 %v1608_v17, %v1569_v0  ;;  %v1807_v17 = vld [vmem:[%s12661_s1 + $0x430] sm:$0xff]  ;;  %v2017_v46 = vld [vmem:[%s12661_s1 + $0xac0] sm:$0xff]  ;;  %v2022_v7 = vld [vmem:[%s12661_s1 + $0xae8] sm:$0xff] }
 0x247   : > { %v1602_v26 = vpop.permute.xlu1 %1601  ;;  %v1967_v0 = vld [vmem:[%s12661_s1 + $0x930] sm:$0xff] }
 0x248   : > { %v1609_v20 = vsel %vm1603_vm15, %v1600_v4, %v1602_v26  ;;  %v1651_v12 = vpop.permute.xlu0 %1650  ;;  %v1802_v4 = vld [vmem:[%s12661_s1 + $0x408] sm:$0xff]  ;;  %v8250_v42 = vpack.c.bf16 %v1972_v59, %v1967_v0  ;;  %v2077_v0 = vld [vmem:[%s12661_s1 + $0xca0] sm:$0xff]  ;;  %vm2824_vm15 = vcmask 842752  }
 0x249   : > { %v1621_v18 = vadd.f32 %v1609_v20, %v1570_v5  ;;  %v1659_v29 = vsel %vm1654_vm12, %v10921_v23, %v1651_v12  ;;  %v1932_v23 = vld [vmem:[%s12661_s1 + $0x818] sm:$0xff]  ;;  %v1722_v26 = vld [vmem:[%s12661_s1 + $0x188] sm:$0xff]  ;;  %v8214_v13 = vpack.c.bf16 %v1802_v4, %v1797_v56  ;;  %v8246_v20 = vpack.c.bf16 %v1962_v9, %v1957_v35  ;;  %v2037_v35 = vld [vmem:[%s12661_s1 + $0xb60] sm:$0xff] }
 0x24a   : > { %v11253_v31 = vadd.f32 %v1659_v29, %v1620_v24  ;;  %v8234_v19 = vpack.c.bf16 %v1932_v23, %v1927_v21  ;;  %v1882_v5 = vld [vmem:[%s12661_s1 + $0x688] sm:$0xff]  ;;  %v8216_v58 = vpack.c.bf16 %v1722_v26, %v1717_v36  ;;  %v1732_v29 = vld [vmem:[%s12661_s1 + $0x1d8] sm:$0xff]  ;;  %v1887_v24 = vld [vmem:[%s12661_s1 + $0x6b0] sm:$0xff]  ;;  %v8269_v56 = vpack.c.bf16 %v2022_v7, %v2017_v46 }
 0x24b   : > { %v1653_v10 = vpop.permute.xlu1 %1652  ;;  %v1822_v21 = vld [vmem:[%s12661_s1 + $0x4a8] sm:$0xff]  ;;  %v1977_v23 = vld [vmem:[%s12661_s1 + $0x980] sm:$0xff]  ;;  %v2052_v36 = vld [vmem:[%s12661_s1 + $0xbd8] sm:$0xff] }
 0x24c   : > { %v1660_v40 = vsel %vm1654_vm12, %v1651_v12, %v1653_v10  ;;  %v1877_v12 = vld [vmem:[%s12661_s1 + $0x660] sm:$0xff]  ;;  %v8218_v10 = vpack.c.bf16 %v1812_v22, %v1807_v17  ;;  %v8222_v41 = vpack.c.bf16 %v1822_v21, %v1817_v57  ;;  %v2042_v9 = vld [vmem:[%s12661_s1 + $0xb88] sm:$0xff]  ;;  %v2072_v17 = vld [vmem:[%s12661_s1 + $0xc78] sm:$0xff]  ;;  %vm2799_vm12 = vcmask 850944  }
 0x24d   : > { %v11245_v61 = vadd.f32 %v1660_v40, %v1621_v18  ;;  %v8248_v25 = vpack.c.bf16 %v1882_v5, %v1877_v12  ;;  %v1727_v18 = vld [vmem:[%s12661_s1 + $0x1b0] sm:$0xff]  ;;  %v1892_v40 = vld [vmem:[%s12661_s1 + $0x6d8] sm:$0xff]  ;;  %v2082_v59 = vld [vmem:[%s12661_s1 + $0xcc8] sm:$0xff] }
 0x24e   : > { %v8252_v15 = vpack.c.bf16 %v1892_v40, %v1887_v24  ;;  %v2067_v5 = vld [vmem:[%s12661_s1 + $0xc50] sm:$0xff]  ;;  %v2839_v40 = vld [vmem:[%s12662_s2] sm:$0xff] }
 0x24f   : > { %7163 = vmatprep.mubr.msk.f32.mxu0 %vm2099_vm13, %v11245_v61  ;;  %7166 = vmatprep.mubr.msk.f32.mxu1 %vm2099_vm13, %v11245_v61  ;;  %v8284_v22 = vpack.c.bf16 %v2072_v17, %v2067_v5  ;;  %v2841_v57 = vld [vmem:[%s12662_s2 + $0x10] sm:$0xff]  ;;  %v2863_v7 = vld [vmem:[%s12662_s2 + $0xc0] sm:$0xff]  ;;  %v2876_v5 = vld [vmem:[%s12662_s2 + $0x128] sm:$0xff] }
 0x250   : > { %2326 = vmatmul.mubr.f32.vlgmr.msra.gmra.mrb[0].mxu0 %v11253_v31  ;;  %2539 = vmatmul.mubr.f32.vlgmr.msra.gmra.mrb[0].mxu1 %v11253_v31  ;;  %v8295_v21 = vpack.c.bf16 %v2841_v57, %v2839_v40  ;;  %v2878_v17 = vld [vmem:[%s12662_s2 + $0x138] sm:$0xff]  ;;  %v2884_v40 = vld [vmem:[%s12662_s2 + $0x168] sm:$0xff] }
 0x251   : > { %8201 = vmatpush3.bf16.msra.mxu0 %v8200_v11  ;;  %8233 = vmatpush3.bf16.msra.mxu1 %v8232_v34  ;;  %v1982_v11 = vld [vmem:[%s12661_s1 + $0x9a8] sm:$0xff]  ;;  %v8220_v34 = vpack.c.bf16 %v1732_v29, %v1727_v18  ;;  %v2092_v18 = vld [vmem:[%s12661_s1 + $0xd18] sm:$0xf] }
 0x252   : > { %2609 = vmatprep.mubr.f32.mxu0 %v12954_v60  ;;  %2679 = vmatprep.mubr.f32.mxu1 %v10937_v14  ;;  %v1792_v14 = vld [vmem:[%s12661_s1 + $0x3b8] sm:$0xff]  ;;  %v8254_v55 = vpack.c.bf16 %v1982_v11, %v1977_v23  ;;  %v8226_v60 = vpack.c.bf16 %v1832_v52, %v1827_v44  ;;  %v2843_v11 = vld [vmem:[%s12662_s2 + $0x20] sm:$0xff]  ;;  %v2852_v52 = vld [vmem:[%s12662_s2 + $0x68] sm:$0xff] }
 0x253   : > { %8203 = vmatprep.subr.bf16.mxu0 %v8202_v50  ;;  %8235 = vmatprep.subr.bf16.mxu1 %v8234_v19  ;;  %v8210_v63 = vpack.c.bf16 %v1792_v14, %v1787_v1  ;;  %v1897_v50 = vld [vmem:[%s12661_s1 + $0x700] sm:$0xff]  ;;  %v1902_v19 = vld [vmem:[%s12661_s1 + $0x728] sm:$0xff]  ;;  %v8260_v14 = vpack.c.bf16 %v1912_v49, %v1907_v53  ;;  %v2846_v23 = vld [vmem:[%s12662_s2 + $0x38] sm:$0xff] }
 0x254   : > { %v8256_v33 = vpack.c.bf16 %v1902_v19, %v1897_v50  ;;  %v2849_v19 = vld [vmem:[%s12662_s2 + $0x50] sm:$0xff]  ;;  %v2886_v57 = vld [vmem:[%s12662_s2 + $0x178] sm:$0xff] }
 0x255   : > { %8205 = vmatpush3.bf16.msra.mxu0 %v8204_v62  ;;  %8237 = vmatpush3.bf16.msra.mxu1 %v8236_v51  ;;  %v1992_v62 = vld [vmem:[%s12661_s1 + $0x9f8] sm:$0xff]  ;;  %v8224_v51 = vpack.c.bf16 %v1742_v54, %v1737_v47  ;;  %v2848_v54 = vld [vmem:[%s12662_s2 + $0x48] sm:$0xff]  ;;  %v2857_v49 = vld [vmem:[%s12662_s2 + $0x90] sm:$0xff] }
 0x256   : > { %8207 = vmatprep.subr.bf16.mxu0 %v8206_v39  ;;  %8239 = vmatprep.subr.bf16.mxu1 %v8238_v8  ;;  %v8258_v39 = vpack.c.bf16 %v1992_v62, %v1987_v6  ;;  %v1752_v8 = vld [vmem:[%s12661_s1 + $0x278] sm:$0xff]  ;;  %v2851_v62 = vld [vmem:[%s12662_s2 + $0x60] sm:$0xff] }
 0x257   : > { %v8228_v1 = vpack.c.bf16 %v1752_v8, %v1747_v30  ;;  %v2854_v6 = vld [vmem:[%s12662_s2 + $0x78] sm:$0xff]  ;;  %v2855_v8 = vld [vmem:[%s12662_s2 + $0x80] sm:$0xff] }
 0x259   : > { %8209 = vmatpush3.bf16.msra.mxu0 %v8208_v38  ;;  %8241 = vmatpush3.bf16.msra.mxu1 %v8240_v45  ;;  %v8263_v38 = vpack.c.bf16 %v2002_v3, %v1997_v27  ;;  %v8916_v45 = vmov 0.0|0.0   ;;  %v8311_v27 = vpack.c.bf16 %v2857_v49, %v2855_v8  ;;  %v2895_v49 = vld [vmem:[%s12662_s2 + $0x1c0] sm:$0xff] }
 0x25a   : > { %8211 = vmatprep.subr.bf16.mxu0 %v8210_v63  ;;  %8243 = vmatprep.subr.bf16.mxu1 %v8242_v16  ;;  %v12955_v63 = vld [vmem:[#allocation40_spill] sm:$0xff]  ;;  %v8266_v16 = vpack.c.bf16 %v2012_v43, %v2007_v28  ;;  %v2864_v43 = vld [vmem:[%s12662_s2 + $0xc8] sm:$0xff] }
 0x25b   : > { %v2861_v28 = vld [vmem:[%s12662_s2 + $0xb0] sm:$0xff] }
 0x25d   : > { %8213 = vmatpush3.bf16.msra.mxu0 %v8212_v37  ;;  %8245 = vmatpush3.bf16.msra.mxu1 %v8244_v32  ;;  %v8275_v37 = vpack.c.bf16 %v2042_v9, %v2037_v35  ;;  %v2047_v32 = vld [vmem:[%s12661_s1 + $0xbb0] sm:$0xff]  ;;  %v2867_v9 = vld [vmem:[%s12662_s2 + $0xe0] sm:$0xff] }
 0x25e   : > { %8215 = vmatprep.subr.bf16.mxu0 %v8214_v13  ;;  %8247 = vmatprep.subr.bf16.mxu1 %v8246_v20  ;;  %v8278_v26 = vpack.c.bf16 %v2052_v36, %v2047_v32  ;;  %v2057_v13 = vld [vmem:[%s12661_s1 + $0xc00] sm:$0xff]  ;;  %v2062_v20 = vld [vmem:[%s12661_s1 + $0xc28] sm:$0xff]  ;;  %v2874_v36 = vld [vmem:[%s12662_s2 + $0x118] sm:$0xff] }
 0x25f   : > { %v8281_v12 = vpack.c.bf16 %v2062_v20, %v2057_v13  ;;  %v2872_v32 = vld [vmem:[%s12662_s2 + $0x108] sm:$0xff]  ;;  %v2871_v20 = vld [vmem:[%s12662_s2 + $0x100] sm:$0xff] }
 0x260   : > { %v8325_v13 = vpack.c.bf16 %v2874_v36, %v2872_v32  ;;  %v2906_v32 = vld [vmem:[%s12662_s2 + $0x218] sm:$0xff] }
 0x261   : > { %8217 = vmatpush3.bf16.msra.mxu0 %v8216_v58  ;;  %8249 = vmatpush3.bf16.msra.mxu1 %v8248_v25  ;;  %v8287_v58 = vpack.c.bf16 %v2082_v59, %v2077_v0  ;;  %v2087_v25 = vld [vmem:[%s12661_s1 + $0xcf0] sm:$0xff]  ;;  %v8329_v0 = vpack.c.bf16 %v2878_v17, %v2876_v5  ;;  %v2875_v59 = vld [vmem:[%s12662_s2 + $0x120] sm:$0xff] }
 0x262   : > { %8219 = vmatprep.subr.bf16.mxu0 %v8218_v10  ;;  %8251 = vmatprep.subr.bf16.mxu1 %v8250_v42  ;;  %v8290_v29 = vpack.c.bf16 %v2092_v18, %v2087_v25  ;;  %v2840_v10 = vld [vmem:[%s12662_s2 + $0x8] sm:$0xff]  ;;  %v2842_v42 = vld [vmem:[%s12662_s2 + $0x18] sm:$0xff] }
 0x263   : > { %v8293_v24 = vpack.c.bf16 %v2842_v42, %v2840_v10  ;;  %v2880_v25 = vld [vmem:[%s12662_s2 + $0x148] sm:$0xff]  ;;  %v2882_v18 = vld [vmem:[%s12662_s2 + $0x158] sm:$0xff]  ;;  %v2879_v42 = vld [vmem:[%s12662_s2 + $0x140] sm:$0xff] }
 0x264   : > { %v8333_v10 = vpack.c.bf16 %v2882_v18, %v2880_v25 }
 0x265   : > { %8221 = vmatpush3.bf16.msra.mxu0 %v8220_v34  ;;  %8253 = vmatpush3.bf16.msra.mxu1 %v8252_v15  ;;  %v2845_v15 = vld [vmem:[%s12662_s2 + $0x30] sm:$0xff] }
 0x266   : > { %8223 = vmatprep.subr.bf16.mxu0 %v8222_v41  ;;  %8255 = vmatprep.subr.bf16.mxu1 %v8254_v55  ;;  %v8299_v47 = vpack.c.bf16 %v2845_v15, %v2843_v11  ;;  %v2850_v41 = vld [vmem:[%s12662_s2 + $0x58] sm:$0xff]  ;;  %v2847_v55 = vld [vmem:[%s12662_s2 + $0x40] sm:$0xff]  ;;  %v2885_v11 = vld [vmem:[%s12662_s2 + $0x170] sm:$0xff] }
 0x267   : > { %v8301_v50 = vpack.c.bf16 %v2850_v41, %v2848_v54  ;;  %v8303_v44 = vpack.c.bf16 %v2849_v19, %v2847_v55  ;;  %v2890_v15 = vld [vmem:[%s12662_s2 + $0x198] sm:$0xff]  ;;  %v2887_v41 = vld [vmem:[%s12662_s2 + $0x180] sm:$0xff]  ;;  %v2889_v55 = vld [vmem:[%s12662_s2 + $0x190] sm:$0xff] }
 0x268   : > { %v2892_v19 = vld [vmem:[%s12662_s2 + $0x1a8] sm:$0xff] }
 0x269   : > { %8225 = vmatpush3.bf16.msra.mxu0 %v8224_v51  ;;  %8257 = vmatpush3.bf16.msra.mxu1 %v8256_v33  ;;  %v8305_v51 = vpack.c.bf16 %v2854_v6, %v2852_v52  ;;  %v2853_v33 = vld [vmem:[%s12662_s2 + $0x70] sm:$0xff]  ;;  %v2891_v6 = vld [vmem:[%s12662_s2 + $0x1a0] sm:$0xff] }
 0x26a   : > { %8227 = vmatprep.subr.bf16.mxu0 %v8226_v60  ;;  %8259 = vmatprep.subr.bf16.mxu1 %v8258_v39  ;;  %v8307_v30 = vpack.c.bf16 %v2853_v33, %v2851_v62  ;;  %v2856_v60 = vld [vmem:[%s12662_s2 + $0x88] sm:$0xff]  ;;  %v2858_v39 = vld [vmem:[%s12662_s2 + $0x98] sm:$0xff]  ;;  %v2893_v62 = vld [vmem:[%s12662_s2 + $0x1b0] sm:$0xff] }
 0x26b   : > { %v8309_v53 = vpack.c.bf16 %v2858_v39, %v2856_v60  ;;  %v2898_v60 = vld [vmem:[%s12662_s2 + $0x1d8] sm:$0xff] }
 0x26d   : > { %8229 = vmatpush3.bf16.msra.mxu0 %v8228_v1  ;;  %8261 = vmatpush3.bf16.msra.mxu1 %v8260_v14  ;;  %v2860_v1 = vld [vmem:[%s12662_s2 + $0xa8] sm:$0xff]  ;;  %v2862_v14 = vld [vmem:[%s12662_s2 + $0xb8] sm:$0xff] }
 0x26e   : > { %8262 = vmatprep.subr.bf16.mxu0 %v8916_v45  ;;  %8294 = vmatprep.subr.bf16.mxu1 %v8293_v24  ;;  %v8313_v3 = vpack.c.bf16 %v2862_v14, %v2860_v1  ;;  %v2881_v24 = vld [vmem:[%s12662_s2 + $0x150] sm:$0xff] }
 0x26f   : > { %v2897_v1 = vld [vmem:[%s12662_s2 + $0x1d0] sm:$0xff] }
 0x270   : > { %2610 = vmatmul.mubr.f32.vlgmr.msra.gmra.mrb[2].mxu0 %v12955_v63  ;;  %2680 = vmatmul.mubr.f32.vlgmr.msra.gmra.mrb[2].mxu1 %v10947_v48  ;;  %v2027_v48 = vld [vmem:[%s12661_s1 + $0xb10] sm:$0xff]  ;;  %v2866_v63 = vld [vmem:[%s12662_s2 + $0xd8] sm:$0xff] }
 0x271   : > { %8264 = vmatpush1.bf16.msra.mxu0 %v8263_v38  ;;  %7168 = vmatprep.mubr.msk.f32.mxu0 %vm2099_vm13, %v11245_v61  ;;  %v2032_v61 = vld [vmem:[%s12661_s1 + $0xb38] sm:$0xff]  ;;  %v2859_v38 = vld [vmem:[%s12662_s2 + $0xa0] sm:$0xff]  ;;  %v8317_v46 = vpack.c.bf16 %v2866_v63, %v2864_v43  ;;  %vm5282_vm13 = vcmask 629760  }
 0x272   : > { %8265 = vmatprep.subr.bf16.mxu0 %v8916_v45  ;;  %v8272_v4 = vpack.c.bf16 %v2032_v61, %v2027_v48  ;;  %8296 = vmatpush1.bf16.msra.mxu1 %v8295_v21  ;;  %v2868_v48 = vld [vmem:[%s12662_s2 + $0xe8] sm:$0xff]  ;;  %v2870_v61 = vld [vmem:[%s12662_s2 + $0xf8] sm:$0xff]  ;;  %v8335_v21 = vpack.c.bf16 %v2881_v24, %v2879_v42 }
 0x273   : > { %v8321_v35 = vpack.c.bf16 %v2870_v61, %v2868_v48  ;;  %v2899_v61 = vld [vmem:[%s12662_s2 + $0x1e0] sm:$0xff] }
 0x275   : > { %8267 = vmatpush1.bf16.msra.mxu0 %v8266_v16  ;;  %v8315_v16 = vpack.c.bf16 %v2861_v28, %v2859_v38  ;;  %v8351_v28 = vpack.c.bf16 %v2897_v1, %v2895_v49 }
 0x276   : > { %8268 = vmatprep.subr.bf16.mxu0 %v8916_v45 }
 0x279   : > { %8270 = vmatpush1.bf16.msra.mxu0 %v8269_v56  ;;  %v2865_v56 = vld [vmem:[%s12662_s2 + $0xd0] sm:$0xff] }
 0x27a   : > { %8271 = vmatprep.subr.bf16.mxu0 %v8916_v45 }
 0x27d   : > { %8273 = vmatpush1.bf16.msra.mxu0 %v8272_v4  ;;  %v8319_v4 = vpack.c.bf16 %v2865_v56, %v2863_v7  ;;  %v2902_v7 = vld [vmem:[%s12662_s2 + $0x1f8] sm:$0xff] }
 0x27e   : > { %8274 = vmatprep.subr.bf16.mxu0 %v8916_v45 }
 0x281   : > { %8276 = vmatpush1.bf16.msra.mxu0 %v8275_v37  ;;  %v2869_v37 = vld [vmem:[%s12662_s2 + $0xf0] sm:$0xff] }
 0x282   : > { %8277 = vmatprep.subr.bf16.mxu0 %v8916_v45 }
 0x284   : > { %v2097_v33 = vpop.permute.xlu0 %2096 }
 0x285   : > { %8279 = vmatpush1.bf16.msra.mxu0 %v8278_v26  ;;  %v8323_v26 = vpack.c.bf16 %v2869_v37, %v2867_v9  ;;  %v2904_v37 = vld [vmem:[%s12662_s2 + $0x208] sm:$0xff] }
 0x286   : > { %8280 = vmatprep.subr.bf16.mxu0 %v8916_v45  ;;  %v8357_v36 = vpack.c.bf16 %v2906_v32, %v2904_v37  ;;  %v2916_v37 = vld [vmem:[%s12662_s2 + $0x268] sm:$0xff]  ;;  %v2918_v32 = vld [vmem:[%s12662_s2 + $0x278] sm:$0xff] }
 0x289   : > { %8282 = vmatpush1.bf16.msra.mxu0 %v8281_v12  ;;  %v2873_v12 = vld [vmem:[%s12662_s2 + $0x110] sm:$0xff] }
 0x28a   : > { %8283 = vmatprep.subr.bf16.mxu0 %v8916_v45 }
 0x28d   : > { %8285 = vmatpush1.bf16.msra.mxu0 %v8284_v22  ;;  %v8327_v22 = vpack.c.bf16 %v2873_v12, %v2871_v20 }
 0x28e   : > { %8286 = vmatprep.subr.bf16.mxu0 %v8916_v45 }
 0x291   : > { %8288 = vmatpush1.bf16.msra.mxu0 %v8287_v58  ;;  %v2877_v58 = vld [vmem:[%s12662_s2 + $0x130] sm:$0xff] }
 0x292   : > { %8289 = vmatprep.subr.bf16.mxu0 %v8916_v45 }
 0x295   : > { %8292 = vmatpush1.bf16.msk.msra.mxu0 %vm11172_vm4, %v8290_v29  ;;  %v8331_v29 = vpack.c.bf16 %v2877_v58, %v2875_v59 }
 0x298   : > { %2750 = vmatmul.mubr.f32.vlgmr.msra.gmra.mrb[4].mxu0 %v11253_v31  ;;  %v2844_v31 = vld [vmem:[%s12662_s2 + $0x28] sm:$0xff] }
 0x299   : > { %v8297_v34 = vpack.c.bf16 %v2846_v23, %v2844_v31  ;;  %v8337_v31 = vpack.c.bf16 %v2886_v57, %v2884_v40  ;;  %v2883_v23 = vld [vmem:[%s12662_s2 + $0x160] sm:$0xff] }
 0x29b   : > { %8298 = vmatprep.subr.bf16.mxu1 %v8297_v34  ;;  %v2888_v34 = vld [vmem:[%s12662_s2 + $0x188] sm:$0xff] }
 0x29c   : > { %8300 = vmatpush1.bf16.msra.mxu1 %v8299_v47  ;;  %v8339_v47 = vpack.c.bf16 %v2885_v11, %v2883_v23  ;;  %v8341_v54 = vpack.c.bf16 %v2890_v15, %v2888_v34 }
 0x29d   : > { %8302 = vmatprep.subr.bf16.mxu1 %v8301_v50  ;;  %v8343_v50 = vpack.c.bf16 %v2889_v55, %v2887_v41 }
 0x2a0   : > { %8304 = vmatpush1.bf16.msra.mxu1 %v8303_v44  ;;  %v2894_v44 = vld [vmem:[%s12662_s2 + $0x1b8] sm:$0xff] }
 0x2a1   : > { %8306 = vmatprep.subr.bf16.mxu1 %v8305_v51  ;;  %v8345_v52 = vpack.c.bf16 %v2894_v44, %v2892_v19  ;;  %v8347_v51 = vpack.c.bf16 %v2893_v62, %v2891_v6  ;;  %v2903_v62 = vld [vmem:[%s12662_s2 + $0x200] sm:$0xff] }
 0x2a4   : > { %8308 = vmatpush1.bf16.msra.mxu1 %v8307_v30  ;;  %v2896_v30 = vld [vmem:[%s12662_s2 + $0x1c8] sm:$0xff] }
 0x2a5   : > { %8310 = vmatprep.subr.bf16.mxu1 %v8309_v53  ;;  %v8349_v53 = vpack.c.bf16 %v2898_v60, %v2896_v30  ;;  %v2908_v30 = vld [vmem:[%s12662_s2 + $0x228] sm:$0xff]  ;;  %v2910_v60 = vld [vmem:[%s12662_s2 + $0x238] sm:$0xff] }
 0x2a8   : > { %8312 = vmatpush1.bf16.msra.mxu1 %v8311_v27 }
 0x2a9   : > { %8314 = vmatprep.subr.bf16.mxu1 %v8313_v3 }
 0x2ac   : > { %8316 = vmatpush1.bf16.msra.mxu1 %v8315_v16 }
 0x2ad   : > { %8318 = vmatprep.subr.bf16.mxu1 %v8317_v46  ;;  %v2900_v46 = vld [vmem:[%s12662_s2 + $0x1e8] sm:$0xff] }
 0x2ae   : > { %v8353_v48 = vpack.c.bf16 %v2902_v7, %v2900_v46  ;;  %v2912_v7 = vld [vmem:[%s12662_s2 + $0x248] sm:$0xff] }
 0x2b0   : > { %8320 = vmatpush1.bf16.msra.mxu1 %v8319_v4  ;;  %v2901_v4 = vld [vmem:[%s12662_s2 + $0x1f0] sm:$0xff] }
 0x2b1   : > { %8322 = vmatprep.subr.bf16.mxu1 %v8321_v35  ;;  %v8355_v35 = vpack.c.bf16 %v2901_v4, %v2899_v61 }
 0x2b4   : > { %8324 = vmatpush1.bf16.msra.mxu1 %v8323_v26 }
 0x2b5   : > { %8326 = vmatprep.subr.bf16.mxu1 %v8325_v13 }
 0x2b8   : > { %8328 = vmatpush1.bf16.msra.mxu1 %v8327_v22 }
 0x2b9   : > { %8330 = vmatprep.subr.bf16.mxu1 %v8329_v0 }
 0x2bc   : > { %8332 = vmatpush1.bf16.msra.mxu1 %v8331_v29 }
 0x2bd   : > { %8334 = vmatprep.subr.bf16.mxu1 %v8333_v10 }
 0x2c0   : > { %8336 = vmatpush1.bf16.msra.mxu1 %v8335_v21 }
 0x2c1   : > { %8338 = vmatprep.subr.bf16.mxu1 %v8337_v31 }
 0x2c4   : > { %8340 = vmatpush1.bf16.msra.mxu1 %v8339_v47 }
 0x2c5   : > { %8342 = vmatprep.subr.bf16.mxu1 %v8341_v54 }
 0x2c8   : > { %8344 = vmatpush1.bf16.msra.mxu1 %v8343_v50 }
 0x2c9   : > { %8346 = vmatprep.subr.bf16.mxu1 %v8345_v52 }
 0x2cc   : > { %8348 = vmatpush1.bf16.msra.mxu1 %v8347_v51  ;;  %v2905_v51 = vld [vmem:[%s12662_s2 + $0x210] sm:$0xff] }
 0x2cd   : > { %8350 = vmatprep.subr.bf16.mxu1 %v8349_v53 }
 0x2d0   : > { %8352 = vmatpush1.bf16.msra.mxu1 %v8351_v28  ;;  %v2907_v28 = vld [vmem:[%s12662_s2 + $0x220] sm:$0xff] }
 0x2d1   : > { %8354 = vmatprep.subr.bf16.mxu1 %v8353_v48 }
 0x2d4   : > { %8356 = vmatpush1.bf16.msra.mxu1 %v8355_v35  ;;  %v2913_v35 = vld [vmem:[%s12662_s2 + $0x250] sm:$0xff] }
 0x2d5   : > { %8358 = vmatprep.subr.bf16.mxu1 %v8357_v36 }
 0x323   : > { %v2327_v39 = vpop.f32.mrb[0].mxu0  ;;  %v2540_v8 = vpop.f32.mrb[0].mxu1 }
 0x324   : > { %v8551_v14 = vadd.f32 %v2327_v39, %v2097_v33  ;;  %v11670_v27 = vadd.f32 %v2540_v8, %v2097_v33  ;;  %v2329_v3 = vpop.f32.mrb[1].mxu0  ;;  %v2542_v38 = vpop.f32.mrb[1].mxu1 }
 0x325   : > { %v8552_v43 = vadd.f32 %v2329_v3, %v2097_v33  ;;  %v8554_v26 = vadd.f32 %v2542_v38, %v2097_v33  ;;  %v8361_v38 = vpack.c.bf16 %v2910_v60, %v2908_v30  ;;  %v2935_v30 = vld [vmem:[%s12662_s2 + $0x300] sm:$0xff]  ;;  %v2937_v60 = vld [vmem:[%s12662_s2 + $0x310] sm:$0xff] }
 0x326   : > { %v11672_v63 = vmax.f32 %v8551_v14, 0.0  ;;  %v2757_v16 = vmax.f32 %v11670_v27, 0.0  ;;  %v8359_v14 = vpack.c.bf16 %v2905_v51, %v2903_v62 }
 0x327   : > { %v2756_v56 = vmax.f32 %v8552_v43, 0.0  ;;  %v11702_v13 = vmax.f32 %v8554_v26, 0.0  ;;  %v2909_v43 = vld [vmem:[%s12662_s2 + $0x230] sm:$0xff] }
 0x328   : > { %2765 = vrot.lane.b32.xlu1 %v11672_v63, %s12842_s16  ;;  %v8363_v4 = vpack.c.bf16 %v2909_v43, %v2907_v28 }
 0x329   : > { %v8791_v9 = vpack.i.bf16 %v2757_v16, %v2756_v56 }
 0x32b   : > { %8792 = vrot.lane.b32.xlu0 %v8791_v9, %s8917_s29 }
 0x32c   : > { %8787 = vrot.lane.b32.xlu1 %v8791_v9, %s12842_s16 }
 0x32f   : > { %8797 = vrot.lane.b32.xlu0 %v8791_v9, %s8918_s13 }
 0x330   : > { %2789 = vrot.lane.b32.xlu1 %v11672_v63, %s8917_s29 }
 0x333   : > { %2771 = vrot.lane.b32.xlu0 %v11702_v13, %s12842_s16 }
 0x334   : > { %2814 = vrot.lane.b32.xlu1 %v11672_v63, %s8918_s13 }
 0x337   : > { %2795 = vrot.lane.b32.xlu0 %v11702_v13, %s8917_s29 }
 0x33b   : > { %2820 = vrot.lane.b32.xlu0 %v11702_v13, %s8918_s13 }
 0x343   : > { %v7307_v20 = vpop.f32.mrb[2].mxu0  ;;  %v7342_v12 = vpop.f32.mrb[2].mxu1 }
 0x344   : > { %v7308_v5 = vpop.f32.mrb[3].mxu0  ;;  %v7343_v17 = vpop.f32.mrb[3].mxu1 }
 0x345   : > { %v7309_v22 = vadd.f32 %v7308_v5, %v7307_v20  ;;  %v7344_v0 = vadd.f32 %v7343_v17, %v7342_v12  ;;  %v8369_v12 = vpack.c.bf16 %v2918_v32, %v2916_v37  ;;  %v2915_v5 = vld [vmem:[%s12662_s2 + $0x260] sm:$0xff]  ;;  %v2917_v17 = vld [vmem:[%s12662_s2 + $0x270] sm:$0xff]  ;;  %v2954_v37 = vld [vmem:[%s12662_s2 + $0x398] sm:$0xff] }
 0x347   : > { %v2612_v59 = vadd.f32 %v7309_v22, %v2097_v33  ;;  %v2920_v22 = vld [vmem:[%s12662_s2 + $0x288] sm:$0xff] }
 0x349   : > { %v2682_v58 = vadd.f32 %v7344_v0, %v2612_v59  ;;  %v2922_v0 = vld [vmem:[%s12662_s2 + $0x298] sm:$0xff]  ;;  %v8371_v59 = vpack.c.bf16 %v2917_v17, %v2915_v5  ;;  %v2956_v5 = vld [vmem:[%s12662_s2 + $0x3a8] sm:$0xff] }
 0x34a   : > { %v2958_v17 = vld [vmem:[%s12662_s2 + $0x3b8] sm:$0xff] }
 0x36b   : > { %v2751_v25 = vpop.f32.mrb[4].mxu0 }
 0x36c   : > { %v2752_v18 = vadd.f32 %v2751_v25, %v2682_v58  ;;  %v2753_v29 = vpop.f32.mrb[5].mxu0  ;;  %v8373_v58 = vpack.c.bf16 %v2922_v0, %v2920_v22  ;;  %v2919_v25 = vld [vmem:[%s12662_s2 + $0x280] sm:$0xff]  ;;  %v8409_v0 = vpack.c.bf16 %v2958_v17, %v2956_v5 }
 0x36d   : > { %v2924_v29 = vld [vmem:[%s12662_s2 + $0x2a8] sm:$0xff]  ;;  %v3209_v5 = vld [vmem:[%s12667_s7 + $0x40] sm:$0xff] }
 0x36e   : > { %v11712_v10 = vmax.f32 %v2752_v18, 0.0  ;;  %v2921_v18 = vld [vmem:[%s12662_s2 + $0x290] sm:$0xff] }
 0x370   : > { %2773 = vrot.lane.b32.xlu1 %v11712_v10, %s12842_s16 }
 0x374   : > { %2797 = vrot.lane.b32.xlu1 %v11712_v10, %s8917_s29 }
 0x378   : > { %2822 = vrot.lane.b32.xlu1 %v11712_v10, %s8918_s13 }
 0x39a   : > { %v2766_v42 = vpop.permute.xlu1 %2765 }
 0x39d   : > { %v8793_v24 = vpop.permute.xlu0 %8792 }
 0x39e   : > { %v8788_v40 = vpop.permute.xlu1 %8787  ;;  %v8795_v57 = vunpack.i.h.bf16 %v8793_v24  ;;  %v8794_v21 = vunpack.i.l.bf16 %v8793_v24  ;;  %v8375_v24 = vpack.c.bf16 %v2921_v18, %v2919_v25  ;;  %v2960_v25 = vld [vmem:[%s12662_s2 + $0x3c8] sm:$0xff]  ;;  %v2962_v18 = vld [vmem:[%s12662_s2 + $0x3d8] sm:$0xff] }
 0x39f   : > { %v8790_v31 = vunpack.i.h.bf16 %v8788_v40  ;;  %v8789_v23 = vunpack.i.l.bf16 %v8788_v40 }
 0x3a0   : > { %v2801_v44 = vsel %vm2799_vm12, %v8794_v21, %v8795_v57 }
 0x3a1   : > { %v2776_v11 = vsel %vm567_vm0, %v8789_v23, %v8790_v31  ;;  %v8798_v34 = vpop.permute.xlu0 %8797  ;;  %v2775_v15 = vsel %vm567_vm0, %v2766_v42, %v8789_v23  ;;  %v2926_v42 = vld [vmem:[%s12662_s2 + $0x2b8] sm:$0xff] }
 0x3a2   : > { %v2785_v47 = vmax.f32 %v2756_v56, %v2776_v11  ;;  %v8800_v54 = vunpack.i.h.bf16 %v8798_v34  ;;  %v8799_v41 = vunpack.i.l.bf16 %v8798_v34  ;;  %v2790_v55 = vpop.permute.xlu1 %2789  ;;  %v2784_v50 = vmax.f32 %v11672_v63, %v2775_v15  ;;  %v2914_v56 = vld [vmem:[%s12662_s2 + $0x258] sm:$0xff]  ;;  %v2927_v15 = vld [vmem:[%s12662_s2 + $0x2c0] sm:$0xff] }
 0x3a3   : > { %v2800_v19 = vsel %vm2799_vm12, %v2790_v55, %v8794_v21  ;;  %v8365_v27 = vpack.c.bf16 %v2914_v56, %v2912_v7  ;;  %v8377_v40 = vpack.c.bf16 %v2926_v42, %v2924_v29  ;;  %v2925_v21 = vld [vmem:[%s12662_s2 + $0x2b0] sm:$0xff]  ;;  %v2930_v23 = vld [vmem:[%s12662_s2 + $0x2d8] sm:$0xff]  ;;  %v2948_v56 = vld [vmem:[%s12662_s2 + $0x368] sm:$0xff]  ;;  %v8413_v42 = vpack.c.bf16 %v2962_v18, %v2960_v25 }
 0x3a4   : > { %v2810_v52 = vmax.f32 %v2785_v47, %v2801_v44  ;;  %v2826_v6 = vsel %vm2824_vm15, %v8799_v41, %v8800_v54  ;;  %v2809_v39 = vmax.f32 %v2784_v50, %v2800_v19  ;;  %v2929_v47 = vld [vmem:[%s12662_s2 + $0x2d0] sm:$0xff]  ;;  %v2931_v19 = vld [vmem:[%s12662_s2 + $0x2e0] sm:$0xff] }
 0x3a5   : > { %v11732_v33 = vpop.permute.xlu0 %2771  ;;  %v8383_v55 = vpack.c.bf16 %v2929_v47, %v2927_v15  ;;  %v2933_v44 = vld [vmem:[%s12662_s2 + $0x2f0] sm:$0xff]  ;;  %v2968_v15 = vld [vmem:[%s12662_s2 + $0x408] sm:$0xff]  ;;  %v2970_v47 = vld [vmem:[%s12662_s2 + $0x418] sm:$0xff] }
 0x3a6   : > { %v2777_v8 = vsel %vm567_vm0, %v8790_v31, %v11732_v33  ;;  %v2815_v53 = vpop.permute.xlu1 %2814  ;;  %v2835_v49 = vmax.f32 %v2810_v52, %v2826_v6  ;;  %v2928_v31 = vld [vmem:[%s12662_s2 + $0x2c8] sm:$0xff]  ;;  %v2938_v6 = vld [vmem:[%s12662_s2 + $0x318] sm:$0xff]  ;;  %v8387_v62 = vpack.c.bf16 %v2933_v44, %v2931_v19  ;;  %v2945_v7 = vld [vmem:[%s12662_s2 + $0x350] sm:$0xff] }
 0x3a7   : > { %v2825_v1 = vsel %vm2824_vm15, %v2815_v53, %v8799_v41  ;;  %v2786_v63 = vmax.f32 %v2757_v16, %v2777_v8  ;;  %v2911_v16 = vld [vmem:[%s12662_s2 + $0x240] sm:$0xff]  ;;  %v8381_v34 = vpack.c.bf16 %v2930_v23, %v2928_v31  ;;  %v2934_v41 = vld [vmem:[%s12662_s2 + $0x2f8] sm:$0xff]  ;;  %v2936_v52 = vld [vmem:[%s12662_s2 + $0x308] sm:$0xff]  ;;  %v8391_v53 = vpack.c.bf16 %v2937_v60, %v2935_v30 }
 0x3a8   : > { %v2834_v3 = vmax.f32 %v2809_v39, %v2825_v1  ;;  %3052 = vmatprep.mubr.f32.mxu1 %v2835_v49  ;;  %v8367_v20 = vpack.c.bf16 %v2913_v35, %v2911_v16  ;;  %v8389_v51 = vpack.c.bf16 %v2938_v6, %v2936_v52  ;;  %v2940_v39 = vld [vmem:[%s12662_s2 + $0x328] sm:$0xff]  ;;  %v2942_v8 = vld [vmem:[%s12662_s2 + $0x338] sm:$0xff]  ;;  %v2939_v1 = vld [vmem:[%s12662_s2 + $0x320] sm:$0xff] }
 0x3a9   : > { %v11751_v46 = vpop.permute.xlu0 %2795  ;;  %v8393_v49 = vpack.c.bf16 %v2942_v8, %v2940_v39  ;;  %v2949_v16 = vld [vmem:[%s12662_s2 + $0x370] sm:$0xff]  ;;  %v2952_v35 = vld [vmem:[%s12662_s2 + $0x388] sm:$0xff]  ;;  %v2967_v6 = vld [vmem:[%s12662_s2 + $0x400] sm:$0xff] }
 0x3aa   : > { %v2802_v48 = vsel %vm2799_vm12, %v8795_v57, %v11751_v46  ;;  %3053 = vmatmul.mubr.f32.vlgmr.msra.gmra.mrb[4].mxu1 %v2834_v3  ;;  %v2923_v57 = vld [vmem:[%s12662_s2 + $0x2a0] sm:$0xff]  ;;  %v2944_v3 = vld [vmem:[%s12662_s2 + $0x348] sm:$0xff] }
 0x3ab   : > { %v2811_v61 = vmax.f32 %v2786_v63, %v2802_v48  ;;  %8360 = vmatpush1.bf16.msra.mxu1 %v8359_v14  ;;  %v8379_v11 = vpack.c.bf16 %v2925_v21, %v2923_v57  ;;  %v2941_v14 = vld [vmem:[%s12662_s2 + $0x330] sm:$0xff]  ;;  %v2943_v63 = vld [vmem:[%s12662_s2 + $0x340] sm:$0xff]  ;;  %v2950_v48 = vld [vmem:[%s12662_s2 + $0x378] sm:$0xff] }
 0x3ac   : > { %8362 = vmatprep.subr.bf16.mxu1 %v8361_v38  ;;  %v2946_v38 = vld [vmem:[%s12662_s2 + $0x358] sm:$0xff]  ;;  %v8395_v28 = vpack.c.bf16 %v2941_v14, %v2939_v1  ;;  %v2964_v57 = vld [vmem:[%s12662_s2 + $0x3e8] sm:$0xff]  ;;  %v8919_v14 = vmov 0.0   ;;  %v3213_v25 = vld [vmem:[%s12667_s7 + $0x60] sm:$0xff] }
 0x3ad   : > { %v11767_v9 = vpop.permute.xlu0 %2820  ;;  %v8397_v43 = vpack.c.bf16 %v2946_v38, %v2944_v3  ;;  %v2966_v21 = vld [vmem:[%s12662_s2 + $0x3f8] sm:$0xff] }
 0x3ae   : > { %v2827_v36 = vsel %vm2824_vm15, %v8800_v54, %v11767_v9  ;;  %v2932_v54 = vld [vmem:[%s12662_s2 + $0x2e8] sm:$0xff]  ;;  %v8417_v23 = vpack.c.bf16 %v2966_v21, %v2964_v57  ;;  %v3217_v57 = vld [vmem:[%s12667_s7 + $0x80] sm:$0xff] }
 0x3af   : > { %v11777_v26 = vmax.f32 %v2811_v61, %v2827_v36  ;;  %8364 = vmatpush1.bf16.msra.mxu1 %v8363_v4  ;;  %v8385_v50 = vpack.c.bf16 %v2934_v41, %v2932_v54  ;;  %v8399_v61 = vpack.c.bf16 %v2945_v7, %v2943_v63  ;;  %v8401_v4 = vpack.c.bf16 %v2950_v48, %v2948_v56  ;;  %v5472_v7 = vld [vmem:[%s12958_s21] sm:$0xff]  ;;  %v5473_v56 = vld [vmem:[%s12959_s24 + $0x8] sm:$0xff] }
 0x3b0   : > { %8366 = vmatprep.subr.bf16.mxu1 %v8365_v27  ;;  %v2947_v27 = vld [vmem:[%s12662_s2 + $0x360] sm:$0xff]  ;;  %v8405_v36 = vpack.c.bf16 %v2954_v37, %v2952_v35 }
 0x3b1   : > { %v8403_v32 = vpack.c.bf16 %v2949_v16, %v2947_v27  ;;  %v3202_v16 = vld [vmem:[%s12667_s7 + $0x8] sm:$0xff]  ;;  %v3205_v35 = vld [vmem:[%s12667_s7 + $0x20] sm:$0xff] }
 0x3b3   : > { %8368 = vmatpush1.bf16.msra.mxu1 %v8367_v20  ;;  %v2951_v20 = vld [vmem:[%s12662_s2 + $0x380] sm:$0xff] }
 0x3b4   : > { %8370 = vmatprep.subr.bf16.mxu1 %v8369_v12  ;;  %v2953_v12 = vld [vmem:[%s12662_s2 + $0x390] sm:$0xff] }
 0x3b5   : > { %v8407_v22 = vpack.c.bf16 %v2953_v12, %v2951_v20  ;;  %v3208_v12 = vld [vmem:[%s12667_s7 + $0x38] sm:$0xff] }
 0x3b7   : > { %8372 = vmatpush1.bf16.msra.mxu1 %v8371_v59  ;;  %v2955_v59 = vld [vmem:[%s12662_s2 + $0x3a0] sm:$0xff] }
 0x3b8   : > { %8374 = vmatprep.subr.bf16.mxu1 %v8373_v58  ;;  %v2957_v58 = vld [vmem:[%s12662_s2 + $0x3b0] sm:$0xff] }
 0x3b9   : > { %v8411_v29 = vpack.c.bf16 %v2957_v58, %v2955_v59  ;;  %v3212_v58 = vld [vmem:[%s12667_s7 + $0x58] sm:$0xff] }
 0x3bb   : > { %8376 = vmatpush1.bf16.msra.mxu1 %v8375_v24  ;;  %v2959_v24 = vld [vmem:[%s12662_s2 + $0x3c0] sm:$0xff] }
 0x3bc   : > { %8378 = vmatprep.subr.bf16.mxu1 %v8377_v40  ;;  %v2961_v40 = vld [vmem:[%s12662_s2 + $0x3d0] sm:$0xff] }
 0x3bd   : > { %v8415_v31 = vpack.c.bf16 %v2961_v40, %v2959_v24  ;;  %v3216_v40 = vld [vmem:[%s12667_s7 + $0x78] sm:$0xff] }
 0x3bf   : > { %8380 = vmatpush1.bf16.msra.mxu1 %v8379_v11  ;;  %v2963_v11 = vld [vmem:[%s12662_s2 + $0x3e0] sm:$0xff] }
 0x3c0   : > { %8382 = vmatprep.subr.bf16.mxu1 %v8381_v34  ;;  %v2965_v34 = vld [vmem:[%s12662_s2 + $0x3f0] sm:$0xff] }
 0x3c1   : > { %v8419_v41 = vpack.c.bf16 %v2965_v34, %v2963_v11 }
 0x3c3   : > { %8384 = vmatpush1.bf16.msra.mxu1 %v8383_v55  ;;  %v8421_v55 = vpack.c.bf16 %v2970_v47, %v2968_v15 }
 0x3c4   : > { %8386 = vmatprep.subr.bf16.mxu1 %v8385_v50 }
 0x3c7   : > { %8388 = vmatpush1.bf16.msra.mxu1 %v8387_v62  ;;  %v2969_v62 = vld [vmem:[%s12662_s2 + $0x410] sm:$0xff] }
 0x3c8   : > { %8390 = vmatprep.subr.bf16.mxu1 %v8389_v51  ;;  %v8423_v39 = vpack.c.bf16 %v2969_v62, %v2967_v6 }
 0x3cb   : > { %8392 = vmatpush1.bf16.msra.mxu1 %v8391_v53  ;;  %v2971_v53 = vld [vmem:[%s12662_s2 + $0x420] sm:$0xff] }
 0x3cc   : > { %8394 = vmatprep.subr.bf16.mxu1 %v8393_v49  ;;  %v2973_v49 = vld [vmem:[%s12662_s2 + $0x430] sm:$0xff] }
 0x3cd   : > { %v8427_v1 = vpack.c.bf16 %v2973_v49, %v2971_v53 }
 0x3cf   : > { %8396 = vmatpush1.bf16.msra.mxu1 %v8395_v28 }
 0x3d0   : > { %8398 = vmatprep.subr.bf16.mxu1 %v8397_v43  ;;  %v3203_v43 = vld [vmem:[%s12667_s7 + $0x10] sm:$0xff] }
 0x3d1   : > { %7521 = vmatprep.mubr.msk.f32.mxu0 %vm3254_vm11, %v3203_v43  ;;  %v3227_v43 = vld [vmem:[%s12667_s7 + $0xd0] sm:$0xff] }
 0x3d3   : > { %8400 = vmatpush1.bf16.msra.mxu1 %v8399_v61  ;;  %v3204_v61 = vld [vmem:[%s12667_s7 + $0x18] sm:$0xff] }
 0x3d4   : > { %8402 = vmatprep.subr.bf16.mxu1 %v8401_v4  ;;  %v3201_v4 = vld [vmem:[%s12667_s7] sm:$0xff] }
 0x3d7   : > { %8404 = vmatpush1.bf16.msra.mxu1 %v8403_v32  ;;  %v3206_v32 = vld [vmem:[%s12667_s7 + $0x28] sm:$0xff] }
 0x3d8   : > { %8406 = vmatprep.subr.bf16.mxu1 %v8405_v36  ;;  %v3207_v36 = vld [vmem:[%s12667_s7 + $0x30] sm:$0xff] }
 0x3db   : > { %8408 = vmatpush1.bf16.msra.mxu1 %v8407_v22  ;;  %v3210_v22 = vld [vmem:[%s12667_s7 + $0x48] sm:$0xff] }
 0x3dc   : > { %8410 = vmatprep.subr.bf16.mxu1 %v8409_v0  ;;  %v3211_v0 = vld [vmem:[%s12667_s7 + $0x50] sm:$0xff] }
 0x3df   : > { %8412 = vmatpush1.bf16.msra.mxu1 %v8411_v29  ;;  %v3214_v29 = vld [vmem:[%s12667_s7 + $0x68] sm:$0xff] }
 0x3e0   : > { %8414 = vmatprep.subr.bf16.mxu1 %v8413_v42  ;;  %v3215_v42 = vld [vmem:[%s12667_s7 + $0x70] sm:$0xff] }
 0x3e2   : > { %v2774_v54 = vpop.permute.xlu1 %2773 }
 0x3e3   : > { %8416 = vmatpush1.bf16.msra.mxu1 %v8415_v31  ;;  %v2778_v50 = vsel %vm567_vm0, %v11732_v33, %v2774_v54  ;;  %v2972_v33 = vld [vmem:[%s12662_s2 + $0x428] sm:$0xff]  ;;  %vm2981_vm0 = vcmask 1046528   ;;  %v2788_v3 = vmax.f32 %v11712_v10, %v2774_v54 }
 0x3e4   : > { %8418 = vmatprep.subr.bf16.mxu1 %v8417_v23  ;;  %v2787_v52 = vmax.f32 %v11702_v13, %v2778_v50  ;;  %v3218_v31 = vld [vmem:[%s12667_s7 + $0x88] sm:$0xff]  ;;  %v3219_v23 = vld [vmem:[%s12667_s7 + $0x90] sm:$0xff] }
 0x3e6   : > { %v2798_v19 = vpop.permute.xlu1 %2797 }
 0x3e7   : > { %v2803_v44 = vsel %vm2799_vm12, %v11751_v46, %v2798_v19  ;;  %8420 = vmatpush1.bf16.msra.mxu1 %v8419_v41  ;;  %v2974_v46 = vld [vmem:[%s12662_s2 + $0x438] sm:$0xff]  ;;  %v2813_v38 = vmax.f32 %v2788_v3, %v2798_v19  ;;  %vm5373_vm12 = vcmask 621568  }
 0x3e8   : > { %8422 = vmatprep.subr.bf16.mxu1 %v8421_v55  ;;  %v2812_v51 = vmax.f32 %v2787_v52, %v2803_v44  ;;  %v8425_v8 = vpack.c.bf16 %v2974_v46, %v2972_v33  ;;  %v3220_v44 = vld [vmem:[%s12667_s7 + $0x98] sm:$0xff]  ;;  %v3221_v52 = vld [vmem:[%s12667_s7 + $0xa0] sm:$0xff] }
 0x3e9   : > { %v3224_v3 = vld [vmem:[%s12667_s7 + $0xb8] sm:$0xff] }
 0x3ea   : > { %v2823_v30 = vpop.permute.xlu1 %2822 }
 0x3eb   : > { %v2828_v13 = vsel %vm2824_vm15, %v11767_v9, %v2823_v30  ;;  %v2976_v9 = vld [vmem:[%s12662_s2 + $0x448] sm:$0x7f]  ;;  %v2838_v28 = vmax.f32 %v2813_v38, %v2823_v30  ;;  %v3225_v38 = vld [vmem:[%s12667_s7 + $0xc0] sm:$0xff]  ;;  %vm5484_vm15 = vcmask 752640  }
 0x3ec   : > { %v2837_v60 = vmax.f32 %v2812_v51, %v2828_v13 }
 0x3ee   : > { %3123 = vmatprep.mubr.f32.mxu1 %v2837_v60  ;;  %v3222_v60 = vld [vmem:[%s12667_s7 + $0xa8] sm:$0xff] }
 0x3ef   : > { %3124 = vmatmul.mubr.f32.vlgmr.msra.gmra.mrb[4].mxu1 %v11777_v26  ;;  %v2975_v26 = vld [vmem:[%s12662_s2 + $0x440] sm:$0x7f] }
 0x3f0   : > { %8424 = vmatpush1.bf16.msra.mxu1 %v8423_v39  ;;  %3194 = vmatprep.mubr.f32.mxu1 %v8919_v14  ;;  %v3223_v39 = vld [vmem:[%s12667_s7 + $0xb0] sm:$0xff] }
 0x3f1   : > { %8426 = vmatprep.subr.bf16.mxu1 %v8425_v8 }
 0x3f4   : > { %8428 = vmatpush1.bf16.msra.mxu1 %v8427_v1 }
 0x3f5   : > { %7169 = vmatprep.subr.msk.mxu1 %vm2981_vm0, %v2976_v9 }
 0x3f8   : > { %7170 = vmatpush1.msk.msra.mxu1 %vm2981_vm0, %v2975_v26 }
 0x3f9   : > { %7171 = vmatmul.mubr.msk.f32.vlgmr.msra.gmra.mrb[4].mxu1 %vm2977_vm8, %v2838_v28  ;;  %v3226_v28 = vld [vmem:[%s12667_s7 + $0xc8] sm:$0xff]  ;;  %vm8939_vm8 = vmmov 0  }
 0x4cc   : > { %v11975_v10 = vpop.f32.mrb[4].mxu1 }
 0x4cd   : > { %3422 = vrot.lane.b32.xlu1 %v11975_v10, %s12843_s0  ;;  %3252 = vrot.lane.b32.xlu0 %v11975_v10, %s12842_s16  ;;  %v3198_v63 = vpop.f32.mrb[5].mxu1  ;;  %s8923_s0 = smov 114  }
 0x4d1   : > { %3596 = vrot.lane.b32.xlu1 %v11975_v10, %s12845_s5  ;;  %3509 = vrot.lane.b32.xlu0 %v11975_v10, %s12956_s14  ;;  %s8925_s5 = smov 102  }
 0x4d5   : > { %3770 = vrot.lane.b32.xlu1 %v11975_v10, %s8920_s12  ;;  %3683 = vrot.lane.b32.xlu0 %v11975_v10, %s8921_s26  ;;  %s12961_s26 = sld [smem:[#allocation48_spill]] }
 0x4d9   : > { %3944 = vrot.lane.b32.xlu1 %v11975_v10, %s8922_s30  ;;  %3857 = vrot.lane.b32.xlu0 %v11975_v10, %s8923_s0  ;;  %s12964_s30 = sld [smem:[#allocation52_spill]]  ;;  %s12967_s0 = sld [smem:[#allocation9_spill]] }
 0x4dd   : > { %4118 = vrot.lane.b32.xlu1 %v11975_v10, %s8917_s29  ;;  %4031 = vrot.lane.b32.xlu0 %v11975_v10, %s8924_s17  ;;  %s8929_s29 = smov 90  }
 0x4e1   : > { %4292 = vrot.lane.b32.xlu1 %v11975_v10, %s8925_s5  ;;  %4205 = vrot.lane.b32.xlu0 %v11975_v10, %s8918_s13  ;;  %s8931_s13 = smov 88   ;;  %s12965_s5 = sld [smem:[#allocation55_spill]] }
 0x4e5   : > { %4466 = vrot.lane.b32.xlu1 %v11975_v10, %s12957_s28  ;;  %4379 = vrot.lane.b32.xlu0 %v11975_v10, %s8926_s23 }
 0x4e9   : > { %4641 = vrot.lane.b32.xlu1 %v11975_v10, %s8927_s9  ;;  %4553 = vrot.lane.b32.xlu0 %v11975_v10, %s8928_s15  ;;  %s12968_s15 = sld [smem:[#allocation54_spill]] }
 0x4ed   : > { %4732 = vrot.lane.b32.xlu1 %v11975_v10, %s8929_s29  ;;  %4643 = vrot.lane.b32.xlu0 %v3198_v63, %s8927_s9 }
 0x4f1   : > { %4823 = vrot.lane.b32.xlu1 %v11975_v10, %s8930_s4  ;;  %4734 = vrot.lane.b32.xlu0 %v3198_v63, %s8929_s29 }
 0x4f5   : > { %4914 = vrot.lane.b32.xlu1 %v11975_v10, %s8931_s13  ;;  %4825 = vrot.lane.b32.xlu0 %v3198_v63, %s8930_s4  ;;  %s12960_s4 = sld [smem:[#allocation47_spill]] }
 0x4f9   : > { %5005 = vrot.lane.b32.xlu1 %v11975_v10, %s8932_s20  ;;  %4916 = vrot.lane.b32.xlu0 %v3198_v63, %s8931_s13 }
 0x4fb   : > { %v5460_v11 = vld [vmem:[%s12960_s4] sm:$0xff]  ;;  %v5461_v34 = vld [vmem:[%s12960_s4 + $0x8] sm:$0xff]  ;;  %v5462_v15 = vld [vmem:[%s12960_s4 + $0x10] sm:$0xff] }
 0x4fc   : > { %v8429_v54 = vpack.c.bf16 %v5461_v34, %v5460_v11  ;;  %v5463_v41 = vld [vmem:[%s12960_s4 + $0x18] sm:$0xff]  ;;  %v5464_v50 = vld [vmem:[%s12960_s4 + $0x20] sm:$0xff]  ;;  %v5465_v19 = vld [vmem:[%s12960_s4 + $0x28] sm:$0xff] }
 0x4fd   : > { %5096 = vrot.lane.b32.xlu1 %v11975_v10, %s8933_s19  ;;  %5007 = vrot.lane.b32.xlu0 %v3198_v63, %s8932_s20  ;;  %v8433_v55 = vpack.c.bf16 %v5463_v41, %v5462_v15  ;;  %v8437_v6 = vpack.c.bf16 %v5465_v19, %v5464_v50  ;;  %v5466_v62 = vld [vmem:[%s12960_s4 + $0x30] sm:$0xff]  ;;  %v5467_v51 = vld [vmem:[%s12960_s4 + $0x38] sm:$0xff] }
 0x4fe   : > { %8430 = vmatprep.subr.bf16.mxu1 %v8429_v54  ;;  %v8441_v33 = vpack.c.bf16 %v5467_v51, %v5466_v62  ;;  %v5468_v46 = vld [vmem:[%s12960_s4 + $0x40] sm:$0xff]  ;;  %v5469_v13 = vld [vmem:[%s12960_s4 + $0x48] sm:$0xff]  ;;  %v5470_v53 = vld [vmem:[%s12960_s4 + $0x50] sm:$0xff] }
 0x4ff   : > { %8432 = vmatpush3.bf16.msra.mxu1 %v8429_v54  ;;  %v8445_v8 = vpack.c.bf16 %v5469_v13, %v5468_v46  ;;  %v5471_v49 = vld [vmem:[%s12960_s4 + $0x58] sm:$0xf]  ;;  %v3242_v15 = vld [vmem:[%s12667_s7 + $0x148] sm:$0xff]  ;;  %v3243_v54 = vld [vmem:[%s12667_s7 + $0x150] sm:$0xff] }
 0x500   : > { %8434 = vmatprep.subr.bf16.mxu1 %v8433_v55  ;;  %v8449_v9 = vpack.c.bf16 %v5471_v49, %v5470_v53  ;;  %v3244_v50 = vld [vmem:[%s12667_s7 + $0x158] sm:$0xff]  ;;  %v3246_v62 = vld [vmem:[%s12667_s7 + $0x168] sm:$0xff]  ;;  %v5597_v49 = vld [vmem:[%s12961_s26] sm:$0xff] }
 0x501   : > { %5187 = vrot.lane.b32.xlu1 %v11975_v10, %s8934_s27  ;;  %5098 = vrot.lane.b32.xlu0 %v3198_v63, %s8933_s19  ;;  %v3248_v13 = vld [vmem:[%s12667_s7 + $0x178] sm:$0xff] }
 0x503   : > { %8436 = vmatpush3.bf16.msra.mxu1 %v8433_v55 }
 0x504   : > { %8438 = vmatprep.subr.bf16.mxu1 %v8437_v6 }
 0x505   : > { %5278 = vrot.lane.b32.xlu1 %v11975_v10, %s8935_s22  ;;  %5189 = vrot.lane.b32.xlu0 %v3198_v63, %s8934_s27  ;;  %s8937_s27 = smov 120  }
 0x507   : > { %8440 = vmatpush3.bf16.msra.mxu1 %v8437_v6 }
 0x508   : > { %8442 = vmatprep.subr.bf16.mxu1 %v8441_v33 }
 0x509   : > { %5369 = vrot.lane.b32.xlu1 %v11975_v10, %s8936_s11  ;;  %5280 = vrot.lane.b32.xlu0 %v3198_v63, %s8935_s22  ;;  %s8938_s22 = smov 119  }
 0x50b   : > { %8444 = vmatpush3.bf16.msra.mxu1 %v8441_v33 }
 0x50c   : > { %8446 = vmatprep.subr.bf16.mxu1 %v8445_v8 }
 0x50d   : > { %5476 = vperm.xlu1 %8784, %v5472_v7   ;;  %5371 = vrot.lane.b32.xlu0 %v3198_v63, %s8936_s11  ;;  %v3229_v63 = vld [vmem:[%s12667_s7 + $0xe0] sm:$0xff] }
 0x50f   : > { %8448 = vmatpush3.bf16.msra.mxu1 %v8445_v8 }
 0x510   : > { %8451 = vmatprep.subr.msk.bf16.mxu1 %vm11172_vm4, %v8449_v9 }
 0x511   : > { %5481 = vperm.xlu0 %8785, %v5473_v56   ;;  %v3230_v56 = vld [vmem:[%s12667_s7 + $0xe8] sm:$0xff] }
 0x513   : > { %8454 = vmatpush3.bf16.msk.msra.mxu1 %vm11172_vm4, %v8449_v9  ;;  %vm5009_vm4 = vcmask 654336  }
 0x514   : > { %8515 = vmatprep.subr.bf16.mxu1 %v8916_v45 }
 0x53f   : > { %v3253_v48 = vpop.permute.xlu0 %3252  ;;  %v3423_v27 = vpop.permute.xlu1 %3422 }
 0x540   : > { %7519 = vmatprep.subr.msk.mxu0 %vm3261_vm9, %v3253_v48 }
 0x541   : > { %7520 = vmatpush3.msk.msra.mxu0 %vm3261_vm9, %v3253_v48 }
 0x542   : > { %7522 = vmatmul.mubr.msk.f32.vlgmr.msra.gmra.mrb[6].mxu0 %vm3254_vm11, %v3204_v61  ;;  %7524 = vmatprep.subr.msk.mxu0 %vm3261_vm9, %v11975_v10  ;;  %v3231_v61 = vld [vmem:[%s12667_s7 + $0xf0] sm:$0xff] }
 0x543   : > { %7525 = vmatpush3.msk.msra.mxu0 %vm3261_vm9, %v11975_v10  ;;  %7526 = vmatprep.mubr.msk.f32.mxu0 %vm3254_vm11, %v3201_v4  ;;  %v3510_v37 = vpop.permute.xlu0 %3509  ;;  %v3597_v20 = vpop.permute.xlu1 %3596  ;;  %v3228_v10 = vld [vmem:[%s12667_s7 + $0xd8] sm:$0xff] }
 0x544   : > { %7529 = vmatprep.subr.msk.mxu0 %vm3261_vm9, %v3423_v27 }
 0x547   : > { %v3684_v17 = vpop.permute.xlu0 %3683  ;;  %v3771_v59 = vpop.permute.xlu1 %3770 }
 0x54a   : > { %7527 = vmatmul.mubr.msk.f32.vlgmr.msra.gmra.mrb[6].mxu0 %vm3254_vm11, %v3202_v16  ;;  %v3232_v16 = vld [vmem:[%s12667_s7 + $0xf8] sm:$0xff] }
 0x54b   : > { %7530 = vmatpush3.msk.msra.mxu0 %vm3261_vm9, %v3423_v27  ;;  %7531 = vmatprep.mubr.msk.f32.mxu0 %vm3254_vm11, %v3205_v35  ;;  %v3858_v18 = vpop.permute.xlu0 %3857  ;;  %v3945_v24 = vpop.permute.xlu1 %3944 }
 0x54c   : > { %7534 = vmatprep.subr.msk.mxu0 %vm3261_vm9, %v3510_v37 }
 0x54f   : > { %v4032_v21 = vpop.permute.xlu0 %4031  ;;  %v4119_v47 = vpop.permute.xlu1 %4118 }
 0x552   : > { %7532 = vmatmul.mubr.msk.f32.vlgmr.msra.gmra.mrb[6].mxu0 %vm3254_vm11, %v3206_v32 }
 0x553   : > { %7535 = vmatpush3.msk.msra.mxu0 %vm3261_vm9, %v3510_v37  ;;  %7536 = vmatprep.mubr.msk.f32.mxu0 %vm3254_vm11, %v3207_v36  ;;  %v4206_v30 = vpop.permute.xlu0 %4205  ;;  %v4293_v1 = vpop.permute.xlu1 %4292  ;;  %v3233_v37 = vld [vmem:[%s12667_s7 + $0x100] sm:$0xff] }
 0x554   : > { %7539 = vmatprep.subr.msk.mxu0 %vm3261_vm9, %v3597_v20 }
 0x557   : > { %v4380_v26 = vpop.permute.xlu0 %4379  ;;  %v4467_v2 = vpop.permute.xlu1 %4466 }
 0x55a   : > { %7537 = vmatmul.mubr.msk.f32.vlgmr.msra.gmra.mrb[6].mxu0 %vm3254_vm11, %v3208_v12 }
 0x55b   : > { %7540 = vmatpush3.msk.msra.mxu0 %vm3261_vm9, %v3597_v20  ;;  %7541 = vmatprep.mubr.msk.f32.mxu0 %vm3254_vm11, %v3209_v5  ;;  %v4554_v7 = vpop.permute.xlu0 %4553  ;;  %v4642_v4 = vpop.permute.xlu1 %4641  ;;  %v3234_v20 = vld [vmem:[%s12667_s7 + $0x108] sm:$0xff]  ;;  %v3235_v5 = vld [vmem:[%s12667_s7 + $0x110] sm:$0xff] }
 0x55c   : > { %7544 = vmatprep.subr.msk.mxu0 %vm3261_vm9, %v3684_v17 }
 0x55f   : > { %v4644_v48 = vpop.permute.xlu0 %4643  ;;  %v4733_v32 = vpop.permute.xlu1 %4732 }
 0x560   : > { %v4646_v27 = vsel %vm4645_vm7, %v4642_v4, %v4644_v48 }
 0x562   : > { %7542 = vmatmul.mubr.msk.f32.vlgmr.msra.gmra.mrb[6].mxu0 %vm3254_vm11, %v3210_v22 }
 0x563   : > { %7545 = vmatpush3.msk.msra.mxu0 %vm3261_vm9, %v3684_v17  ;;  %7546 = vmatprep.mubr.msk.f32.mxu0 %vm3254_vm11, %v3211_v0  ;;  %v4735_v35 = vpop.permute.xlu0 %4734  ;;  %v4824_v17 = vpop.permute.xlu1 %4823  ;;  %v3236_v0 = vld [vmem:[%s12667_s7 + $0x118] sm:$0xff] }
 0x564   : > { %7549 = vmatprep.subr.msk.mxu0 %vm3261_vm9, %v3771_v59  ;;  %v4737_v36 = vsel %vm4736_vm10, %v4733_v32, %v4735_v35 }
 0x567   : > { %v4826_v12 = vpop.permute.xlu0 %4825 }
 0x568   : > { %v4828_v22 = vsel %vm4827_vm2, %v4824_v17, %v4826_v12  ;;  %v5691_v17 = vld [vmem:[%s12962_s25 + $0x8] sm:$0xff] }
 0x56a   : > { %7547 = vmatmul.mubr.msk.f32.vlgmr.msra.gmra.mrb[6].mxu0 %vm3254_vm11, %v3212_v58  ;;  %v3237_v58 = vld [vmem:[%s12667_s7 + $0x120] sm:$0xff] }
 0x56b   : > { %7550 = vmatpush3.msk.msra.mxu0 %vm3261_vm9, %v3771_v59  ;;  %7551 = vmatprep.mubr.msk.f32.mxu0 %vm3254_vm11, %v3213_v25  ;;  %v4917_v59 = vpop.permute.xlu0 %4916  ;;  %v4915_v25 = vpop.permute.xlu1 %4914 }
 0x56c   : > { %7554 = vmatprep.subr.msk.mxu0 %vm3261_vm9, %v3858_v18 }
 0x572   : > { %7552 = vmatmul.mubr.msk.f32.vlgmr.msra.gmra.mrb[6].mxu0 %vm3254_vm11, %v3214_v29  ;;  %v3238_v29 = vld [vmem:[%s12667_s7 + $0x128] sm:$0xff] }
 0x573   : > { %7555 = vmatpush3.msk.msra.mxu0 %vm3261_vm9, %v3858_v18  ;;  %7556 = vmatprep.mubr.msk.f32.mxu0 %vm3254_vm11, %v3215_v42  ;;  %v4919_v18 = vsel %vm4918_vm3, %v4915_v25, %v4917_v59  ;;  %v5008_v42 = vpop.permute.xlu0 %5007 }
 0x574   : > { %7559 = vmatprep.subr.msk.mxu0 %vm3261_vm9, %v3945_v24 }
 0x57a   : > { %7557 = vmatmul.mubr.msk.f32.vlgmr.msra.gmra.mrb[6].mxu0 %vm3254_vm11, %v3216_v40  ;;  %v5006_v40 = vpop.permute.xlu1 %5005 }
 0x57b   : > { %7560 = vmatpush3.msk.msra.mxu0 %vm3261_vm9, %v3945_v24  ;;  %7561 = vmatprep.mubr.msk.f32.mxu0 %vm3254_vm11, %v3217_v57  ;;  %v3239_v24 = vld [vmem:[%s12667_s7 + $0x130] sm:$0xff]  ;;  %v5010_v57 = vsel %vm5009_vm4, %v5006_v40, %v5008_v42  ;;  %v6907_v42 = vld [vmem:[%s12963_s10] sm:$0xff] }
 0x57c   : > { %7564 = vmatprep.subr.msk.mxu0 %vm3261_vm9, %v4032_v21  ;;  %v6909_v40 = vld [vmem:[%s12963_s10 + $0x10] sm:$0xff] }
 0x57e   : > { %v5097_v11 = vpop.permute.xlu1 %5096 }
 0x582   : > { %7562 = vmatmul.mubr.msk.f32.vlgmr.msra.gmra.mrb[6].mxu0 %vm3254_vm11, %v3218_v31  ;;  %v5099_v31 = vpop.permute.xlu0 %5098  ;;  %v5188_v41 = vpop.permute.xlu1 %5187 }
 0x583   : > { %7565 = vmatpush3.msk.msra.mxu0 %vm3261_vm9, %v4032_v21  ;;  %7566 = vmatprep.mubr.msk.f32.mxu0 %vm3254_vm11, %v3219_v23  ;;  %v3240_v21 = vld [vmem:[%s12667_s7 + $0x138] sm:$0xff]  ;;  %v3241_v23 = vld [vmem:[%s12667_s7 + $0x140] sm:$0xff]  ;;  %v5101_v34 = vsel %vm5100_vm5, %v5097_v11, %v5099_v31  ;;  %v5766_v31 = vld [vmem:[%s12962_s25 + $0x10] sm:$0xff] }
 0x584   : > { %7569 = vmatprep.subr.msk.mxu0 %vm3261_vm9, %v4119_v47 }
 0x58a   : > { %7567 = vmatmul.mubr.msk.f32.vlgmr.msra.gmra.mrb[6].mxu0 %vm3254_vm11, %v3220_v44  ;;  %v3245_v44 = vld [vmem:[%s12667_s7 + $0x160] sm:$0xff] }
 0x58b   : > { %7570 = vmatpush3.msk.msra.mxu0 %vm3261_vm9, %v4119_v47  ;;  %7571 = vmatprep.mubr.msk.f32.mxu0 %vm3254_vm11, %v3221_v52  ;;  %v5190_v47 = vpop.permute.xlu0 %5189  ;;  %v5279_v52 = vpop.permute.xlu1 %5278 }
 0x58c   : > { %7574 = vmatprep.subr.msk.mxu0 %vm3261_vm9, %v4206_v30  ;;  %v5192_v55 = vsel %vm5191_vm6, %v5188_v41, %v5190_v47 }
 0x58f   : > { %v5281_v19 = vpop.permute.xlu0 %5280  ;;  %v5370_v33 = vpop.permute.xlu1 %5369 }
 0x590   : > { %v5283_v6 = vsel %vm5282_vm13, %v5279_v52, %v5281_v19  ;;  %v6914_v19 = vld [vmem:[%s12963_s10 + $0x38] sm:$0xff]  ;;  %v5843_v52 = vld [vmem:[%s12962_s25 + $0x28] sm:$0xff] }
 0x592   : > { %7572 = vmatmul.mubr.msk.f32.vlgmr.msra.gmra.mrb[6].mxu0 %vm3254_vm11, %v3222_v60  ;;  %v3249_v60 = vld [vmem:[%s12667_s7 + $0x180] sm:$0xff] }
 0x593   : > { %7575 = vmatpush3.msk.msra.mxu0 %vm3261_vm9, %v4206_v30  ;;  %7576 = vmatprep.mubr.msk.f32.mxu0 %vm3254_vm11, %v3223_v39  ;;  %v5372_v51 = vpop.permute.xlu0 %5371  ;;  %v3247_v30 = vld [vmem:[%s12667_s7 + $0x170] sm:$0xff]  ;;  %v3250_v39 = vld [vmem:[%s12667_s7 + $0x188] sm:$0xff] }
 0x594   : > { %7579 = vmatprep.subr.msk.mxu0 %vm3261_vm9, %v4293_v1  ;;  %v5374_v46 = vsel %vm5373_vm12, %v5370_v33, %v5372_v51  ;;  %v6916_v51 = vld [vmem:[%s12963_s10 + $0x48] sm:$0xff] }
 0x59a   : > { %7577 = vmatmul.mubr.msk.f32.vlgmr.msra.gmra.mrb[6].mxu0 %vm3254_vm11, %v3224_v3  ;;  %v5599_v3 = vld [vmem:[%s12961_s26 + $0x10] sm:$0xff] }
 0x59b   : > { %7580 = vmatpush3.msk.msra.mxu0 %vm3261_vm9, %v4293_v1  ;;  %7581 = vmatprep.mubr.msk.f32.mxu0 %vm3254_vm11, %v3225_v38  ;;  %v5598_v1 = vld [vmem:[%s12961_s26 + $0x8] sm:$0xff]  ;;  %v5600_v38 = vld [vmem:[%s12961_s26 + $0x18] sm:$0xff] }
 0x59c   : > { %7584 = vmatprep.subr.msk.mxu0 %vm3261_vm9, %v4380_v26  ;;  %v8455_v9 = vpack.c.bf16 %v5598_v1, %v5597_v49 }
 0x5a2   : > { %7582 = vmatmul.mubr.msk.f32.vlgmr.msra.gmra.mrb[6].mxu0 %vm3254_vm11, %v3226_v28  ;;  %v5601_v28 = vld [vmem:[%s12961_s26 + $0x20] sm:$0xff] }
 0x5a3   : > { %7585 = vmatpush3.msk.msra.mxu0 %vm3261_vm9, %v4380_v26  ;;  %7586 = vmatprep.mubr.msk.f32.mxu0 %vm3254_vm11, %v3227_v43  ;;  %v8459_v26 = vpack.c.bf16 %v5600_v38, %v5599_v3  ;;  %v5602_v43 = vld [vmem:[%s12961_s26 + $0x28] sm:$0xff] }
 0x5a4   : > { %7589 = vmatprep.subr.msk.mxu0 %vm3261_vm9, %v4467_v2  ;;  %v5995_v3 = vld [vmem:[%s12962_s25 + $0x48] sm:$0xff] }
 0x5aa   : > { %7587 = vmatmul.mubr.msk.f32.vlgmr.msra.gmra.mrb[6].mxu0 %vm3254_vm11, %v3228_v10  ;;  %v5482_v10 = vpop.permute.xlu0 %5481 }
 0x5ab   : > { %7590 = vmatpush3.msk.msra.mxu0 %vm3261_vm9, %v4467_v2  ;;  %7591 = vmatprep.mubr.msk.f32.mxu0 %vm3254_vm11, %v3229_v63  ;;  %v8463_v2 = vpack.c.bf16 %v5602_v43, %v5601_v28  ;;  %v6070_v28 = vld [vmem:[%s12962_s25 + $0x50] sm:$0xff]  ;;  %v6071_v43 = vld [vmem:[%s12962_s25 + $0x58] sm:$0xff] }
 0x5ac   : > { %7594 = vmatprep.subr.msk.mxu0 %vm3261_vm9, %v4554_v7 }
 0x5b2   : > { %7592 = vmatmul.mubr.msk.f32.vlgmr.msra.gmra.mrb[6].mxu0 %vm3254_vm11, %v3230_v56 }
 0x5b3   : > { %7595 = vmatpush3.msk.msra.mxu0 %vm3261_vm9, %v4554_v7  ;;  %7596 = vmatprep.mubr.msk.f32.mxu0 %vm3254_vm11, %v3231_v61  ;;  %v5477_v7 = vpop.permute.xlu1 %5476  ;;  %v5603_v61 = vld [vmem:[%s12961_s26 + $0x30] sm:$0x7f] }
 0x5b4   : > { %7599 = vmatprep.subr.msk.mxu0 %vm3261_vm9, %v4646_v27 }
 0x5ba   : > { %7597 = vmatmul.mubr.msk.f32.vlgmr.msra.gmra.mrb[6].mxu0 %vm3254_vm11, %v3232_v16 }
 0x5bb   : > { %7600 = vmatpush3.msk.msra.mxu0 %vm3261_vm9, %v4646_v27  ;;  %7601 = vmatprep.mubr.msk.f32.mxu0 %vm3254_vm11, %v3233_v37 }
 0x5bc   : > { %7604 = vmatprep.subr.msk.mxu0 %vm3261_vm9, %v4737_v36 }
 0x5c2   : > { %7602 = vmatmul.mubr.msk.f32.vlgmr.msra.gmra.mrb[6].mxu0 %vm3254_vm11, %v3234_v20 }
 0x5c3   : > { %7605 = vmatpush3.msk.msra.mxu0 %vm3261_vm9, %v4737_v36  ;;  %7606 = vmatprep.mubr.msk.f32.mxu0 %vm3254_vm11, %v3235_v5  ;;  %v5690_v5 = vld [vmem:[%s12962_s25] sm:$0xff] }
 0x5c4   : > { %7609 = vmatprep.subr.msk.mxu0 %vm3261_vm9, %v4828_v22 }
 0x5ca   : > { %7607 = vmatmul.mubr.msk.f32.vlgmr.msra.gmra.mrb[6].mxu0 %vm3254_vm11, %v3236_v0 }
 0x5cb   : > { %7610 = vmatpush3.msk.msra.mxu0 %vm3261_vm9, %v4828_v22  ;;  %7611 = vmatprep.mubr.msk.f32.mxu0 %vm3254_vm11, %v3237_v58 }
 0x5cc   : > { %7614 = vmatprep.subr.msk.mxu0 %vm3261_vm9, %v4919_v18 }
 0x5d2   : > { %7612 = vmatmul.mubr.msk.f32.vlgmr.msra.gmra.mrb[6].mxu0 %vm3254_vm11, %v3238_v29 }
 0x5d3   : > { %7615 = vmatpush3.msk.msra.mxu0 %vm3261_vm9, %v4919_v18  ;;  %7616 = vmatprep.mubr.msk.f32.mxu0 %vm3254_vm11, %v3239_v24  ;;  %v8468_v18 = vpack.c.bf16 %v5691_v17, %v5690_v5  ;;  %v6908_v24 = vld [vmem:[%s12963_s10 + $0x8] sm:$0xff]  ;;  %v6450_v17 = vld [vmem:[%s12962_s25 + $0xa0] sm:$0xff] }
 0x5d4   : > { %7619 = vmatprep.subr.msk.mxu0 %vm3261_vm9, %v5010_v57 }
 0x5da   : > { %7617 = vmatmul.mubr.msk.f32.vlgmr.msra.gmra.mrb[6].mxu0 %vm3254_vm11, %v3240_v21  ;;  %v6910_v21 = vld [vmem:[%s12963_s10 + $0x18] sm:$0xff] }
 0x5db   : > { %7620 = vmatpush3.msk.msra.mxu0 %vm3261_vm9, %v5010_v57  ;;  %7621 = vmatprep.mubr.msk.f32.mxu0 %vm3254_vm11, %v3241_v23  ;;  %v8516_v57 = vpack.c.bf16 %v6908_v24, %v6907_v42  ;;  %v5767_v23 = vld [vmem:[%s12962_s25 + $0x18] sm:$0xff]  ;;  %v8519_v11 = vpack.c.bf16 %v6910_v21, %v6909_v40  ;;  %v6602_v42 = vld [vmem:[%s12962_s25 + $0xc0] sm:$0xff]  ;;  %v6603_v24 = vld [vmem:[%s12962_s25 + $0xc8] sm:$0xff] }
 0x5dc   : > { %7624 = vmatprep.subr.msk.mxu0 %vm3261_vm9, %v5101_v34  ;;  %v8471_v47 = vpack.c.bf16 %v5767_v23, %v5766_v31  ;;  %v8504_v40 = vpack.c.bf16 %v6603_v24, %v6602_v42  ;;  %v6678_v21 = vld [vmem:[%s12962_s25 + $0xd0] sm:$0xff]  ;;  %v6679_v31 = vld [vmem:[%s12962_s25 + $0xd8] sm:$0xff] }
 0x5dd   : > { %v8507_v23 = vpack.c.bf16 %v6679_v31, %v6678_v21 }
 0x5e2   : > { %7622 = vmatmul.mubr.msk.f32.vlgmr.msra.gmra.mrb[6].mxu0 %vm3254_vm11, %v3242_v15  ;;  %v6912_v15 = vld [vmem:[%s12963_s10 + $0x28] sm:$0xff] }
 0x5e3   : > { %7625 = vmatpush3.msk.msra.mxu0 %vm3261_vm9, %v5101_v34  ;;  %7626 = vmatprep.mubr.msk.f32.mxu0 %vm3254_vm11, %v3243_v54  ;;  %v6911_v34 = vld [vmem:[%s12963_s10 + $0x20] sm:$0xff] }
 0x5e4   : > { %7629 = vmatprep.subr.msk.mxu0 %vm3261_vm9, %v5192_v55 }
 0x5ea   : > { %7627 = vmatmul.mubr.msk.f32.vlgmr.msra.gmra.mrb[6].mxu0 %vm3254_vm11, %v3244_v50  ;;  %v6913_v50 = vld [vmem:[%s12963_s10 + $0x30] sm:$0xff] }
 0x5eb   : > { %7630 = vmatpush3.msk.msra.mxu0 %vm3261_vm9, %v5192_v55  ;;  %7631 = vmatprep.mubr.msk.f32.mxu0 %vm3254_vm11, %v3245_v44  ;;  %v8522_v55 = vpack.c.bf16 %v6912_v15, %v6911_v34  ;;  %v5842_v44 = vld [vmem:[%s12962_s25 + $0x20] sm:$0xff]  ;;  %v6755_v15 = vld [vmem:[%s12962_s25 + $0xe8] sm:$0xff] }
 0x5ec   : > { %7634 = vmatprep.subr.msk.mxu0 %vm3261_vm9, %v5283_v6  ;;  %v6754_v34 = vld [vmem:[%s12962_s25 + $0xe0] sm:$0xff] }
 0x5f2   : > { %7632 = vmatmul.mubr.msk.f32.vlgmr.msra.gmra.mrb[6].mxu0 %vm3254_vm11, %v3246_v62  ;;  %v6915_v62 = vld [vmem:[%s12963_s10 + $0x40] sm:$0xff] }
 0x5f3   : > { %7635 = vmatpush3.msk.msra.mxu0 %vm3261_vm9, %v5283_v6  ;;  %7636 = vmatprep.mubr.msk.f32.mxu0 %vm3254_vm11, %v3247_v30  ;;  %v8525_v6 = vpack.c.bf16 %v6914_v19, %v6913_v50  ;;  %v8474_v30 = vpack.c.bf16 %v5843_v52, %v5842_v44  ;;  %v6831_v50 = vld [vmem:[%s12962_s25 + $0xf8] sm:$0xff] }
 0x5f4   : > { %7639 = vmatprep.subr.msk.mxu0 %vm3261_vm9, %v5374_v46 }
 0x5fa   : > { %7637 = vmatmul.mubr.msk.f32.vlgmr.msra.gmra.mrb[6].mxu0 %vm3254_vm11, %v3248_v13  ;;  %v6917_v13 = vld [vmem:[%s12963_s10 + $0x50] sm:$0xff] }
 0x5fb   : > { %7640 = vmatpush3.msk.msra.mxu0 %vm3261_vm9, %v5374_v46  ;;  %7641 = vmatprep.mubr.msk.f32.mxu0 %vm3254_vm11, %v3249_v60  ;;  %v8528_v46 = vpack.c.bf16 %v6916_v51, %v6915_v62  ;;  %v6918_v60 = vld [vmem:[%s12963_s10 + $0x58] sm:$0xff]  ;;  %v6920_v62 = vld [vmem:[%s12963_s10 + $0x68] sm:$0xff] }
 0x5fc   : > { %8456 = vmatprep.subr.bf16.mxu0 %v8455_v9 }
 0x602   : > { %7642 = vmatmul.mubr.msk.f32.vlgmr.msra.gmra.mrb[6].mxu0 %vm3254_vm11, %v3250_v39  ;;  %v5918_v39 = vld [vmem:[%s12962_s25 + $0x30] sm:$0xff]  ;;  %vm7010_vm11 = vcmask 687104  }
 0x603   : > { %8458 = vmatpush3.bf16.msra.mxu0 %v8455_v9  ;;  %v5994_v9 = vld [vmem:[%s12962_s25 + $0x40] sm:$0xff] }
 0x604   : > { %8460 = vmatprep.subr.bf16.mxu0 %v8459_v26  ;;  %v8480_v38 = vpack.c.bf16 %v5995_v3, %v5994_v9  ;;  %v7002_v3 = vld [vmem:[%s12965_s5 + $0x20] sm:$0xff] }
 0x607   : > { %8462 = vmatpush3.bf16.msra.mxu0 %v8459_v26 }
 0x608   : > { %8464 = vmatprep.subr.bf16.mxu0 %v8463_v2 }
 0x60b   : > { %8466 = vmatpush3.bf16.msra.mxu0 %v8463_v2  ;;  %v8483_v2 = vpack.c.bf16 %v6071_v43, %v6070_v28  ;;  %v7004_v28 = vld [vmem:[%s12965_s5 + $0x30] sm:$0xff]  ;;  %v7005_v43 = vld [vmem:[%s12965_s5 + $0x38] sm:$0xff] }
 0x60c   : > { %7683 = vmatprep.subr.msk.mxu0 %vm2981_vm0, %v5603_v61 }
 0x60f   : > { %7684 = vmatpush3.msk.msra.mxu0 %vm2981_vm0, %v5603_v61  ;;  %vm5604_vm0 = vcmask 449536   ;;  %v6222_v61 = vld [vmem:[%s12962_s25 + $0x70] sm:$0xff] }
 0x610   : > { %8467 = vmatprep.subr.bf16.mxu0 %v8916_v45 }
 0x6d5   : > { %v7643_v8 = vpop.f32.mrb[6].mxu0 }
 0x6d6   : > { %v5449_v53 = vpop.f32.mrb[7].mxu0 }
 0x6d7   : > { %7668 = vmatprep.mubr.msk.f32.mxu1 %vm5484_vm15, %v5449_v53  ;;  %v8531_v53 = vpack.c.bf16 %v6918_v60, %v6917_v13 }
 0x6d8   : > { %7669 = vmatmul.mubr.msk.f32.vlgmr.msra.gmra.mrb[6].mxu1 %vm5484_vm15, %v7643_v8  ;;  %v5919_v8 = vld [vmem:[%s12962_s25 + $0x38] sm:$0xff] }
 0x6d9   : > { %7830 = vmatprep.mubr.msk.f32.mxu1 %vm8939_vm8, %v8919_v14  ;;  %8517 = vmatpush3.bf16.msra.mxu1 %v8516_v57  ;;  %v8477_v49 = vpack.c.bf16 %v5919_v8, %v5918_v39 }
 0x6da   : > { %8518 = vmatprep.subr.bf16.mxu1 %v8916_v45 }
 0x6dd   : > { %8520 = vmatpush3.bf16.msra.mxu1 %v8519_v11 }
 0x6de   : > { %8521 = vmatprep.subr.bf16.mxu1 %v8916_v45 }
 0x6e1   : > { %8523 = vmatpush3.bf16.msra.mxu1 %v8522_v55  ;;  %v6830_v55 = vld [vmem:[%s12962_s25 + $0xf0] sm:$0xff] }
 0x6e2   : > { %8524 = vmatprep.subr.bf16.mxu1 %v8916_v45  ;;  %v8513_v19 = vpack.c.bf16 %v6831_v50, %v6830_v55 }
 0x6e5   : > { %8526 = vmatpush3.bf16.msra.mxu1 %v8525_v6  ;;  %v6919_v6 = vld [vmem:[%s12963_s10 + $0x60] sm:$0xff] }
 0x6e6   : > { %8527 = vmatprep.subr.bf16.mxu1 %v8916_v45  ;;  %v8534_v51 = vpack.c.bf16 %v6920_v62, %v6919_v6 }
 0x6e9   : > { %8529 = vmatpush3.bf16.msra.mxu1 %v8528_v46  ;;  %v6999_v46 = vld [vmem:[%s12965_s5 + $0x8] sm:$0xff] }
 0x6ea   : > { %8530 = vmatprep.subr.bf16.mxu1 %v8916_v45 }
 0x6ed   : > { %8532 = vmatpush3.bf16.msra.mxu1 %v8531_v53 }
 0x6ee   : > { %8533 = vmatprep.subr.bf16.mxu1 %v8916_v45 }
 0x6f1   : > { %8535 = vmatpush3.bf16.msra.mxu1 %v8534_v51 }
 0x6f2   : > { %7828 = vmatprep.subr.mxu1 %v8919_v14 }
 0x7ab   : > { %v7670_v63 = vpop.f32.mrb[6].mxu1 }
 0x7ac   : > { %v5566_v56 = vadd.f32 %v7670_v63, %v5482_v10  ;;  %v5560_v48 = vpop.f32.mrb[7].mxu1  ;;  %v6146_v63 = vld [vmem:[%s12962_s25 + $0x60] sm:$0xff] }
 0x7ad   : > { %v5561_v4 = vadd.f32 %v5560_v48, %v5477_v7  ;;  %v6147_v7 = vld [vmem:[%s12962_s25 + $0x68] sm:$0xff] }
 0x7ae   : > { %v5570_v27 = vmax.f32 %v5566_v56, 0.0  ;;  %v8486_v56 = vpack.c.bf16 %v6147_v7, %v6146_v63  ;;  %v7007_v63 = vld [vmem:[%s12965_s5 + $0x48] sm:$0xff] }
 0x7af   : > { %v5569_v16 = vmax.f32 %v5561_v4, 0.0  ;;  %v6223_v4 = vld [vmem:[%s12962_s25 + $0x78] sm:$0xff] }
 0x7b0   : > { %5575 = vrot.lane.b32.xlu0 %v5570_v27, %s12842_s16 }
 0x7b1   : > { %5573 = vrot.lane.b32.xlu1 %v5569_v16, %s12842_s16  ;;  %s12966_s16 = sld [smem:[#allocation6_spill]] }
 0x7b4   : > { %5583 = vrot.lane.b32.xlu0 %v5570_v27, %s8937_s27 }
 0x7b5   : > { %5581 = vrot.lane.b32.xlu1 %v5569_v16, %s8937_s27  ;;  %s12970_s27 = sld [smem:[#allocation56_spill]] }
 0x7b7   : > { %s483_s13 = sand.u32 1, %s12966_s16  }
 0x7b8   : > { %5591 = vrot.lane.b32.xlu0 %v5570_v27, %s8938_s22  ;;  %s484_s11 = scalar_lea.vmem [#allocation2], %s483_s13  ;;  %s7090_s16 = scalar_lea.sflag [#allocation3], %s483_s13 }
 0x7b9   : > { %5589 = vrot.lane.b32.xlu1 %v5569_v16, %s8938_s22  ;;  %s7272_s22 = sshll.u32 %s12967_s0, 4  ;;  %s7102_s18 = sshll.u32 %s484_s11, 4  ;;  %s12620_s18 = int_to_ptr.vmem [resolvable:$true] %s7102_s18 }
 0x7ba   : > { %s12618_s14 = scalar_lea.hbm %s12971_s8, %s7272_s22  ;;  %s8802_s12 = scalar_lea.vmem %s12620_s18, 16 }
 0x7bb   : > { %p8803_p11 = scmp.ne.s32.totalorder %s12620_s18, %s8802_s12 }
 0x7bd   : > { %p8804_p12 = pnand %p8803_p11, %p9059_p5 }
 0x7bf   : > { %p8805_p13 = pneg %p8804_p12 }
 0x822   : > { %v5576_v35 = vpop.permute.xlu0 %5575 }
 0x823   : > { %v5574_v37 = vpop.permute.xlu1 %5573  ;;  %v5580_v12 = vmax.f32 %v5570_v27, %v5576_v35  ;;  %v8489_v27 = vpack.c.bf16 %v6223_v4, %v6222_v61  ;;  %v6298_v35 = vld [vmem:[%s12962_s25 + $0x80] sm:$0xff] }
 0x824   : > { %v5579_v20 = vmax.f32 %v5569_v16, %v5574_v37  ;;  %v6299_v37 = vld [vmem:[%s12962_s25 + $0x88] sm:$0xff] }
 0x826   : > { %v5584_v32 = vpop.permute.xlu0 %5583 }
 0x827   : > { %v5582_v36 = vpop.permute.xlu1 %5581  ;;  %v5588_v59 = vmax.f32 %v5580_v12, %v5584_v32  ;;  %v8492_v32 = vpack.c.bf16 %v6299_v37, %v6298_v35  ;;  %v6375_v12 = vld [vmem:[%s12962_s25 + $0x98] sm:$0xff] }
 0x828   : > { %v5587_v22 = vmax.f32 %v5579_v20, %v5582_v36  ;;  %v6374_v20 = vld [vmem:[%s12962_s25 + $0x90] sm:$0xff] }
 0x829   : > { %v8495_v5 = vpack.c.bf16 %v6375_v12, %v6374_v20 }
 0x82a   : > { %v5592_v0 = vpop.permute.xlu0 %5591 }
 0x82b   : > { %v5590_v58 = vpop.permute.xlu1 %5589  ;;  %v5596_v29 = vmax.f32 %v5588_v59, %v5592_v0 }
 0x82c   : > { %v5595_v25 = vmax.f32 %v5587_v22, %v5590_v58  ;;  %v6451_v22 = vld [vmem:[%s12962_s25 + $0xa8] sm:$0xff]  ;;  %v6526_v58 = vld [vmem:[%s12962_s25 + $0xb0] sm:$0xff] }
 0x82d   : > { %v8498_v0 = vpack.c.bf16 %v6451_v22, %v6450_v17 }
 0x82e   : > { %7685 = vmatprep.mubr.msk.f32.mxu0 %vm5604_vm0, %v5595_v25  ;;  %v6527_v25 = vld [vmem:[%s12962_s25 + $0xb8] sm:$0xff] }
 0x82f   : > { %7686 = vmatmul.mubr.msk.f32.vlgmr.msra.gmra.mrb[8].mxu0 %vm5604_vm0, %v5596_v29 }
 0x830   : > { %8469 = vmatpush3.bf16.msra.mxu0 %v8468_v18  ;;  %7692 = vmatprep.mubr.msk.f32.mxu0 %vm8939_vm8, %v8919_v14  ;;  %v8501_v18 = vpack.c.bf16 %v6527_v25, %v6526_v58 }
 0x831   : > { %8470 = vmatprep.subr.bf16.mxu0 %v8916_v45 }
 0x902   : > { %v12365_v54 = vpop.f32.mrb[8].mxu0 }
 0x903   : > { %v12367_v41 = vpop.f32.mrb[9].mxu0  ;;  %v6376_v59 = vrot.slane %v12365_v54, 1  ;;  %v6452_v29 = vrot.slane %v12365_v54, 2  ;;  %v6528_v57 = vrot.slane %v12365_v54, 3  ;;  %v6604_v11 = vrot.slane %v12365_v54, 4 }
 0x904   : > { %7693 = vmatmul.mubr.msk.f32.vlgmr.msra.gmra.mrb[10].mxu0 %vm1450_vm14, %v12367_v41  ;;  %v5768_v33 = vrot.slane %v12367_v41, 1  ;;  %v5844_v1 = vrot.slane %v12367_v41, 2  ;;  %v5920_v26 = vrot.slane %v12367_v41, 3  ;;  %v5996_v10 = vrot.slane %v12367_v41, 4 }
 0x905   : > { %8472 = vmatpush3.bf16.msra.mxu0 %v8471_v47  ;;  %7699 = vmatprep.mubr.msk.f32.mxu0 %vm8939_vm8, %v8919_v14  ;;  %v6072_v48 = vrot.slane %v12367_v41, 5  ;;  %v6148_v16 = vrot.slane %v12367_v41, 6  ;;  %v6224_v36 = vrot.slane %v12367_v41, 7  ;;  %v8510_v47 = vpack.c.bf16 %v6755_v15, %v6754_v34 }
 0x906   : > { %8473 = vmatprep.subr.bf16.mxu0 %v8916_v45  ;;  %v6680_v41 = vrot.slane %v12365_v54, 5  ;;  %v6756_v44 = vrot.slane %v12365_v54, 6  ;;  %v6832_v52 = vrot.slane %v12365_v54, 7 }
 0x90c   : > { %7700 = vmatmul.mubr.msk.f32.vlgmr.msra.gmra.mrb[10].mxu0 %vm1450_vm14, %v5768_v33  ;;  %v6998_v33 = vld [vmem:[%s12965_s5] sm:$0xff] }
 0x90d   : > { %8475 = vmatpush3.bf16.msra.mxu0 %v8474_v30  ;;  %7706 = vmatprep.mubr.msk.f32.mxu0 %vm8939_vm8, %v8919_v14  ;;  %v6921_v30 = vld [vmem:[%s12963_s10 + $0x70] sm:$0xff]  ;;  %v8537_v8 = vpack.c.bf16 %v6999_v46, %v6998_v33 }
 0x90e   : > { %8476 = vmatprep.subr.bf16.mxu0 %v8916_v45  ;;  %7829 = vmatpush3.msra.mxu1 %v6921_v30 }
 0x90f   : > { %8536 = vmatprep.subr.bf16.mxu1 %v8916_v45 }
 0x914   : > { %7707 = vmatmul.mubr.msk.f32.vlgmr.msra.gmra.mrb[10].mxu0 %vm1450_vm14, %v5844_v1  ;;  %v7001_v1 = vld [vmem:[%s12965_s5 + $0x18] sm:$0xff] }
 0x915   : > { %8478 = vmatpush3.bf16.msra.mxu0 %v8477_v49  ;;  %7713 = vmatprep.mubr.msk.f32.mxu0 %vm8939_vm8, %v8919_v14  ;;  %v7000_v49 = vld [vmem:[%s12965_s5 + $0x10] sm:$0xff] }
 0x916   : > { %8479 = vmatprep.subr.bf16.mxu0 %v8916_v45  ;;  %v8540_v9 = vpack.c.bf16 %v7001_v1, %v7000_v49 }
 0x91c   : > { %7714 = vmatmul.mubr.msk.f32.vlgmr.msra.gmra.mrb[10].mxu0 %vm1450_vm14, %v5920_v26 }
 0x91d   : > { %8481 = vmatpush3.bf16.msra.mxu0 %v8480_v38  ;;  %7720 = vmatprep.mubr.msk.f32.mxu0 %vm8939_vm8, %v8919_v14  ;;  %v7003_v38 = vld [vmem:[%s12965_s5 + $0x28] sm:$0xff] }
 0x91e   : > { %8482 = vmatprep.subr.bf16.mxu0 %v8916_v45  ;;  %v8543_v26 = vpack.c.bf16 %v7003_v38, %v7002_v3 }
 0x924   : > { %7721 = vmatmul.mubr.msk.f32.vlgmr.msra.gmra.mrb[10].mxu0 %vm1450_vm14, %v5996_v10  ;;  %v7006_v10 = vld [vmem:[%s12965_s5 + $0x40] sm:$0xff] }
 0x925   : > { %8484 = vmatpush3.bf16.msra.mxu0 %v8483_v2  ;;  %7727 = vmatprep.mubr.msk.f32.mxu0 %vm8939_vm8, %v8919_v14  ;;  %v8546_v2 = vpack.c.bf16 %v7005_v43, %v7004_v28  ;;  %v8549_v7 = vpack.c.bf16 %v7007_v63, %v7006_v10 }
 0x926   : > { %8485 = vmatprep.subr.bf16.mxu0 %v8916_v45 }
 0x92c   : > { %7728 = vmatmul.mubr.msk.f32.vlgmr.msra.gmra.mrb[10].mxu0 %vm1450_vm14, %v6072_v48 }
 0x92d   : > { %8487 = vmatpush3.bf16.msra.mxu0 %v8486_v56  ;;  %7734 = vmatprep.mubr.msk.f32.mxu0 %vm8939_vm8, %v8919_v14  ;;  %v7008_v56 = vld [vmem:[%s12965_s5 + $0x50] sm:$0xf] }
 0x92e   : > { %8488 = vmatprep.subr.bf16.mxu0 %v8916_v45 }
 0x934   : > { %7735 = vmatmul.mubr.msk.f32.vlgmr.msra.gmra.mrb[10].mxu0 %vm1450_vm14, %v6148_v16 }
 0x935   : > { %8490 = vmatpush3.bf16.msra.mxu0 %v8489_v27  ;;  %7741 = vmatprep.mubr.msk.f32.mxu0 %vm8939_vm8, %v8919_v14 }
 0x936   : > { %8491 = vmatprep.subr.bf16.mxu0 %v8916_v45 }
 0x93c   : > { %7742 = vmatmul.mubr.msk.f32.vlgmr.msra.gmra.mrb[10].mxu0 %vm1450_vm14, %v6224_v36 }
 0x93d   : > { %8493 = vmatpush3.bf16.msra.mxu0 %v8492_v32  ;;  %7748 = vmatprep.mubr.msk.f32.mxu0 %vm8939_vm8, %v8919_v14 }
 0x93e   : > { %8494 = vmatprep.subr.bf16.mxu0 %v8916_v45 }
 0x944   : > { %7749 = vmatmul.mubr.msk.f32.vlgmr.msra.gmra.mrb[10].mxu0 %vm1450_vm14, %v12365_v54  ;;  %v5689_v54 = vld [vmem:[%s12964_s30] sm:$0x1]  ;;  %s8940_s30 = smov [#allocation2]  }
 0x945   : > { %8496 = vmatpush3.bf16.msra.mxu0 %v8495_v5  ;;  %7755 = vmatprep.mubr.msk.f32.mxu0 %vm8939_vm8, %v8919_v14  ;;  %s8806_s0 = sshll.u32 %s8940_s30, 4  ;;  %s8807_s0 = int_to_ptr.vmem [resolvable:$false] %s8806_s0 }
 0x946   : > { %8497 = vmatprep.subr.bf16.mxu0 %v8916_v45  ;;  %s8808_s17 = scalar_lea.vmem %s8807_s0, 32  ;;  %p8809_p0 = scmp.lt.s32.totalorder %s12620_s18, %s8807_s0 }
 0x947   : > { %p8810_p1 = scmp.lt.s32.totalorder %s8808_s17, %s8802_s12 }
 0x949   : > { %p8811_p2 = por %p8810_p1, %p8809_p0 }
 0x94b   : > { %p8812_p3 = pnand %p8811_p2, %p8805_p13 }
 0x94c   : > { %7756 = vmatmul.mubr.msk.f32.vlgmr.msra.gmra.mrb[10].mxu0 %vm1450_vm14, %v6376_v59 }
 0x94d   : > { %8499 = vmatpush3.bf16.msra.mxu0 %v8498_v0  ;;  %7762 = vmatprep.mubr.msk.f32.mxu0 %vm8939_vm8, %v8919_v14 }
 0x94e   : > { %8500 = vmatprep.subr.bf16.mxu0 %v8916_v45 }
 0x954   : > { %7763 = vmatmul.mubr.msk.f32.vlgmr.msra.gmra.mrb[10].mxu0 %vm1450_vm14, %v6452_v29 }
 0x955   : > { %8502 = vmatpush3.bf16.msra.mxu0 %v8501_v18  ;;  %7769 = vmatprep.mubr.msk.f32.mxu0 %vm8939_vm8, %v8919_v14 }
 0x956   : > { %8503 = vmatprep.subr.bf16.mxu0 %v8916_v45 }
 0x95c   : > { %7770 = vmatmul.mubr.msk.f32.vlgmr.msra.gmra.mrb[10].mxu0 %vm1450_vm14, %v6528_v57 }
 0x95d   : > { %8505 = vmatpush3.bf16.msra.mxu0 %v8504_v40  ;;  %7776 = vmatprep.mubr.msk.f32.mxu0 %vm8939_vm8, %v8919_v14 }
 0x95e   : > { %8506 = vmatprep.subr.bf16.mxu0 %v8916_v45 }
 0x964   : > { %7777 = vmatmul.mubr.msk.f32.vlgmr.msra.gmra.mrb[10].mxu0 %vm1450_vm14, %v6604_v11 }
 0x965   : > { %8508 = vmatpush3.bf16.msra.mxu0 %v8507_v23  ;;  %7783 = vmatprep.mubr.msk.f32.mxu0 %vm8939_vm8, %v8919_v14 }
 0x966   : > { %8509 = vmatprep.subr.bf16.mxu0 %v8916_v45 }
 0x96c   : > { %7784 = vmatmul.mubr.msk.f32.vlgmr.msra.gmra.mrb[10].mxu0 %vm1450_vm14, %v6680_v41 }
 0x96d   : > { %8511 = vmatpush3.bf16.msra.mxu0 %v8510_v47  ;;  %7790 = vmatprep.mubr.msk.f32.mxu0 %vm8939_vm8, %v8919_v14 }
 0x96e   : > { %8512 = vmatprep.subr.bf16.mxu0 %v8916_v45 }
 0x974   : > { %7791 = vmatmul.mubr.msk.f32.vlgmr.msra.gmra.mrb[10].mxu0 %vm1450_vm14, %v6756_v44 }
 0x975   : > { %8514 = vmatpush3.bf16.msra.mxu0 %v8513_v19  ;;  %7797 = vmatprep.mubr.msk.f32.mxu0 %vm8939_vm8, %v8919_v14 }
 0x97c   : > { %7798 = vmatmul.mubr.msk.f32.vlgmr.msra.gmra.mrb[10].mxu0 %vm1450_vm14, %v6832_v52  ;;  %vm6923_vm14 = vcmask 982016  }
 0xa4f   : > { %v6901_v13 = vpop.f32.mrb[10].mxu0 }
 0xa50   : > { %v8555_v60 = vadd.f32 %v6901_v13, %v5689_v54  ;;  %v7799_v39 = vpop.f32.mrb[11].mxu0 }
 0xa52   : > { %v6906_v53 = vmax.f32 %v8555_v60, 0.0 }
 0xa54   : > { %7831 = vmatmul.mubr.msk.f32.vlgmr.msra.gmra.mrb[8].mxu1 %vm6923_vm14, %v6906_v53 }
 0xa55   : > { %8538 = vmatpush3.bf16.msra.mxu1 %v8537_v8  ;;  %7855 = vmatprep.mubr.msk.f32.mxu1 %vm8939_vm8, %v8919_v14 }
 0xa56   : > { %8539 = vmatprep.subr.bf16.mxu1 %v8916_v45 }
 0xa59   : > { %8541 = vmatpush3.bf16.msra.mxu1 %v8540_v9 }
 0xa5a   : > { %8542 = vmatprep.subr.bf16.mxu1 %v8916_v45 }
 0xa5d   : > { %8544 = vmatpush3.bf16.msra.mxu1 %v8543_v26 }
 0xa5e   : > { %8545 = vmatprep.subr.bf16.mxu1 %v8916_v45 }
 0xa61   : > { %8547 = vmatpush3.bf16.msra.mxu1 %v8546_v2 }
 0xa62   : > { %8548 = vmatprep.subr.bf16.mxu1 %v8916_v45  ;;  %v6922_v45 = vld [vmem:[%s12968_s15] sm:$0x1] }
 0xa65   : > { %8550 = vmatpush3.bf16.msra.mxu1 %v8549_v7 }
 0xa66   : > { %7853 = vmatprep.subr.mxu1 %v8919_v14  ;;  %v7009_v14 = vld [vmem:[%s12970_s27] sm:$0x1] }
 0xa69   : > { %7854 = vmatpush3.msk.msra.mxu1 %vm2103_vm1, %v7008_v56  ;;  %vm7087_vm1 = vcmask 73728  }
 0xb27   : > { %v6993_v48 = vpop.f32.mrb[8].mxu1 }
 0xb28   : > { %v6994_v61 = vadd.f32 %v6993_v48, %v6922_v45  ;;  %v7832_v4 = vpop.f32.mrb[9].mxu1 }
 0xb2a   : > { %v6997_v27 = vmax.f32 %v6994_v61, 0.0 }
 0xb2c   : > { %7856 = vmatmul.mubr.msk.f32.vlgmr.msra.gmra.mrb[10].mxu1 %vm7010_vm11, %v6997_v27 }
 0xbff   : > { %v7083_v16 = vpop.f32.mrb[10].mxu1 }
 0xc00   : > { %v7084_v35 = vadd.f32 %v7083_v16, %v7009_v14  ;;  %v7857_v37 = vpop.f32.mrb[11].mxu1 }
 0xc02   : > { %7088 = vst.msk [vmem:[%s484_s11] sm:$0x1] %vm7087_vm1, %v7084_v35 }
 0xc03   : > { %8815 = shalt.err (!%p8812_p3)
}
 0xc04   : > { %s8816_s28 = scalar_lea.hbm %s12618_s14, 16  ;;  %s8820_s15 = scalar_lea.hbm %s12971_s8, 32 }
 0xc05   : > { %p8817_p4 = scmp.ne.s32.totalorder %s12618_s14, %s8816_s28  ;;  %p8821_p9 = scmp.lt.u32.totalorder %s12618_s14, %s12971_s8 }
 0xc06   : > { %p8822_p10 = scmp.lt.u32.totalorder %s8820_s15, %s8816_s28  ;;  %p8824_p12 = scmp.lt.u32.totalorder %s8816_s28, %s12618_s14 }
 0xc07   : > { %p8818_p7 = pnand %p8817_p4, %p9059_p5 }
 0xc08   : > { %p8823_p11 = por %p8822_p10, %p8821_p9 }
 0xc09   : > { %p8819_p8 = pneg %p8818_p7 }
 0xc0a   : > { %p8825_p13 = por %p8824_p12, %p8823_p11 }
 0xc0c   : > { %p8826_p0 = pnand %p8825_p13, %p8819_p8 }
 0xc0e   : > { %8829 = shalt.err (!%p8826_p0)
}
 0xc0f   : > { %8647 = dma.vmem_to_hbm [thread:$0]  (%p9059_p5), %s12620_s18, 16, %s12618_s14, %s7090_s16  }
 0xc10 PF: > { %s12972_s19 = sld [smem:[#allocation8_spill]]  ;;  %s12973_s27 = sld [smem:[#allocation5_spill]] }
 0xc16   : > { %p8653_p1 = scmp.ge.s32.totalorder %s12972_s19, 2  ;;  %s7114_s11 = sand.u32 1, %s12973_s27  }
 0xc17   : > { %s7115_s21 = scalar_lea.sflag [#allocation3], %s7114_s11 }
 0xc18   : > { %p8650_p2 = pnand %p8653_p1, %p9063_p6 }
 0xc1a   : > { %8847 = dma.done.wait (!%p8650_p2), %s7115_s21, 16  }
 0xc1b   : > { %8849 = vsyncadd (!%p8650_p2), %s7115_s21, 4294967280  ;;  %s12975_s21 = sld [smem:[#allocation10_spill]]  ;;  %s12976_s18 = sld [smem:[#allocation6_spill]] }
 0xc1c   : > { %s12977_s19 = sld [smem:[#allocation7_spill]]  ;;  %s12978_s20 = sld [smem:[#allocation11_spill]] }
 0xc21   : > { %p25_p3 = scmp.ge.s32.totalorder %s12975_s21, 4  }
 0xc23   :  { %27 = sbr.rel (!%p25_p3) target bundleno = 16 (0x10), region = 115 }
 0xc2a   :  { %7119 = vsyncpa [#allocation3], 1 }
 0xc2b   :  { %7121 = vsyncpa [#allocation3 + $0x1], 1 }

</bundles_post_ra>
